<compile_context>
chip_gen: v6e
topology: v6e:2x2x1
jax: 0.10.0
libtpu: 0.0.40
codegen_flags: <defaults>
</compile_context>

<pallas_src>
import jax
import jax.numpy as jnp
from jax.experimental import pallas as pl
from jax.experimental.pallas import tpu as pltpu

EPS = 1e-5          # nn.BatchNorm2d default eps
LANE = 128
SUBLANE = 8


def _round_up(x, m):
    return (x + m - 1) // m * m


# --------------------------------------------------------------------------------------
# Kernel helpers
# --------------------------------------------------------------------------------------
def _conv3x3_tile(x, w_ref, b_ref, out_ref, stats_ref, patch_ref):
    """3x3 'same' conv + bias for one (H, W, Cin) tile, plus per-tile BN statistics.

    x         : (H, W, Cin) f32 value (already BN/ReLU'd if required)
    w_ref     : (9*Cin, Cout) bf16 ref  -- HWIO weights flattened tap-major
    b_ref     : (1, Cout)     f32 ref
    out_ref   : (1, H, W, Cout) f32 ref -- raw conv output (pre-BN)
    stats_ref : (1, 2, Cout)  f32 ref   -- [sum, sum_of_squares] over this tile
    patch_ref : (H, W, 9*Cin) f32 VMEM scratch (im2col buffer, built once per tile)
    """
    H, W, Cin = x.shape
    Cout = out_ref.shape[-1]

    zrow = jnp.zeros((1, W, Cin), patch_ref.dtype)
    zcol = jnp.zeros((H, 1, Cin), patch_ref.dtype)
    for dh in range(3):
        h_lo, h_hi = max(0, 1 - dh), min(H, H + 1 - dh)
        for dw in range(3):
            w_lo, w_hi = max(0, 1 - dw), min(W, W + 1 - dw)
            cs = slice((dh * 3 + dw) * Cin, (dh * 3 + dw + 1) * Cin)
            # zero only the 1-pixel halo strips this tap cannot fill (the "same" padding)
            if dh == 0:
                patch_ref[0:1, :, cs] = zrow
            if dh == 2:
                patch_ref[H - 1:H, :, cs] = zrow
            if dw == 0:
                patch_ref[:, 0:1, cs] = zcol
            if dw == 2:
                patch_ref[:, W - 1:W, cs] = zcol
            patch_ref[h_lo:h_hi, w_lo:w_hi, cs] = x[
                h_lo + dh - 1:h_hi + dh - 1, w_lo + dw - 1:w_hi + dw - 1, :]

    # single fused im2col matmul on the MXU: bf16 operands, f32 accumulation
    patches = patch_ref[...].reshape(H * W, 9 * Cin).astype(jnp.bfloat16)
    acc = jnp.dot(patches, w_ref[...], preferred_element_type=jnp.float32)
    acc = acc + b_ref[...]                                    # (H*W, Cout) f32

    # one-pass per-channel sum / sum-of-squares for the batch-norm statistics
    stats_ref[:, 0:1, :] = jnp.sum(acc, axis=0, keepdims=True).reshape(1, 1, Cout)
    stats_ref[:, 1:2, :] = jnp.sum(acc * acc, axis=0, keepdims=True).reshape(1, 1, Cout)

    out_ref[...] = acc.reshape(1, H, W, Cout)


def _conv1_kernel(x_ref, w_ref, b_ref, out_ref, stats_ref, patch_ref):
    _conv3x3_tile(x_ref[0], w_ref, b_ref, out_ref, stats_ref, patch_ref)


def _bn_relu_conv2_kernel(y_ref, a_ref, c_ref, w_ref, b_ref, out_ref, stats_ref, patch_ref):
    # BN1 (training batch stats, pre-reduced to per-channel scale/shift) + ReLU, fused
    # directly into conv2's input -- no extra HBM round trip for the normalized tensor.
    y = jnp.maximum(y_ref[0] * a_ref[...] + c_ref[...], 0.0)
    _conv3x3_tile(y, w_ref, b_ref, out_ref, stats_ref, patch_ref)


def _bn_relu_kernel(y_ref, a_ref, c_ref, out_ref):
    out_ref[...] = jnp.maximum(y_ref[...] * a_ref[...] + c_ref[...], 0.0)


# --------------------------------------------------------------------------------------
# Wrapper
# --------------------------------------------------------------------------------------
def double_conv_block(x_nchw, params):
    """Pallas implementation of _UNetDoubleConvBlock.forward (NCHW in / NCHW out)."""
    w1, b1, g1, be1, w2, b2, g2, be2 = params   # w1:(3,3,Cin,Cout) HWIO, w2:(3,3,Cout,Cout)
    N, Cin, H, W = x_nchw.shape
    Cout = w1.shape[-1]

    Cin_p = _round_up(Cin, SUBLANE)     # contraction-only dim: sublane aligned is enough
    Cout_p = _round_up(Cout, LANE)      # lane dim of all activations: lane-dense

    f32 = jnp.float32
    x = jnp.transpose(x_nchw, (0, 2, 3, 1)).astype(f32)                 # NHWC
    x = jnp.pad(x, ((0, 0), (0, 0), (0, 0), (0, Cin_p - Cin)))          # channel pad only

    # weights: HWIO -> (9*C, Cout_p), bf16 for the MXU (accumulation stays f32)
    w1_p = jnp.pad(w1.astype(f32), ((0, 0), (0, 0), (0, Cin_p - Cin), (0, Cout_p - Cout)))
    w2_p = jnp.pad(w2.astype(f32), ((0, 0), (0, 0), (0, Cout_p - Cout), (0, Cout_p - Cout)))
    w1_mat = w1_p.reshape(9 * Cin_p, Cout_p).astype(jnp.bfloat16)
    w2_mat = w2_p.reshape(9 * Cout_p, Cout_p).astype(jnp.bfloat16)
    pad_c = lambda v: jnp.pad(v.astype(f32), (0, Cout_p - Cout)).reshape(1, Cout_p)
    b1_r, g1_r, be1_r = pad_c(b1), pad_c(g1), pad_c(be1)
    b2_r, g2_r, be2_r = pad_c(b2), pad_c(g2), pad_c(be2)

    cparams = pltpu.CompilerParams(
        dimension_semantics=("parallel",),          # batch-parallel: pipelines + v7x 2 TCs
        vmem_limit_bytes=48 * 1024 * 1024)          # stays under v7x's 64 MiB VMEM

    img_in = lambda C: pl.BlockSpec((1, H, W, C), lambda i: (i, 0, 0, 0))
    img_out = pl.BlockSpec((1, H, W, Cout_p), lambda i: (i, 0, 0, 0))
    stats_spec = pl.BlockSpec((1, 2, Cout_p), lambda i: (i, 0, 0))
    vec_spec = pl.BlockSpec((1, Cout_p), lambda i: (0, 0))

    # ---------------- pass 1: conv1 (+bias) and per-image sum / sumsq ----------------
    y1_raw, st1 = pl.pallas_call(
        _conv1_kernel,
        grid=(N,),
        in_specs=[img_in(Cin_p),
                  pl.BlockSpec((9 * Cin_p, Cout_p), lambda i: (0, 0)),
                  vec_spec],
        out_specs=[img_out, stats_spec],
        out_shape=[jax.ShapeDtypeStruct((N, H, W, Cout_p), f32),
                   jax.ShapeDtypeStruct((N, 2, Cout_p), f32)],
        scratch_shapes=[pltpu.VMEM((H, W, 9 * Cin_p), f32)],
        compiler_params=cparams,
    )(x, w1_mat, b1_r)

    cnt = float(N * H * W)

    def bn_scale_shift(stats, g, be):
        s, ss = stats[:, 0, :].sum(0), stats[:, 1, :].sum(0)
        mean = s / cnt
        var = jnp.maximum(ss / cnt - mean * mean, 0.0)       # biased var (training-mode BN)
        a = g.reshape(-1) * jax.lax.rsqrt(var + EPS)
        c = be.reshape(-1) - mean * a
        return a.reshape(1, -1), c.reshape(1, -1)

    a1, c1 = bn_scale_shift(st1, g1_r, be1_r)

    # ------------- pass 2: BN1 + ReLU fused with conv2 (+bias) and stats -------------
    y2_raw, st2 = pl.pallas_call(
        _bn_relu_conv2_kernel,
        grid=(N,),
        in_specs=[img_in(Cout_p), vec_spec, vec_spec,
                  pl.BlockSpec((9 * Cout_p, Cout_p), lambda i: (0, 0)),
                  vec_spec],
        out_specs=[img_out, stats_spec],
        out_shape=[jax.ShapeDtypeStruct((N, H, W, Cout_p), f32),
                   jax.ShapeDtypeStruct((N, 2, Cout_p), f32)],
        scratch_shapes=[pltpu.VMEM((H, W, 9 * Cout_p), f32)],
        compiler_params=cparams,
    )(y1_raw, a1, c1, w2_mat, b2_r)

    a2, c2 = bn_scale_shift(st2, g2_r, be2_r)

    # ------------------------------ pass 3: BN2 + ReLU -------------------------------
    out_p = pl.pallas_call(
        _bn_relu_kernel,
        grid=(N,),
        in_specs=[img_in(Cout_p), vec_spec, vec_spec],
        out_specs=img_out,
        out_shape=jax.ShapeDtypeStruct((N, H, W, Cout_p), f32),
        compiler_params=cparams,
    )(y2_raw, a2, c2)

    out = out_p[..., :Cout]                                   # drop channel padding
    return jnp.transpose(out, (0, 3, 1, 2))                   # back to NCHW


# --------------------------------------------------------------------------------------
# Pure-JAX reference (same math as the PyTorch module in training mode)
# --------------------------------------------------------------------------------------
def _ref_double_conv(x_nchw, params):
    w1, b1, g1, be1, w2, b2, g2, be2 = params
    x = jnp.transpose(x_nchw, (0, 2, 3, 1)).astype(jnp.float32)

    def conv(x, w, b):
        y = jax.lax.conv_general_dilated(
            x, w, window_strides=(1, 1), padding='SAME',
            dimension_numbers=('NHWC', 'HWIO', 'NHWC'))
        return y + b

    def bn_relu(y, g, be):
        m = jnp.mean(y, axis=(0, 1, 2), keepdims=True)
        v = jnp.mean((y - m) ** 2, axis=(0, 1, 2), keepdims=True)
        return jnp.maximum((y - m) * jax.lax.rsqrt(v + EPS) * g + be, 0.0)

    y = bn_relu(conv(x, w1, b1), g1, be1)
    y = bn_relu(conv(y, w2, b2), g2, be2)
    return jnp.transpose(y, (0, 3, 1, 2))


if __name__ == "__main__":
    N, Cin, Cout, H, W = 2, 4, 8, 16, 16

    key = jax.random.PRNGKey(0)
    ks = jax.random.split(key, 9)
    x = jax.random.normal(ks[0], (N, Cin, H, W), jnp.float32)
    # Deterministic synthetic parameters (shapes from the module __init__), HWIO layout.
    w1 = 0.1 * jax.random.normal(ks[1], (3, 3, Cin, Cout), jnp.float32)
    b1 = 0.1 * jax.random.normal(ks[2], (Cout,), jnp.float32)
    g1 = 1.0 + 0.1 * jax.random.normal(ks[3], (Cout,), jnp.float32)
    be1 = 0.1 * jax.random.normal(ks[4], (Cout,), jnp.float32)
    w2 = 0.1 * jax.random.normal(ks[5], (3, 3, Cout, Cout), jnp.float32)
    b2 = 0.1 * jax.random.normal(ks[6], (Cout,), jnp.float32)
    g2 = 1.0 + 0.1 * jax.random.normal(ks[7], (Cout,), jnp.float32)
    be2 = 0.1 * jax.random.normal(ks[8], (Cout,), jnp.float32)
    params = (w1, b1, g1, be1, w2, b2, g2, be2)

    out = jax.block_until_ready(jax.jit(double_conv_block)(x, params))
    ref = _ref_double_conv(x, params)

    assert out.shape == (N, Cout, H, W), out.shape
    # bf16 MXU operands + two BatchNorms amplify rounding slightly; f32 reference tolerance:
    if not jnp.allclose(out, ref, atol=3e-2, rtol=3e-2):
        raise AssertionError("Pallas kernel output mismatch vs JAX reference")
    print("KERNEL_OK")
</pallas_src>

<mosaic_0001>
module attributes {stable_mosaic.version = 11 : i64} {
  func.func @_bn_relu_kernel(%arg0: i32, %arg1: memref<1x16x16x128xf32, #tpu.memory_space<vmem>>, %arg2: memref<1x128xf32, #tpu.memory_space<vmem>>, %arg3: memref<1x128xf32, #tpu.memory_space<vmem>>, %arg4: memref<1x16x16x128xf32, #tpu.memory_space<vmem>>) attributes {dimension_semantics = [#tpu.dimension_semantics<parallel>], iteration_bounds = array<i64: 2>, scalar_prefetch = 0 : i64, scratch_operands = 0 : i64, tpu.core_type = #tpu.core_type<tc>, window_params = [{transform_indices = @transform_0, window_bounds = array<i64: 1, 16, 16, 128>}, {pipeline_mode = #tpu.pipeline_mode<synchronous>, transform_indices = @transform_1, window_bounds = array<i64: 1, 128>}, {pipeline_mode = #tpu.pipeline_mode<synchronous>, transform_indices = @transform_2, window_bounds = array<i64: 1, 128>}, {transform_indices = @transform_3, window_bounds = array<i64: 1, 16, 16, 128>}]} {
    %c0 = arith.constant 0 : index
    %c0_0 = arith.constant 0 : index
    %c0_1 = arith.constant 0 : index
    %c0_2 = arith.constant 0 : index
    %0 = vector.load %arg1[%c0, %c0_0, %c0_1, %c0_2] : memref<1x16x16x128xf32, #tpu.memory_space<vmem>>, vector<1x16x16x128xf32>
    %c0_3 = arith.constant 0 : index
    %c0_4 = arith.constant 0 : index
    %1 = vector.load %arg2[%c0_3, %c0_4] : memref<1x128xf32, #tpu.memory_space<vmem>>, vector<1x128xf32>
    %2 = vector.shape_cast %1 : vector<1x128xf32> to vector<1x1x1x128xf32>
    %3 = vector.broadcast %2 : vector<1x1x1x128xf32> to vector<1x16x16x128xf32>
    %4 = arith.mulf %0, %3 : vector<1x16x16x128xf32>
    %c0_5 = arith.constant 0 : index
    %c0_6 = arith.constant 0 : index
    %5 = vector.load %arg3[%c0_5, %c0_6] : memref<1x128xf32, #tpu.memory_space<vmem>>, vector<1x128xf32>
    %6 = vector.shape_cast %5 : vector<1x128xf32> to vector<1x1x1x128xf32>
    %7 = vector.broadcast %6 : vector<1x1x1x128xf32> to vector<1x16x16x128xf32>
    %8 = arith.addf %4, %7 : vector<1x16x16x128xf32>
    %cst = arith.constant 0.000000e+00 : f32
    %9 = vector.broadcast %cst : f32 to vector<1x16x16x128xf32>
    %10 = arith.maximumf %8, %9 : vector<1x16x16x128xf32>
    %c0_7 = arith.constant 0 : index
    %c0_8 = arith.constant 0 : index
    %c0_9 = arith.constant 0 : index
    %c0_10 = arith.constant 0 : index
    %11 = vector.load %arg4[%c0_7, %c0_8, %c0_9, %c0_10] : memref<1x16x16x128xf32, #tpu.memory_space<vmem>>, vector<1x16x16x128xf32>
    tpu.vector_store %arg4[%c0_7, %c0_8, %c0_9, %c0_10], %10 {strides = array<i32>} : memref<1x16x16x128xf32, #tpu.memory_space<vmem>>, vector<1x16x16x128xf32>,
    return
  }
  func.func @transform_0(%arg0: i32) -> (i32, i32, i32, i32) {
    %c0_i32 = arith.constant 0 : i32
    %c0_i32_0 = arith.constant 0 : i32
    %c0_i32_1 = arith.constant 0 : i32
    %c0_i32_2 = arith.constant 0 : i32
    return %arg0, %c0_i32, %c0_i32_0, %c0_i32_1 : i32, i32, i32, i32
  }
  func.func @transform_1(%arg0: i32) -> (i32, i32) {
    %c0_i32 = arith.constant 0 : i32
    %c0_i32_0 = arith.constant 0 : i32
    %c0_i32_1 = arith.constant 0 : i32
    return %c0_i32, %c0_i32_0 : i32, i32
  }
  func.func @transform_2(%arg0: i32) -> (i32, i32) {
    %c0_i32 = arith.constant 0 : i32
    %c0_i32_0 = arith.constant 0 : i32
    %c0_i32_1 = arith.constant 0 : i32
    return %c0_i32, %c0_i32_0 : i32, i32
  }
  func.func @transform_3(%arg0: i32) -> (i32, i32, i32, i32) {
    %c0_i32 = arith.constant 0 : i32
    %c0_i32_0 = arith.constant 0 : i32
    %c0_i32_1 = arith.constant 0 : i32
    %c0_i32_2 = arith.constant 0 : i32
    return %arg0, %c0_i32, %c0_i32_0, %c0_i32_1 : i32, i32, i32, i32
  }
}

module attributes {stable_mosaic.version = 11 : i64} {
  func.func @_conv1_kernel(%arg0: i32, %arg1: memref<1x16x16x8xf32, #tpu.memory_space<vmem>>, %arg2: memref<72x128xbf16, #tpu.memory_space<vmem>>, %arg3: memref<1x128xf32, #tpu.memory_space<vmem>>, %arg4: memref<1x16x16x128xf32, #tpu.memory_space<vmem>>, %arg5: memref<1x2x128xf32, #tpu.memory_space<vmem>>, %arg6: memref<16x16x72xf32, #tpu.memory_space<vmem>>) attributes {dimension_semantics = [#tpu.dimension_semantics<parallel>], iteration_bounds = array<i64: 2>, scalar_prefetch = 0 : i64, scratch_operands = 1 : i64, tpu.core_type = #tpu.core_type<tc>, window_params = [{transform_indices = @transform_0, window_bounds = array<i64: 1, 16, 16, 8>}, {pipeline_mode = #tpu.pipeline_mode<synchronous>, transform_indices = @transform_1, window_bounds = array<i64: 72, 128>}, {pipeline_mode = #tpu.pipeline_mode<synchronous>, transform_indices = @transform_2, window_bounds = array<i64: 1, 128>}, {transform_indices = @transform_3, window_bounds = array<i64: 1, 16, 16, 128>}, {transform_indices = @transform_4, window_bounds = array<i64: 1, 2, 128>}]} {
    %c0 = arith.constant 0 : index
    %c0_0 = arith.constant 0 : index
    %c0_1 = arith.constant 0 : index
    %c0_2 = arith.constant 0 : index
    %0 = vector.load %arg1[%c0, %c0_0, %c0_1, %c0_2] : memref<1x16x16x8xf32, #tpu.memory_space<vmem>>, vector<1x16x16x8xf32>
    %1 = vector.shape_cast %0 : vector<1x16x16x8xf32> to vector<16x16x8xf32>
    %cst = arith.constant 0.000000e+00 : f32
    %2 = vector.broadcast %cst : f32 to vector<1x16x8xf32>
    %cst_3 = arith.constant 0.000000e+00 : f32
    %3 = vector.broadcast %cst_3 : f32 to vector<16x1x8xf32>
    %c0_4 = arith.constant 0 : index
    %c0_5 = arith.constant 0 : index
    %c0_6 = arith.constant 0 : index
    %4 = vector.load %arg6[%c0_4, %c0_5, %c0_6] : memref<16x16x72xf32, #tpu.memory_space<vmem>>, vector<1x16x8xf32>
    tpu.vector_store %arg6[%c0_4, %c0_5, %c0_6], %2 {strides = array<i32>} : memref<16x16x72xf32, #tpu.memory_space<vmem>>, vector<1x16x8xf32>,
    %c0_7 = arith.constant 0 : index
    %c0_8 = arith.constant 0 : index
    %c0_9 = arith.constant 0 : index
    %5 = vector.load %arg6[%c0_7, %c0_8, %c0_9] : memref<16x16x72xf32, #tpu.memory_space<vmem>>, vector<16x1x8xf32>
    tpu.vector_store %arg6[%c0_7, %c0_8, %c0_9], %3 {strides = array<i32>} : memref<16x16x72xf32, #tpu.memory_space<vmem>>, vector<16x1x8xf32>,
    %6 = vector.extract_strided_slice %1 {offsets = [0, 0, 0], sizes = [15, 15, 8], strides = [1, 1, 1]} : vector<16x16x8xf32> to vector<15x15x8xf32>
    %c1 = arith.constant 1 : index
    %c1_10 = arith.constant 1 : index
    %c0_11 = arith.constant 0 : index
    %7 = vector.load %arg6[%c1, %c1_10, %c0_11] : memref<16x16x72xf32, #tpu.memory_space<vmem>>, vector<15x15x8xf32>
    tpu.vector_store %arg6[%c1, %c1_10, %c0_11], %6 {strides = array<i32>} : memref<16x16x72xf32, #tpu.memory_space<vmem>>, vector<15x15x8xf32>,
    %c0_12 = arith.constant 0 : index
    %c0_13 = arith.constant 0 : index
    %c8 = arith.constant 8 : index
    %8 = vector.load %arg6[%c0_12, %c0_13, %c8] : memref<16x16x72xf32, #tpu.memory_space<vmem>>, vector<1x16x8xf32>
    tpu.vector_store %arg6[%c0_12, %c0_13, %c8], %2 {strides = array<i32>} : memref<16x16x72xf32, #tpu.memory_space<vmem>>, vector<1x16x8xf32>,
    %9 = vector.extract_strided_slice %1 {offsets = [0, 0, 0], sizes = [15, 16, 8], strides = [1, 1, 1]} : vector<16x16x8xf32> to vector<15x16x8xf32>
    %c1_14 = arith.constant 1 : index
    %c0_15 = arith.constant 0 : index
    %c8_16 = arith.constant 8 : index
    %10 = vector.load %arg6[%c1_14, %c0_15, %c8_16] : memref<16x16x72xf32, #tpu.memory_space<vmem>>, vector<15x16x8xf32>
    tpu.vector_store %arg6[%c1_14, %c0_15, %c8_16], %9 {strides = array<i32>} : memref<16x16x72xf32, #tpu.memory_space<vmem>>, vector<15x16x8xf32>,
    %c0_17 = arith.constant 0 : index
    %c0_18 = arith.constant 0 : index
    %c16 = arith.constant 16 : index
    %11 = vector.load %arg6[%c0_17, %c0_18, %c16] : memref<16x16x72xf32, #tpu.memory_space<vmem>>, vector<1x16x8xf32>
    tpu.vector_store %arg6[%c0_17, %c0_18, %c16], %2 {strides = array<i32>} : memref<16x16x72xf32, #tpu.memory_space<vmem>>, vector<1x16x8xf32>,
    %c0_19 = arith.constant 0 : index
    %c15 = arith.constant 15 : index
    %c16_20 = arith.constant 16 : index
    %12 = vector.load %arg6[%c0_19, %c15, %c16_20] : memref<16x16x72xf32, #tpu.memory_space<vmem>>, vector<16x1x8xf32>
    tpu.vector_store %arg6[%c0_19, %c15, %c16_20], %3 {strides = array<i32>} : memref<16x16x72xf32, #tpu.memory_space<vmem>>, vector<16x1x8xf32>,
    %13 = vector.extract_strided_slice %1 {offsets = [0, 1, 0], sizes = [15, 15, 8], strides = [1, 1, 1]} : vector<16x16x8xf32> to vector<15x15x8xf32>
    %c1_21 = arith.constant 1 : index
    %c0_22 = arith.constant 0 : index
    %c16_23 = arith.constant 16 : index
    %14 = vector.load %arg6[%c1_21, %c0_22, %c16_23] : memref<16x16x72xf32, #tpu.memory_space<vmem>>, vector<15x15x8xf32>
    tpu.vector_store %arg6[%c1_21, %c0_22, %c16_23], %13 {strides = array<i32>} : memref<16x16x72xf32, #tpu.memory_space<vmem>>, vector<15x15x8xf32>,
    %c0_24 = arith.constant 0 : index
    %c0_25 = arith.constant 0 : index
    %c24 = arith.constant 24 : index
    %15 = vector.load %arg6[%c0_24, %c0_25, %c24] : memref<16x16x72xf32, #tpu.memory_space<vmem>>, vector<16x1x8xf32>
    tpu.vector_store %arg6[%c0_24, %c0_25, %c24], %3 {strides = array<i32>} : memref<16x16x72xf32, #tpu.memory_space<vmem>>, vector<16x1x8xf32>,
    %16 = vector.extract_strided_slice %1 {offsets = [0, 0, 0], sizes = [16, 15, 8], strides = [1, 1, 1]} : vector<16x16x8xf32> to vector<16x15x8xf32>
    %c0_26 = arith.constant 0 : index
    %c1_27 = arith.constant 1 : index
    %c24_28 = arith.constant 24 : index
    %17 = vector.load %arg6[%c0_26, %c1_27, %c24_28] : memref<16x16x72xf32, #tpu.memory_space<vmem>>, vector<16x15x8xf32>
    tpu.vector_store %arg6[%c0_26, %c1_27, %c24_28], %16 {strides = array<i32>} : memref<16x16x72xf32, #tpu.memory_space<vmem>>, vector<16x15x8xf32>,
    %c0_29 = arith.constant 0 : index
    %c0_30 = arith.constant 0 : index
    %c32 = arith.constant 32 : index
    %18 = vector.load %arg6[%c0_29, %c0_30, %c32] : memref<16x16x72xf32, #tpu.memory_space<vmem>>, vector<16x16x8xf32>
    tpu.vector_store %arg6[%c0_29, %c0_30, %c32], %1 {strides = array<i32>} : memref<16x16x72xf32, #tpu.memory_space<vmem>>, vector<16x16x8xf32>,
    %c0_31 = arith.constant 0 : index
    %c15_32 = arith.constant 15 : index
    %c40 = arith.constant 40 : index
    %19 = vector.load %arg6[%c0_31, %c15_32, %c40] : memref<16x16x72xf32, #tpu.memory_space<vmem>>, vector<16x1x8xf32>
    tpu.vector_store %arg6[%c0_31, %c15_32, %c40], %3 {strides = array<i32>} : memref<16x16x72xf32, #tpu.memory_space<vmem>>, vector<16x1x8xf32>,
    %20 = vector.extract_strided_slice %1 {offsets = [0, 1, 0], sizes = [16, 15, 8], strides = [1, 1, 1]} : vector<16x16x8xf32> to vector<16x15x8xf32>
    %c0_33 = arith.constant 0 : index
    %c0_34 = arith.constant 0 : index
    %c40_35 = arith.constant 40 : index
    %21 = vector.load %arg6[%c0_33, %c0_34, %c40_35] : memref<16x16x72xf32, #tpu.memory_space<vmem>>, vector<16x15x8xf32>
    tpu.vector_store %arg6[%c0_33, %c0_34, %c40_35], %20 {strides = array<i32>} : memref<16x16x72xf32, #tpu.memory_space<vmem>>, vector<16x15x8xf32>,
    %c15_36 = arith.constant 15 : index
    %c0_37 = arith.constant 0 : index
    %c48 = arith.constant 48 : index
    %22 = vector.load %arg6[%c15_36, %c0_37, %c48] : memref<16x16x72xf32, #tpu.memory_space<vmem>>, vector<1x16x8xf32>
    tpu.vector_store %arg6[%c15_36, %c0_37, %c48], %2 {strides = array<i32>} : memref<16x16x72xf32, #tpu.memory_space<vmem>>, vector<1x16x8xf32>,
    %c0_38 = arith.constant 0 : index
    %c0_39 = arith.constant 0 : index
    %c48_40 = arith.constant 48 : index
    %23 = vector.load %arg6[%c0_38, %c0_39, %c48_40] : memref<16x16x72xf32, #tpu.memory_space<vmem>>, vector<16x1x8xf32>
    tpu.vector_store %arg6[%c0_38, %c0_39, %c48_40], %3 {strides = array<i32>} : memref<16x16x72xf32, #tpu.memory_space<vmem>>, vector<16x1x8xf32>,
    %24 = vector.extract_strided_slice %1 {offsets = [1, 0, 0], sizes = [15, 15, 8], strides = [1, 1, 1]} : vector<16x16x8xf32> to vector<15x15x8xf32>
    %c0_41 = arith.constant 0 : index
    %c1_42 = arith.constant 1 : index
    %c48_43 = arith.constant 48 : index
    %25 = vector.load %arg6[%c0_41, %c1_42, %c48_43] : memref<16x16x72xf32, #tpu.memory_space<vmem>>, vector<15x15x8xf32>
    tpu.vector_store %arg6[%c0_41, %c1_42, %c48_43], %24 {strides = array<i32>} : memref<16x16x72xf32, #tpu.memory_space<vmem>>, vector<15x15x8xf32>,
    %c15_44 = arith.constant 15 : index
    %c0_45 = arith.constant 0 : index
    %c56 = arith.constant 56 : index
    %26 = vector.load %arg6[%c15_44, %c0_45, %c56] : memref<16x16x72xf32, #tpu.memory_space<vmem>>, vector<1x16x8xf32>
    tpu.vector_store %arg6[%c15_44, %c0_45, %c56], %2 {strides = array<i32>} : memref<16x16x72xf32, #tpu.memory_space<vmem>>, vector<1x16x8xf32>,
    %27 = vector.extract_strided_slice %1 {offsets = [1, 0, 0], sizes = [15, 16, 8], strides = [1, 1, 1]} : vector<16x16x8xf32> to vector<15x16x8xf32>
    %c0_46 = arith.constant 0 : index
    %c0_47 = arith.constant 0 : index
    %c56_48 = arith.constant 56 : index
    %28 = vector.load %arg6[%c0_46, %c0_47, %c56_48] : memref<16x16x72xf32, #tpu.memory_space<vmem>>, vector<15x16x8xf32>
    tpu.vector_store %arg6[%c0_46, %c0_47, %c56_48], %27 {strides = array<i32>} : memref<16x16x72xf32, #tpu.memory_space<vmem>>, vector<15x16x8xf32>,
    %c15_49 = arith.constant 15 : index
    %c0_50 = arith.constant 0 : index
    %c64 = arith.constant 64 : index
    %29 = vector.load %arg6[%c15_49, %c0_50, %c64] : memref<16x16x72xf32, #tpu.memory_space<vmem>>, vector<1x16x8xf32>
    tpu.vector_store %arg6[%c15_49, %c0_50, %c64], %2 {strides = array<i32>} : memref<16x16x72xf32, #tpu.memory_space<vmem>>, vector<1x16x8xf32>,
    %c0_51 = arith.constant 0 : index
    %c15_52 = arith.constant 15 : index
    %c64_53 = arith.constant 64 : index
    %30 = vector.load %arg6[%c0_51, %c15_52, %c64_53] : memref<16x16x72xf32, #tpu.memory_space<vmem>>, vector<16x1x8xf32>
    tpu.vector_store %arg6[%c0_51, %c15_52, %c64_53], %3 {strides = array<i32>} : memref<16x16x72xf32, #tpu.memory_space<vmem>>, vector<16x1x8xf32>,
    %31 = vector.extract_strided_slice %1 {offsets = [1, 1, 0], sizes = [15, 15, 8], strides = [1, 1, 1]} : vector<16x16x8xf32> to vector<15x15x8xf32>
    %c0_54 = arith.constant 0 : index
    %c0_55 = arith.constant 0 : index
    %c64_56 = arith.constant 64 : index
    %32 = vector.load %arg6[%c0_54, %c0_55, %c64_56] : memref<16x16x72xf32, #tpu.memory_space<vmem>>, vector<15x15x8xf32>
    tpu.vector_store %arg6[%c0_54, %c0_55, %c64_56], %31 {strides = array<i32>} : memref<16x16x72xf32, #tpu.memory_space<vmem>>, vector<15x15x8xf32>,
    %c0_57 = arith.constant 0 : index
    %c0_58 = arith.constant 0 : index
    %c0_59 = arith.constant 0 : index
    %33 = vector.load %arg6[%c0_57, %c0_58, %c0_59] : memref<16x16x72xf32, #tpu.memory_space<vmem>>, vector<16x16x72xf32>
    %34 = vector.shape_cast %33 : vector<16x16x72xf32> to vector<256x72xf32>
    %35 = arith.truncf %34 : vector<256x72xf32> to vector<256x72xbf16>
    %c0_60 = arith.constant 0 : index
    %c0_61 = arith.constant 0 : index
    %36 = vector.load %arg2[%c0_60, %c0_61] : memref<72x128xbf16, #tpu.memory_space<vmem>>, vector<72x128xbf16>
    %cst_62 = arith.constant dense<0.000000e+00> : vector<256x128xf32>
    %37 = tpu.matmul %35, %36, %cst_62 {dimension_numbers = #tpu.dot_dimension_numbers<[1], [0], [0], [1], [0, 0, 1, 1], [], []>} : vector<256x72xbf16>, vector<72x128xbf16>, vector<256x128xf32> -> vector<256x128xf32>
    %c0_63 = arith.constant 0 : index
    %c0_64 = arith.constant 0 : index
    %38 = vector.load %arg3[%c0_63, %c0_64] : memref<1x128xf32, #tpu.memory_space<vmem>>, vector<1x128xf32>
    %39 = vector.broadcast %38 : vector<1x128xf32> to vector<256x128xf32>
    %40 = arith.addf %37, %39 : vector<256x128xf32>
    %cst_65 = arith.constant dense<0.000000e+00> : vector<128xf32>
    %41 = vector.multi_reduction <add>, %40, %cst_65 [0] : vector<256x128xf32> to vector<128xf32>
    %42 = vector.shape_cast %41 : vector<128xf32> to vector<1x128xf32>
    %43 = vector.shape_cast %42 : vector<1x128xf32> to vector<1x1x128xf32>
    %c0_66 = arith.constant 0 : index
    %c0_67 = arith.constant 0 : index
    %c0_68 = arith.constant 0 : index
    %44 = vector.load %arg5[%c0_66, %c0_67, %c0_68] : memref<1x2x128xf32, #tpu.memory_space<vmem>>, vector<1x1x128xf32>
    tpu.vector_store %arg5[%c0_66, %c0_67, %c0_68], %43 {strides = array<i32>} : memref<1x2x128xf32, #tpu.memory_space<vmem>>, vector<1x1x128xf32>,
    %45 = arith.mulf %40, %40 : vector<256x128xf32>
    %cst_69 = arith.constant dense<0.000000e+00> : vector<128xf32>
    %46 = vector.multi_reduction <add>, %45, %cst_69 [0] : vector<256x128xf32> to vector<128xf32>
    %47 = vector.shape_cast %46 : vector<128xf32> to vector<1x128xf32>
    %48 = vector.shape_cast %47 : vector<1x128xf32> to vector<1x1x128xf32>
    %c0_70 = arith.constant 0 : index
    %c1_71 = arith.constant 1 : index
    %c0_72 = arith.constant 0 : index
    %49 = vector.load %arg5[%c0_70, %c1_71, %c0_72] : memref<1x2x128xf32, #tpu.memory_space<vmem>>, vector<1x1x128xf32>
    tpu.vector_store %arg5[%c0_70, %c1_71, %c0_72], %48 {strides = array<i32>} : memref<1x2x128xf32, #tpu.memory_space<vmem>>, vector<1x1x128xf32>,
    %50 = vector.shape_cast %40 : vector<256x128xf32> to vector<1x16x16x128xf32>
    %c0_73 = arith.constant 0 : index
    %c0_74 = arith.constant 0 : index
    %c0_75 = arith.constant 0 : index
    %c0_76 = arith.constant 0 : index
    %51 = vector.load %arg4[%c0_73, %c0_74, %c0_75, %c0_76] : memref<1x16x16x128xf32, #tpu.memory_space<vmem>>, vector<1x16x16x128xf32>
    tpu.vector_store %arg4[%c0_73, %c0_74, %c0_75, %c0_76], %50 {strides = array<i32>} : memref<1x16x16x128xf32, #tpu.memory_space<vmem>>, vector<1x16x16x128xf32>,
    return
  }
  func.func @transform_0(%arg0: i32) -> (i32, i32, i32, i32) {
    %c0_i32 = arith.constant 0 : i32
    %c0_i32_0 = arith.constant 0 : i32
    %c0_i32_1 = arith.constant 0 : i32
    %c0_i32_2 = arith.constant 0 : i32
    return %arg0, %c0_i32, %c0_i32_0, %c0_i32_1 : i32, i32, i32, i32
  }
  func.func @transform_1(%arg0: i32) -> (i32, i32) {
    %c0_i32 = arith.constant 0 : i32
    %c0_i32_0 = arith.constant 0 : i32
    %c0_i32_1 = arith.constant 0 : i32
    return %c0_i32, %c0_i32_0 : i32, i32
  }
  func.func @transform_2(%arg0: i32) -> (i32, i32) {
    %c0_i32 = arith.constant 0 : i32
    %c0_i32_0 = arith.constant 0 : i32
    %c0_i32_1 = arith.constant 0 : i32
    return %c0_i32, %c0_i32_0 : i32, i32
  }
  func.func @transform_3(%arg0: i32) -> (i32, i32, i32, i32) {
    %c0_i32 = arith.constant 0 : i32
    %c0_i32_0 = arith.constant 0 : i32
    %c0_i32_1 = arith.constant 0 : i32
    %c0_i32_2 = arith.constant 0 : i32
    return %arg0, %c0_i32, %c0_i32_0, %c0_i32_1 : i32, i32, i32, i32
  }
  func.func @transform_4(%arg0: i32) -> (i32, i32, i32) {
    %c0_i32 = arith.constant 0 : i32
    %c0_i32_0 = arith.constant 0 : i32
    %c0_i32_1 = arith.constant 0 : i32
    return %arg0, %c0_i32, %c0_i32_0 : i32, i32, i32
  }
}

module attributes {stable_mosaic.version = 11 : i64} {
  func.func @_bn_relu_conv2_kernel(%arg0: i32, %arg1: memref<1x16x16x128xf32, #tpu.memory_space<vmem>>, %arg2: memref<1x128xf32, #tpu.memory_space<vmem>>, %arg3: memref<1x128xf32, #tpu.memory_space<vmem>>, %arg4: memref<1152x128xbf16, #tpu.memory_space<vmem>>, %arg5: memref<1x128xf32, #tpu.memory_space<vmem>>, %arg6: memref<1x16x16x128xf32, #tpu.memory_space<vmem>>, %arg7: memref<1x2x128xf32, #tpu.memory_space<vmem>>, %arg8: memref<16x16x1152xf32, #tpu.memory_space<vmem>>) attributes {dimension_semantics = [#tpu.dimension_semantics<parallel>], iteration_bounds = array<i64: 2>, scalar_prefetch = 0 : i64, scratch_operands = 1 : i64, tpu.core_type = #tpu.core_type<tc>, window_params = [{transform_indices = @transform_0, window_bounds = array<i64: 1, 16, 16, 128>}, {pipeline_mode = #tpu.pipeline_mode<synchronous>, transform_indices = @transform_1, window_bounds = array<i64: 1, 128>}, {pipeline_mode = #tpu.pipeline_mode<synchronous>, transform_indices = @transform_2, window_bounds = array<i64: 1, 128>}, {pipeline_mode = #tpu.pipeline_mode<synchronous>, transform_indices = @transform_3, window_bounds = array<i64: 1152, 128>}, {pipeline_mode = #tpu.pipeline_mode<synchronous>, transform_indices = @transform_4, window_bounds = array<i64: 1, 128>}, {transform_indices = @transform_5, window_bounds = array<i64: 1, 16, 16, 128>}, {transform_indices = @transform_6, window_bounds = array<i64: 1, 2, 128>}]} {
    %c0 = arith.constant 0 : index
    %c0_0 = arith.constant 0 : index
    %c0_1 = arith.constant 0 : index
    %c0_2 = arith.constant 0 : index
    %0 = vector.load %arg1[%c0, %c0_0, %c0_1, %c0_2] : memref<1x16x16x128xf32, #tpu.memory_space<vmem>>, vector<1x16x16x128xf32>
    %1 = vector.shape_cast %0 : vector<1x16x16x128xf32> to vector<16x16x128xf32>
    %c0_3 = arith.constant 0 : index
    %c0_4 = arith.constant 0 : index
    %2 = vector.load %arg2[%c0_3, %c0_4] : memref<1x128xf32, #tpu.memory_space<vmem>>, vector<1x128xf32>
    %3 = vector.shape_cast %2 : vector<1x128xf32> to vector<1x1x128xf32>
    %4 = vector.broadcast %3 : vector<1x1x128xf32> to vector<16x16x128xf32>
    %5 = arith.mulf %1, %4 : vector<16x16x128xf32>
    %c0_5 = arith.constant 0 : index
    %c0_6 = arith.constant 0 : index
    %6 = vector.load %arg3[%c0_5, %c0_6] : memref<1x128xf32, #tpu.memory_space<vmem>>, vector<1x128xf32>
    %7 = vector.shape_cast %6 : vector<1x128xf32> to vector<1x1x128xf32>
    %8 = vector.broadcast %7 : vector<1x1x128xf32> to vector<16x16x128xf32>
    %9 = arith.addf %5, %8 : vector<16x16x128xf32>
    %cst = arith.constant 0.000000e+00 : f32
    %10 = vector.broadcast %cst : f32 to vector<16x16x128xf32>
    %11 = arith.maximumf %9, %10 : vector<16x16x128xf32>
    %cst_7 = arith.constant 0.000000e+00 : f32
    %12 = vector.broadcast %cst_7 : f32 to vector<1x16x128xf32>
    %cst_8 = arith.constant 0.000000e+00 : f32
    %13 = vector.broadcast %cst_8 : f32 to vector<16x1x128xf32>
    %c0_9 = arith.constant 0 : index
    %c0_10 = arith.constant 0 : index
    %c0_11 = arith.constant 0 : index
    %14 = vector.load %arg8[%c0_9, %c0_10, %c0_11] : memref<16x16x1152xf32, #tpu.memory_space<vmem>>, vector<1x16x128xf32>
    tpu.vector_store %arg8[%c0_9, %c0_10, %c0_11], %12 {strides = array<i32>} : memref<16x16x1152xf32, #tpu.memory_space<vmem>>, vector<1x16x128xf32>,
    %c0_12 = arith.constant 0 : index
    %c0_13 = arith.constant 0 : index
    %c0_14 = arith.constant 0 : index
    %15 = vector.load %arg8[%c0_12, %c0_13, %c0_14] : memref<16x16x1152xf32, #tpu.memory_space<vmem>>, vector<16x1x128xf32>
    tpu.vector_store %arg8[%c0_12, %c0_13, %c0_14], %13 {strides = array<i32>} : memref<16x16x1152xf32, #tpu.memory_space<vmem>>, vector<16x1x128xf32>,
    %16 = vector.extract_strided_slice %11 {offsets = [0, 0, 0], sizes = [15, 15, 128], strides = [1, 1, 1]} : vector<16x16x128xf32> to vector<15x15x128xf32>
    %c1 = arith.constant 1 : index
    %c1_15 = arith.constant 1 : index
    %c0_16 = arith.constant 0 : index
    %17 = vector.load %arg8[%c1, %c1_15, %c0_16] : memref<16x16x1152xf32, #tpu.memory_space<vmem>>, vector<15x15x128xf32>
    tpu.vector_store %arg8[%c1, %c1_15, %c0_16], %16 {strides = array<i32>} : memref<16x16x1152xf32, #tpu.memory_space<vmem>>, vector<15x15x128xf32>,
    %c0_17 = arith.constant 0 : index
    %c0_18 = arith.constant 0 : index
    %c128 = arith.constant 128 : index
    %18 = vector.load %arg8[%c0_17, %c0_18, %c128] : memref<16x16x1152xf32, #tpu.memory_space<vmem>>, vector<1x16x128xf32>
    tpu.vector_store %arg8[%c0_17, %c0_18, %c128], %12 {strides = array<i32>} : memref<16x16x1152xf32, #tpu.memory_space<vmem>>, vector<1x16x128xf32>,
    %19 = vector.extract_strided_slice %11 {offsets = [0, 0, 0], sizes = [15, 16, 128], strides = [1, 1, 1]} : vector<16x16x128xf32> to vector<15x16x128xf32>
    %c1_19 = arith.constant 1 : index
    %c0_20 = arith.constant 0 : index
    %c128_21 = arith.constant 128 : index
    %20 = vector.load %arg8[%c1_19, %c0_20, %c128_21] : memref<16x16x1152xf32, #tpu.memory_space<vmem>>, vector<15x16x128xf32>
    tpu.vector_store %arg8[%c1_19, %c0_20, %c128_21], %19 {strides = array<i32>} : memref<16x16x1152xf32, #tpu.memory_space<vmem>>, vector<15x16x128xf32>,
    %c0_22 = arith.constant 0 : index
    %c0_23 = arith.constant 0 : index
    %c256 = arith.constant 256 : index
    %21 = vector.load %arg8[%c0_22, %c0_23, %c256] : memref<16x16x1152xf32, #tpu.memory_space<vmem>>, vector<1x16x128xf32>
    tpu.vector_store %arg8[%c0_22, %c0_23, %c256], %12 {strides = array<i32>} : memref<16x16x1152xf32, #tpu.memory_space<vmem>>, vector<1x16x128xf32>,
    %c0_24 = arith.constant 0 : index
    %c15 = arith.constant 15 : index
    %c256_25 = arith.constant 256 : index
    %22 = vector.load %arg8[%c0_24, %c15, %c256_25] : memref<16x16x1152xf32, #tpu.memory_space<vmem>>, vector<16x1x128xf32>
    tpu.vector_store %arg8[%c0_24, %c15, %c256_25], %13 {strides = array<i32>} : memref<16x16x1152xf32, #tpu.memory_space<vmem>>, vector<16x1x128xf32>,
    %23 = vector.extract_strided_slice %11 {offsets = [0, 1, 0], sizes = [15, 15, 128], strides = [1, 1, 1]} : vector<16x16x128xf32> to vector<15x15x128xf32>
    %c1_26 = arith.constant 1 : index
    %c0_27 = arith.constant 0 : index
    %c256_28 = arith.constant 256 : index
    %24 = vector.load %arg8[%c1_26, %c0_27, %c256_28] : memref<16x16x1152xf32, #tpu.memory_space<vmem>>, vector<15x15x128xf32>
    tpu.vector_store %arg8[%c1_26, %c0_27, %c256_28], %23 {strides = array<i32>} : memref<16x16x1152xf32, #tpu.memory_space<vmem>>, vector<15x15x128xf32>,
    %c0_29 = arith.constant 0 : index
    %c0_30 = arith.constant 0 : index
    %c384 = arith.constant 384 : index
    %25 = vector.load %arg8[%c0_29, %c0_30, %c384] : memref<16x16x1152xf32, #tpu.memory_space<vmem>>, vector<16x1x128xf32>
    tpu.vector_store %arg8[%c0_29, %c0_30, %c384], %13 {strides = array<i32>} : memref<16x16x1152xf32, #tpu.memory_space<vmem>>, vector<16x1x128xf32>,
    %26 = vector.extract_strided_slice %11 {offsets = [0, 0, 0], sizes = [16, 15, 128], strides = [1, 1, 1]} : vector<16x16x128xf32> to vector<16x15x128xf32>
    %c0_31 = arith.constant 0 : index
    %c1_32 = arith.constant 1 : index
    %c384_33 = arith.constant 384 : index
    %27 = vector.load %arg8[%c0_31, %c1_32, %c384_33] : memref<16x16x1152xf32, #tpu.memory_space<vmem>>, vector<16x15x128xf32>
    tpu.vector_store %arg8[%c0_31, %c1_32, %c384_33], %26 {strides = array<i32>} : memref<16x16x1152xf32, #tpu.memory_space<vmem>>, vector<16x15x128xf32>,
    %c0_34 = arith.constant 0 : index
    %c0_35 = arith.constant 0 : index
    %c512 = arith.constant 512 : index
    %28 = vector.load %arg8[%c0_34, %c0_35, %c512] : memref<16x16x1152xf32, #tpu.memory_space<vmem>>, vector<16x16x128xf32>
    tpu.vector_store %arg8[%c0_34, %c0_35, %c512], %11 {strides = array<i32>} : memref<16x16x1152xf32, #tpu.memory_space<vmem>>, vector<16x16x128xf32>,
    %c0_36 = arith.constant 0 : index
    %c15_37 = arith.constant 15 : index
    %c640 = arith.constant 640 : index
    %29 = vector.load %arg8[%c0_36, %c15_37, %c640] : memref<16x16x1152xf32, #tpu.memory_space<vmem>>, vector<16x1x128xf32>
    tpu.vector_store %arg8[%c0_36, %c15_37, %c640], %13 {strides = array<i32>} : memref<16x16x1152xf32, #tpu.memory_space<vmem>>, vector<16x1x128xf32>,
    %30 = vector.extract_strided_slice %11 {offsets = [0, 1, 0], sizes = [16, 15, 128], strides = [1, 1, 1]} : vector<16x16x128xf32> to vector<16x15x128xf32>
    %c0_38 = arith.constant 0 : index
    %c0_39 = arith.constant 0 : index
    %c640_40 = arith.constant 640 : index
    %31 = vector.load %arg8[%c0_38, %c0_39, %c640_40] : memref<16x16x1152xf32, #tpu.memory_space<vmem>>, vector<16x15x128xf32>
    tpu.vector_store %arg8[%c0_38, %c0_39, %c640_40], %30 {strides = array<i32>} : memref<16x16x1152xf32, #tpu.memory_space<vmem>>, vector<16x15x128xf32>,
    %c15_41 = arith.constant 15 : index
    %c0_42 = arith.constant 0 : index
    %c768 = arith.constant 768 : index
    %32 = vector.load %arg8[%c15_41, %c0_42, %c768] : memref<16x16x1152xf32, #tpu.memory_space<vmem>>, vector<1x16x128xf32>
    tpu.vector_store %arg8[%c15_41, %c0_42, %c768], %12 {strides = array<i32>} : memref<16x16x1152xf32, #tpu.memory_space<vmem>>, vector<1x16x128xf32>,
    %c0_43 = arith.constant 0 : index
    %c0_44 = arith.constant 0 : index
    %c768_45 = arith.constant 768 : index
    %33 = vector.load %arg8[%c0_43, %c0_44, %c768_45] : memref<16x16x1152xf32, #tpu.memory_space<vmem>>, vector<16x1x128xf32>
    tpu.vector_store %arg8[%c0_43, %c0_44, %c768_45], %13 {strides = array<i32>} : memref<16x16x1152xf32, #tpu.memory_space<vmem>>, vector<16x1x128xf32>,
    %34 = vector.extract_strided_slice %11 {offsets = [1, 0, 0], sizes = [15, 15, 128], strides = [1, 1, 1]} : vector<16x16x128xf32> to vector<15x15x128xf32>
    %c0_46 = arith.constant 0 : index
    %c1_47 = arith.constant 1 : index
    %c768_48 = arith.constant 768 : index
    %35 = vector.load %arg8[%c0_46, %c1_47, %c768_48] : memref<16x16x1152xf32, #tpu.memory_space<vmem>>, vector<15x15x128xf32>
    tpu.vector_store %arg8[%c0_46, %c1_47, %c768_48], %34 {strides = array<i32>} : memref<16x16x1152xf32, #tpu.memory_space<vmem>>, vector<15x15x128xf32>,
    %c15_49 = arith.constant 15 : index
    %c0_50 = arith.constant 0 : index
    %c896 = arith.constant 896 : index
    %36 = vector.load %arg8[%c15_49, %c0_50, %c896] : memref<16x16x1152xf32, #tpu.memory_space<vmem>>, vector<1x16x128xf32>
    tpu.vector_store %arg8[%c15_49, %c0_50, %c896], %12 {strides = array<i32>} : memref<16x16x1152xf32, #tpu.memory_space<vmem>>, vector<1x16x128xf32>,
    %37 = vector.extract_strided_slice %11 {offsets = [1, 0, 0], sizes = [15, 16, 128], strides = [1, 1, 1]} : vector<16x16x128xf32> to vector<15x16x128xf32>
    %c0_51 = arith.constant 0 : index
    %c0_52 = arith.constant 0 : index
    %c896_53 = arith.constant 896 : index
    %38 = vector.load %arg8[%c0_51, %c0_52, %c896_53] : memref<16x16x1152xf32, #tpu.memory_space<vmem>>, vector<15x16x128xf32>
    tpu.vector_store %arg8[%c0_51, %c0_52, %c896_53], %37 {strides = array<i32>} : memref<16x16x1152xf32, #tpu.memory_space<vmem>>, vector<15x16x128xf32>,
    %c15_54 = arith.constant 15 : index
    %c0_55 = arith.constant 0 : index
    %c1024 = arith.constant 1024 : index
    %39 = vector.load %arg8[%c15_54, %c0_55, %c1024] : memref<16x16x1152xf32, #tpu.memory_space<vmem>>, vector<1x16x128xf32>
    tpu.vector_store %arg8[%c15_54, %c0_55, %c1024], %12 {strides = array<i32>} : memref<16x16x1152xf32, #tpu.memory_space<vmem>>, vector<1x16x128xf32>,
    %c0_56 = arith.constant 0 : index
    %c15_57 = arith.constant 15 : index
    %c1024_58 = arith.constant 1024 : index
    %40 = vector.load %arg8[%c0_56, %c15_57, %c1024_58] : memref<16x16x1152xf32, #tpu.memory_space<vmem>>, vector<16x1x128xf32>
    tpu.vector_store %arg8[%c0_56, %c15_57, %c1024_58], %13 {strides = array<i32>} : memref<16x16x1152xf32, #tpu.memory_space<vmem>>, vector<16x1x128xf32>,
    %41 = vector.extract_strided_slice %11 {offsets = [1, 1, 0], sizes = [15, 15, 128], strides = [1, 1, 1]} : vector<16x16x128xf32> to vector<15x15x128xf32>
    %c0_59 = arith.constant 0 : index
    %c0_60 = arith.constant 0 : index
    %c1024_61 = arith.constant 1024 : index
    %42 = vector.load %arg8[%c0_59, %c0_60, %c1024_61] : memref<16x16x1152xf32, #tpu.memory_space<vmem>>, vector<15x15x128xf32>
    tpu.vector_store %arg8[%c0_59, %c0_60, %c1024_61], %41 {strides = array<i32>} : memref<16x16x1152xf32, #tpu.memory_space<vmem>>, vector<15x15x128xf32>,
    %c0_62 = arith.constant 0 : index
    %c0_63 = arith.constant 0 : index
    %c0_64 = arith.constant 0 : index
    %43 = vector.load %arg8[%c0_62, %c0_63, %c0_64] : memref<16x16x1152xf32, #tpu.memory_space<vmem>>, vector<16x16x1152xf32>
    %44 = vector.shape_cast %43 : vector<16x16x1152xf32> to vector<256x1152xf32>
    %45 = arith.truncf %44 : vector<256x1152xf32> to vector<256x1152xbf16>
    %c0_65 = arith.constant 0 : index
    %c0_66 = arith.constant 0 : index
    %46 = vector.load %arg4[%c0_65, %c0_66] : memref<1152x128xbf16, #tpu.memory_space<vmem>>, vector<1152x128xbf16>
    %cst_67 = arith.constant dense<0.000000e+00> : vector<256x128xf32>
    %47 = tpu.matmul %45, %46, %cst_67 {dimension_numbers = #tpu.dot_dimension_numbers<[1], [0], [0], [1], [0, 0, 1, 1], [], []>} : vector<256x1152xbf16>, vector<1152x128xbf16>, vector<256x128xf32> -> vector<256x128xf32>
    %c0_68 = arith.constant 0 : index
    %c0_69 = arith.constant 0 : index
    %48 = vector.load %arg5[%c0_68, %c0_69] : memref<1x128xf32, #tpu.memory_space<vmem>>, vector<1x128xf32>
    %49 = vector.broadcast %48 : vector<1x128xf32> to vector<256x128xf32>
    %50 = arith.addf %47, %49 : vector<256x128xf32>
    %cst_70 = arith.constant dense<0.000000e+00> : vector<128xf32>
    %51 = vector.multi_reduction <add>, %50, %cst_70 [0] : vector<256x128xf32> to vector<128xf32>
    %52 = vector.shape_cast %51 : vector<128xf32> to vector<1x128xf32>
    %53 = vector.shape_cast %52 : vector<1x128xf32> to vector<1x1x128xf32>
    %c0_71 = arith.constant 0 : index
    %c0_72 = arith.constant 0 : index
    %c0_73 = arith.constant 0 : index
    %54 = vector.load %arg7[%c0_71, %c0_72, %c0_73] : memref<1x2x128xf32, #tpu.memory_space<vmem>>, vector<1x1x128xf32>
    tpu.vector_store %arg7[%c0_71, %c0_72, %c0_73], %53 {strides = array<i32>} : memref<1x2x128xf32, #tpu.memory_space<vmem>>, vector<1x1x128xf32>,
    %55 = arith.mulf %50, %50 : vector<256x128xf32>
    %cst_74 = arith.constant dense<0.000000e+00> : vector<128xf32>
    %56 = vector.multi_reduction <add>, %55, %cst_74 [0] : vector<256x128xf32> to vector<128xf32>
    %57 = vector.shape_cast %56 : vector<128xf32> to vector<1x128xf32>
    %58 = vector.shape_cast %57 : vector<1x128xf32> to vector<1x1x128xf32>
    %c0_75 = arith.constant 0 : index
    %c1_76 = arith.constant 1 : index
    %c0_77 = arith.constant 0 : index
    %59 = vector.load %arg7[%c0_75, %c1_76, %c0_77] : memref<1x2x128xf32, #tpu.memory_space<vmem>>, vector<1x1x128xf32>
    tpu.vector_store %arg7[%c0_75, %c1_76, %c0_77], %58 {strides = array<i32>} : memref<1x2x128xf32, #tpu.memory_space<vmem>>, vector<1x1x128xf32>,
    %60 = vector.shape_cast %50 : vector<256x128xf32> to vector<1x16x16x128xf32>
    %c0_78 = arith.constant 0 : index
    %c0_79 = arith.constant 0 : index
    %c0_80 = arith.constant 0 : index
    %c0_81 = arith.constant 0 : index
    %61 = vector.load %arg6[%c0_78, %c0_79, %c0_80, %c0_81] : memref<1x16x16x128xf32, #tpu.memory_space<vmem>>, vector<1x16x16x128xf32>
    tpu.vector_store %arg6[%c0_78, %c0_79, %c0_80, %c0_81], %60 {strides = array<i32>} : memref<1x16x16x128xf32, #tpu.memory_space<vmem>>, vector<1x16x16x128xf32>,
    return
  }
  func.func @transform_0(%arg0: i32) -> (i32, i32, i32, i32) {
    %c0_i32 = arith.constant 0 : i32
    %c0_i32_0 = arith.constant 0 : i32
    %c0_i32_1 = arith.constant 0 : i32
    %c0_i32_2 = arith.constant 0 : i32
    return %arg0, %c0_i32, %c0_i32_0, %c0_i32_1 : i32, i32, i32, i32
  }
  func.func @transform_1(%arg0: i32) -> (i32, i32) {
    %c0_i32 = arith.constant 0 : i32
    %c0_i32_0 = arith.constant 0 : i32
    %c0_i32_1 = arith.constant 0 : i32
    return %c0_i32, %c0_i32_0 : i32, i32
  }
  func.func @transform_2(%arg0: i32) -> (i32, i32) {
    %c0_i32 = arith.constant 0 : i32
    %c0_i32_0 = arith.constant 0 : i32
    %c0_i32_1 = arith.constant 0 : i32
    return %c0_i32, %c0_i32_0 : i32, i32
  }
  func.func @transform_3(%arg0: i32) -> (i32, i32) {
    %c0_i32 = arith.constant 0 : i32
    %c0_i32_0 = arith.constant 0 : i32
    %c0_i32_1 = arith.constant 0 : i32
    return %c0_i32, %c0_i32_0 : i32, i32
  }
  func.func @transform_4(%arg0: i32) -> (i32, i32) {
    %c0_i32 = arith.constant 0 : i32
    %c0_i32_0 = arith.constant 0 : i32
    %c0_i32_1 = arith.constant 0 : i32
    return %c0_i32, %c0_i32_0 : i32, i32
  }
  func.func @transform_5(%arg0: i32) -> (i32, i32, i32, i32) {
    %c0_i32 = arith.constant 0 : i32
    %c0_i32_0 = arith.constant 0 : i32
    %c0_i32_1 = arith.constant 0 : i32
    %c0_i32_2 = arith.constant 0 : i32
    return %arg0, %c0_i32, %c0_i32_0, %c0_i32_1 : i32, i32, i32, i32
  }
  func.func @transform_6(%arg0: i32) -> (i32, i32, i32) {
    %c0_i32 = arith.constant 0 : i32
    %c0_i32_0 = arith.constant 0 : i32
    %c0_i32_1 = arith.constant 0 : i32
    return %arg0, %c0_i32, %c0_i32_0 : i32, i32, i32
  }
}

</mosaic_0001>

<bundles_post_ra>
// kernel: double_conv_block.5
= control target key start
LH: loop header
LB: loop body
LE: loop exit
PB: predicated region body
PF: predicated region fallthrough
CT: control target
= control target key end

     0   :  { %s451_s12 = smov 0   ;;  %s610_s0 = inlined_call_operand.vmem [shape: f32[2,16,16,128], index: 0, kind: input, shape index: {}]   ;;  %s611_s1 = inlined_call_operand.vmem [shape: f32[1,128], index: 1, kind: input, shape index: {}]   ;;  %s612_s2 = inlined_call_operand.vmem [shape: f32[1,128], index: 2, kind: input, shape index: {}]   ;;  %s613_s3 = inlined_call_operand.vmem [shape: f32[2,16,16,128], index: 3, kind: output, shape index: {}]  }
   0x1 LB: > { %s400_s13 = sadd.s32 4294967295, %s429_s12   ;;  %p404_p0 = scmp.ge.s32.totalorder %s429_s12, 1  ;;  %s429_s12 = sphi %s451_s12, %s13_s12  }
   0x2   : > { %p137_p1 = scmp.lt.s32.totalorder %s429_s12, 3 }
   0x4   : > { %p138_p2 = pnand %p404_p0, %p137_p1 }
   0x5   : > { %p161_p3 = scmp.lt.s32.totalorder (!%p138_p2), %s400_s13, 1 }
   0x6   : > { %141 = sbr.rel (%p138_p2) target bundleno = 44 (0x2c), region = 32 }
   0xb   : > { %s615_s13 = smov (!%p161_p3, %s400_s13), 1  ;;  %v462_v0 = vld [vmem:[%s611_s1] ss:$0 sm:$0xff] }
   0xc   : > { %s413_s14 = sshll.u32 %s615_s13, 8  ;;  %v472_v1 = vld [vmem:[%s612_s2] ss:$0 sm:$0xff] }
   0xd   : > { %s467_s19 = scalar_lea.vmem %s610_s0, %s413_s14  ;;  %s495_s24 = scalar_lea.vmem %s613_s3, %s413_s14 }
   0xe   : > { %v171_v2 = vld [vmem:[%s467_s19] sm:$0xff]  ;;  %v172_v3 = vld [vmem:[%s467_s19 + $0x8] sm:$0xff]  ;;  %v173_v4 = vld [vmem:[%s467_s19 + $0x10] sm:$0xff] }
   0xf   : > { %v210_v5 = vmul.f32 %v462_v0, %v171_v2  ;;  %v211_v6 = vmul.f32 %v462_v0, %v172_v3  ;;  %v212_v7 = vmul.f32 %v462_v0, %v173_v4  ;;  %v174_v8 = vld [vmem:[%s467_s19 + $0x18] sm:$0xff]  ;;  %v175_v9 = vld [vmem:[%s467_s19 + $0x20] sm:$0xff]  ;;  %v176_v10 = vld [vmem:[%s467_s19 + $0x28] sm:$0xff] }
  0x10   : > { %v213_v11 = vmul.f32 %v462_v0, %v174_v8  ;;  %v214_v12 = vmul.f32 %v462_v0, %v175_v9  ;;  %v215_v13 = vmul.f32 %v462_v0, %v176_v10  ;;  %v177_v14 = vld [vmem:[%s467_s19 + $0x30] sm:$0xff]  ;;  %v178_v15 = vld [vmem:[%s467_s19 + $0x38] sm:$0xff]  ;;  %v179_v24 = vld [vmem:[%s467_s19 + $0x40] sm:$0xff] }
  0x11   : > { %v249_v16 = vadd.f32 %v472_v1, %v210_v5  ;;  %v250_v17 = vadd.f32 %v472_v1, %v211_v6  ;;  %v251_v18 = vadd.f32 %v472_v1, %v212_v7  ;;  %v216_v19 = vmul.f32 %v462_v0, %v177_v14  ;;  %v180_v25 = vld [vmem:[%s467_s19 + $0x48] sm:$0xff]  ;;  %v181_v26 = vld [vmem:[%s467_s19 + $0x50] sm:$0xff]  ;;  %v182_v31 = vld [vmem:[%s467_s19 + $0x58] sm:$0xff] }
  0x12   : > { %v252_v20 = vadd.f32 %v472_v1, %v213_v11  ;;  %v253_v21 = vadd.f32 %v472_v1, %v214_v12  ;;  %v254_v22 = vadd.f32 %v472_v1, %v215_v13  ;;  %v217_v23 = vmul.f32 %v462_v0, %v178_v15  ;;  %v183_v32 = vld [vmem:[%s467_s19 + $0x60] sm:$0xff]  ;;  %v184_v33 = vld [vmem:[%s467_s19 + $0x68] sm:$0xff]  ;;  %v185_v38 = vld [vmem:[%s467_s19 + $0x70] sm:$0xff] }
  0x13   : > { %v281_v27 = vmax.f32 %v249_v16, 0.0  ;;  %v282_v28 = vmax.f32 %v250_v17, 0.0  ;;  %v283_v29 = vmax.f32 %v251_v18, 0.0  ;;  %v255_v30 = vadd.f32 %v472_v1, %v216_v19  ;;  %v186_v43 = vld [vmem:[%s467_s19 + $0x78] sm:$0xff]  ;;  %v187_v56 = vld [vmem:[%s467_s19 + $0x80] sm:$0xff]  ;;  %v188_v57 = vld [vmem:[%s467_s19 + $0x88] sm:$0xff] }
  0x14   : > { %v284_v34 = vmax.f32 %v252_v20, 0.0  ;;  %v285_v35 = vmax.f32 %v253_v21, 0.0  ;;  %v286_v36 = vmax.f32 %v254_v22, 0.0  ;;  %v256_v37 = vadd.f32 %v472_v1, %v217_v23  ;;  %v189_v58 = vld [vmem:[%s467_s19 + $0x90] sm:$0xff]  ;;  %v190_v63 = vld [vmem:[%s467_s19 + $0x98] sm:$0xff]  ;;  %v191_v2 = vld [vmem:[%s467_s19 + $0xa0] sm:$0xff] }
  0x15   : > { %313 = vst [vmem:[%s495_s24] sm:$0xff] %v281_v27  ;;  %314 = vst [vmem:[%s495_s24 + $0x8] sm:$0xff] %v282_v28  ;;  %v287_v39 = vmax.f32 %v255_v30, 0.0  ;;  %v218_v40 = vmul.f32 %v462_v0, %v179_v24  ;;  %v219_v41 = vmul.f32 %v462_v0, %v180_v25  ;;  %v220_v42 = vmul.f32 %v462_v0, %v181_v26  ;;  %v192_v3 = vld [vmem:[%s467_s19 + $0xa8] sm:$0xff]  ;;  %v193_v8 = vld [vmem:[%s467_s19 + $0xb0] sm:$0xff] }
  0x16   : > { %315 = vst [vmem:[%s495_s24 + $0x10] sm:$0xff] %v283_v29  ;;  %316 = vst [vmem:[%s495_s24 + $0x18] sm:$0xff] %v284_v34  ;;  %v288_v44 = vmax.f32 %v256_v37, 0.0  ;;  %v221_v45 = vmul.f32 %v462_v0, %v182_v31  ;;  %v222_v46 = vmul.f32 %v462_v0, %v183_v32  ;;  %v223_v47 = vmul.f32 %v462_v0, %v184_v33  ;;  %v194_v13 = vld [vmem:[%s467_s19 + $0xb8] sm:$0xff]  ;;  %v195_v26 = vld [vmem:[%s467_s19 + $0xc0] sm:$0xff] }
  0x17   : > { %317 = vst [vmem:[%s495_s24 + $0x20] sm:$0xff] %v285_v35  ;;  %318 = vst [vmem:[%s495_s24 + $0x28] sm:$0xff] %v286_v36  ;;  %v257_v48 = vadd.f32 %v472_v1, %v218_v40  ;;  %v258_v49 = vadd.f32 %v472_v1, %v219_v41  ;;  %v259_v50 = vadd.f32 %v472_v1, %v220_v42  ;;  %v196_v27 = vld [vmem:[%s467_s19 + $0xc8] sm:$0xff]  ;;  %v197_v28 = vld [vmem:[%s467_s19 + $0xd0] sm:$0xff] }
  0x18   : > { %319 = vst [vmem:[%s495_s24 + $0x30] sm:$0xff] %v287_v39  ;;  %v224_v51 = vmul.f32 %v462_v0, %v185_v38  ;;  %320 = vst [vmem:[%s495_s24 + $0x38] sm:$0xff] %v288_v44  ;;  %v260_v52 = vadd.f32 %v472_v1, %v221_v45  ;;  %v261_v53 = vadd.f32 %v472_v1, %v222_v46  ;;  %v198_v33 = vld [vmem:[%s467_s19 + $0xd8] sm:$0xff]  ;;  %v199_v34 = vld [vmem:[%s467_s19 + $0xe0] sm:$0xff] }
  0x19   : > { %v262_v54 = vadd.f32 %v472_v1, %v223_v47  ;;  %v225_v55 = vmul.f32 %v462_v0, %v186_v43  ;;  %v289_v59 = vmax.f32 %v257_v48, 0.0  ;;  %v290_v60 = vmax.f32 %v258_v49, 0.0  ;;  %v200_v35 = vld [vmem:[%s467_s19 + $0xe8] sm:$0xff]  ;;  %v201_v40 = vld [vmem:[%s467_s19 + $0xf0] sm:$0xff]  ;;  %v202_v45 = vld [vmem:[%s467_s19 + $0xf8] sm:$0xff] }
  0x1a   : > { %v291_v61 = vmax.f32 %v259_v50, 0.0  ;;  %v263_v62 = vadd.f32 %v472_v1, %v224_v51  ;;  %v292_v4 = vmax.f32 %v260_v52, 0.0  ;;  %v293_v5 = vmax.f32 %v261_v53, 0.0 }
  0x1b   : > { %v294_v6 = vmax.f32 %v262_v54, 0.0  ;;  %v264_v7 = vadd.f32 %v472_v1, %v225_v55  ;;  %321 = vst [vmem:[%s495_s24 + $0x40] sm:$0xff] %v289_v59  ;;  %322 = vst [vmem:[%s495_s24 + $0x48] sm:$0xff] %v290_v60  ;;  %v226_v10 = vmul.f32 %v462_v0, %v187_v56  ;;  %v227_v11 = vmul.f32 %v462_v0, %v188_v57 }
  0x1c   : > { %323 = vst [vmem:[%s495_s24 + $0x50] sm:$0xff] %v291_v61  ;;  %v295_v9 = vmax.f32 %v263_v62, 0.0  ;;  %v228_v12 = vmul.f32 %v462_v0, %v189_v58  ;;  %324 = vst [vmem:[%s495_s24 + $0x58] sm:$0xff] %v292_v4  ;;  %v229_v15 = vmul.f32 %v462_v0, %v190_v63  ;;  %v230_v16 = vmul.f32 %v462_v0, %v191_v2 }
  0x1d   : > { %325 = vst [vmem:[%s495_s24 + $0x60] sm:$0xff] %v293_v5  ;;  %326 = vst [vmem:[%s495_s24 + $0x68] sm:$0xff] %v294_v6  ;;  %v296_v14 = vmax.f32 %v264_v7, 0.0  ;;  %v231_v17 = vmul.f32 %v462_v0, %v192_v3  ;;  %v265_v18 = vadd.f32 %v472_v1, %v226_v10  ;;  %v266_v19 = vadd.f32 %v472_v1, %v227_v11 }
  0x1e   : > { %327 = vst [vmem:[%s495_s24 + $0x70] sm:$0xff] %v295_v9  ;;  %v267_v20 = vadd.f32 %v472_v1, %v228_v12  ;;  %v232_v21 = vmul.f32 %v462_v0, %v193_v8  ;;  %v268_v22 = vadd.f32 %v472_v1, %v229_v15  ;;  %v269_v23 = vadd.f32 %v472_v1, %v230_v16 }
  0x1f   : > { %328 = vst [vmem:[%s495_s24 + $0x78] sm:$0xff] %v296_v14  ;;  %v270_v24 = vadd.f32 %v472_v1, %v231_v17  ;;  %v233_v25 = vmul.f32 %v462_v0, %v194_v13  ;;  %v297_v29 = vmax.f32 %v265_v18, 0.0  ;;  %v298_v30 = vmax.f32 %v266_v19, 0.0 }
  0x20   : > { %v299_v31 = vmax.f32 %v267_v20, 0.0  ;;  %v271_v32 = vadd.f32 %v472_v1, %v232_v21  ;;  %v300_v36 = vmax.f32 %v268_v22, 0.0  ;;  %v301_v37 = vmax.f32 %v269_v23, 0.0 }
  0x21   : > { %v302_v38 = vmax.f32 %v270_v24, 0.0  ;;  %v272_v39 = vadd.f32 %v472_v1, %v233_v25  ;;  %329 = vst [vmem:[%s495_s24 + $0x80] sm:$0xff] %v297_v29  ;;  %330 = vst [vmem:[%s495_s24 + $0x88] sm:$0xff] %v298_v30  ;;  %v234_v42 = vmul.f32 %v462_v0, %v195_v26  ;;  %v235_v43 = vmul.f32 %v462_v0, %v196_v27 }
  0x22   : > { %331 = vst [vmem:[%s495_s24 + $0x90] sm:$0xff] %v299_v31  ;;  %v303_v41 = vmax.f32 %v271_v32, 0.0  ;;  %v236_v44 = vmul.f32 %v462_v0, %v197_v28  ;;  %332 = vst [vmem:[%s495_s24 + $0x98] sm:$0xff] %v300_v36  ;;  %v237_v47 = vmul.f32 %v462_v0, %v198_v33  ;;  %v238_v48 = vmul.f32 %v462_v0, %v199_v34 }
  0x23   : > { %333 = vst [vmem:[%s495_s24 + $0xa0] sm:$0xff] %v301_v37  ;;  %334 = vst [vmem:[%s495_s24 + $0xa8] sm:$0xff] %v302_v38  ;;  %v304_v46 = vmax.f32 %v272_v39, 0.0  ;;  %v239_v49 = vmul.f32 %v462_v0, %v200_v35  ;;  %v273_v50 = vadd.f32 %v472_v1, %v234_v42  ;;  %v274_v51 = vadd.f32 %v472_v1, %v235_v43 }
  0x24   : > { %335 = vst [vmem:[%s495_s24 + $0xb0] sm:$0xff] %v303_v41  ;;  %v275_v52 = vadd.f32 %v472_v1, %v236_v44  ;;  %v240_v53 = vmul.f32 %v462_v0, %v201_v40  ;;  %v276_v54 = vadd.f32 %v472_v1, %v237_v47  ;;  %v277_v55 = vadd.f32 %v472_v1, %v238_v48 }
  0x25   : > { %336 = vst [vmem:[%s495_s24 + $0xb8] sm:$0xff] %v304_v46  ;;  %v278_v56 = vadd.f32 %v472_v1, %v239_v49  ;;  %v241_v57 = vmul.f32 %v462_v0, %v202_v45  ;;  %v305_v58 = vmax.f32 %v273_v50, 0.0  ;;  %v306_v59 = vmax.f32 %v274_v51, 0.0 }
  0x26   : > { %v307_v60 = vmax.f32 %v275_v52, 0.0  ;;  %v279_v61 = vadd.f32 %v472_v1, %v240_v53  ;;  %v308_v62 = vmax.f32 %v276_v54, 0.0  ;;  %v309_v63 = vmax.f32 %v277_v55, 0.0 }
  0x27   : > { %v310_v2 = vmax.f32 %v278_v56, 0.0  ;;  %v280_v3 = vadd.f32 %v472_v1, %v241_v57  ;;  %337 = vst [vmem:[%s495_s24 + $0xc0] sm:$0xff] %v305_v58  ;;  %338 = vst [vmem:[%s495_s24 + $0xc8] sm:$0xff] %v306_v59 }
  0x28   : > { %339 = vst [vmem:[%s495_s24 + $0xd0] sm:$0xff] %v307_v60  ;;  %v311_v4 = vmax.f32 %v279_v61, 0.0  ;;  %340 = vst [vmem:[%s495_s24 + $0xd8] sm:$0xff] %v308_v62 }
  0x29   : > { %341 = vst [vmem:[%s495_s24 + $0xe0] sm:$0xff] %v309_v63  ;;  %342 = vst [vmem:[%s495_s24 + $0xe8] sm:$0xff] %v310_v2  ;;  %v312_v0 = vmax.f32 %v280_v3, 0.0 }
  0x2a   : > { %343 = vst [vmem:[%s495_s24 + $0xf0] sm:$0xff] %v311_v4 }
  0x2b   : > { %344 = vst [vmem:[%s495_s24 + $0xf8] sm:$0xff] %v312_v0 }
  0x2c PF: > { %s13_s12 = sadd.s32 1, %s429_s12  }
  0x2d   : > { %p10_p4 = scmp.ge.s32.totalorder %s13_s12, 4  }
  0x2f   :  { %12 = sbr.rel (!%p10_p4) target bundleno = 1 (0x1), region = 62 }

// kernel: double_conv_block.3
= control target key start
LH: loop header
LB: loop body
LE: loop exit
PB: predicated region body
PF: predicated region fallthrough
CT: control target
= control target key end

     0   :  { %s2125_s15 = smov 0   ;;  %s3357_s0 = inlined_call_operand.vmem [shape: f32[2,16,16,8], index: 0, kind: input, shape index: {}]   ;;  %s3358_s1 = inlined_call_operand.vmem [shape: bf16[72,128], index: 1, kind: input, shape index: {}]   ;;  %s3359_s2 = inlined_call_operand.vmem [shape: f32[1,128], index: 2, kind: input, shape index: {}]   ;;  %s3360_s3 = inlined_call_operand.vmem [shape: f32[2,16,16,128], index: 3, kind: output, shape index: {0}]   ;;  %s3361_s4 = inlined_call_operand.vmem [shape: f32[2,2,128], index: 4, kind: output, shape index: {1}]  }
   0x1 LB: > { %s1950_s16 = sadd.s32 4294967295, %s2089_s15   ;;  %p1954_p0 = scmp.ge.s32.totalorder %s2089_s15, 1  ;;  %s2089_s15 = sphi %s2125_s15, %s15_s15  }
   0x2   : > { %p165_p1 = scmp.lt.s32.totalorder %s2089_s15, 3 }
   0x4   : > { %p166_p2 = pnand %p1954_p0, %p165_p1 }
   0x5   : > { %p2133_p3 = scmp.lt.s32.totalorder (!%p166_p2), %s1950_s16, 1  ;;  %s2092_s22 = smov (!%p166_p2), 8  }
   0x6   : > { %169 = sbr.rel (%p166_p2) target bundleno = 853 (0x355), region = 32  ;;  %s2093_s23 = smov (!%p166_p2), 16  }
   0x7   : > { %s2094_s24 = smov (!%p166_p2), 24   ;;  %s2095_s25 = smov (!%p166_p2), 32  }
   0x8   : > { %s2096_s26 = smov (!%p166_p2), 40   ;;  %s2097_s29 = smov (!%p166_p2), 48  }
   0x9   : > { %s2098_s8 = smov (!%p166_p2), 56   ;;  %s2099_s13 = smov (!%p166_p2), 64  }
   0xb   : > { %vm242_vm0 = vcmask 64512   ;;  %vm245_vm1 = vcmask 57344   ;;  %v2091_v0 = vmov 0.0   ;;  %vm294_vm2 = vcmask 130112   ;;  %s3364_s16 = smov (!%p2133_p3, %s1950_s16), 1  ;;  %v2079_v57 = vld [vmem:[%s3358_s1 + $0x18] sm:$0xff]  }
   0xc   : > { %248 = vst.msk [vmem:[#allocation2 + $0x20] sm:$0x1] %vm245_vm1, %v2091_v0  ;;  %247 = vst.msk [vmem:[#allocation2 + $0x10] sm:$0x1] %vm245_vm1, %v2091_v0  ;;  %s1984_s18 = sshll.u32 %s3364_s16, 8  ;;  %vm264_vm3 = vcmask 63488  }
   0xd   : > { %243 = vst.msk [vmem:[#allocation2] sm:$0xff] %vm242_vm0, %v2091_v0  ;;  %244 = vst.msk [vmem:[#allocation2 + $0x8] sm:$0xff] %vm242_vm0, %v2091_v0  ;;  %s2187_s21 = scalar_lea.vmem %s3357_s0, %s1984_s18  ;;  %vm450_vm4 = vcmask 188544   ;;  %vm447_vm5 = vcmask 195712   ;;  %vm588_vm6 = vcmask 254144   ;;  %vm1559_vm7 = vcmask 1043456  }
   0xe   : > { %249 = vst.msk [vmem:[#allocation2 + $0x30] sm:$0x1] %vm245_vm1, %v2091_v0  ;;  %250 = vst.msk [vmem:[#allocation2 + $0x40] sm:$0x1] %vm245_vm1, %v2091_v0  ;;  %v2190_v1 = vld [vmem:[%s2187_s21 + $0x10] sm:$0xff]  ;;  %v2193_v2 = vld [vmem:[%s2187_s21] sm:$0xff] }
   0xf   : > { %251 = vst.msk [vmem:[#allocation2 + $0x50] sm:$0x1] %vm245_vm1, %v2091_v0  ;;  %252 = vst.msk [vmem:[#allocation2 + $0x60] sm:$0x1] %vm245_vm1, %v2091_v0  ;;  %v2196_v3 = vld [vmem:[%s2187_s21 + $0x18] sm:$0xff]  ;;  %331 = vrot.lane.b32.xlu1 %v2190_v1, %s2092_s22  ;;  %327 = vrot.lane.b32.xlu0 %v2193_v2, %s2092_s22  ;;  %v2203_v4 = vld [vmem:[%s2187_s21 + $0x8] sm:$0xff] }
  0x10   : > { %253 = vst.msk [vmem:[#allocation2 + $0x70] sm:$0x1] %vm245_vm1, %v2091_v0  ;;  %254 = vst.msk [vmem:[#allocation2 + $0x80] sm:$0x1] %vm245_vm1, %v2091_v0  ;;  %v2206_v5 = vld [vmem:[%s2187_s21 + $0x28] sm:$0xff]  ;;  %v2215_v6 = vld [vmem:[%s2187_s21 + $0x20] sm:$0xff] }
  0x11   : > { %255 = vst.msk [vmem:[#allocation2 + $0x90] sm:$0x1] %vm245_vm1, %v2091_v0  ;;  %256 = vst.msk [vmem:[#allocation2 + $0xa0] sm:$0x1] %vm245_vm1, %v2091_v0  ;;  %v2218_v7 = vld [vmem:[%s2187_s21 + $0x38] sm:$0xff]  ;;  %v2221_v8 = vld [vmem:[%s2187_s21 + $0x30] sm:$0xff] }
  0x12   : > { %257 = vst.msk [vmem:[#allocation2 + $0xb0] sm:$0x1] %vm245_vm1, %v2091_v0  ;;  %258 = vst.msk [vmem:[#allocation2 + $0xc0] sm:$0x1] %vm245_vm1, %v2091_v0  ;;  %v2228_v9 = vld [vmem:[%s2187_s21 + $0x48] sm:$0xff]  ;;  %v2231_v10 = vld [vmem:[%s2187_s21 + $0x40] sm:$0xff] }
  0x13   : > { %259 = vst.msk [vmem:[#allocation2 + $0xd0] sm:$0x1] %vm245_vm1, %v2091_v0  ;;  %260 = vst.msk [vmem:[#allocation2 + $0xe0] sm:$0x1] %vm245_vm1, %v2091_v0  ;;  %v2234_v11 = vld [vmem:[%s2187_s21 + $0x58] sm:$0xff]  ;;  %v2243_v12 = vld [vmem:[%s2187_s21 + $0x50] sm:$0xff]  ;;  %333 = vrot.lane.b32.xlu1 %v2196_v3, %s2092_s22  ;;  %329 = vrot.lane.b32.xlu0 %v2203_v4, %s2092_s22 }
  0x14   : > { %261 = vst.msk [vmem:[#allocation2 + $0xf0] sm:$0x1] %vm245_vm1, %v2091_v0  ;;  %246 = vst.msk [vmem:[#allocation2] sm:$0x1] %vm245_vm1, %v2091_v0  ;;  %v2246_v13 = vld [vmem:[%s2187_s21 + $0x68] sm:$0xff]  ;;  %v2249_v14 = vld [vmem:[%s2187_s21 + $0x60] sm:$0xff] }
  0x15   : > { %296 = vst.msk [vmem:[#allocation2 + $0x8] sm:$0xff] %vm294_vm2, %v2091_v0  ;;  %295 = vst.msk [vmem:[#allocation2] sm:$0xff] %vm294_vm2, %v2091_v0  ;;  %v2262_v15 = vld [vmem:[%s2187_s21 + $0x78] sm:$0xff]  ;;  %v2265_v16 = vld [vmem:[%s2187_s21 + $0x70] sm:$0xff]  ;;  %vm557_vm8 = vcmask 195713   ;;  %vm705_vm9 = vcmask 260288  }
  0x16   : > { %266 = vst.msk [vmem:[#allocation2 + $0x21] sm:$0xff] %vm242_vm0, %v2190_v1  ;;  %263 = vst.msk [vmem:[#allocation2 + $0x11] sm:$0xff] %vm242_vm0, %v2193_v2  ;;  %v2274_v17 = vld [vmem:[%s2187_s21 + $0x88] sm:$0xff]  ;;  %v2277_v18 = vld [vmem:[%s2187_s21 + $0x80] sm:$0xff]  ;;  %vm703_vm10 = vcmask 261312   ;;  %vm833_vm11 = vcmask 326912  }
  0x17   : > { %267 = vst.msk [vmem:[#allocation2 + $0x29] sm:$0x7f] %vm264_vm3, %v2196_v3  ;;  %265 = vst.msk [vmem:[#allocation2 + $0x19] sm:$0x7f] %vm264_vm3, %v2203_v4  ;;  %v2280_v19 = vld [vmem:[%s2187_s21 + $0x98] sm:$0xff]  ;;  %v2287_v20 = vld [vmem:[%s2187_s21 + $0x90] sm:$0xff]  ;;  %337 = vrot.lane.b32.xlu1 %v2206_v5, %s2092_s22  ;;  %335 = vrot.lane.b32.xlu0 %v2215_v6, %s2092_s22 }
  0x18   : > { %269 = vst.msk [vmem:[#allocation2 + $0x39] sm:$0x7f] %vm264_vm3, %v2206_v5  ;;  %271 = vst.msk [vmem:[#allocation2 + $0x49] sm:$0x7f] %vm264_vm3, %v2218_v7  ;;  %v2290_v21 = vld [vmem:[%s2187_s21 + $0xa8] sm:$0xff]  ;;  %v2293_v22 = vld [vmem:[%s2187_s21 + $0xa0] sm:$0xff] }
  0x19   : > { %268 = vst.msk [vmem:[#allocation2 + $0x31] sm:$0xff] %vm242_vm0, %v2215_v6  ;;  %270 = vst.msk [vmem:[#allocation2 + $0x41] sm:$0xff] %vm242_vm0, %v2221_v8  ;;  %v2302_v23 = vld [vmem:[%s2187_s21 + $0xb8] sm:$0xff]  ;;  %v2305_v24 = vld [vmem:[%s2187_s21 + $0xb0] sm:$0xff]  ;;  %vm866_vm12 = vcmask 385344   ;;  %vm979_vm13 = vcmask 392513  }
  0x1a   : > { %272 = vst.msk [vmem:[#allocation2 + $0x51] sm:$0xff] %vm242_vm0, %v2231_v10  ;;  %274 = vst.msk [vmem:[#allocation2 + $0x61] sm:$0xff] %vm242_vm0, %v2243_v12  ;;  %v2308_v25 = vld [vmem:[%s2187_s21 + $0xc8] sm:$0xff]  ;;  %v2321_v26 = vld [vmem:[%s2187_s21 + $0xc0] sm:$0xff]  ;;  %vm1017_vm14 = vcmask 450944   ;;  %vm981_vm15 = vcmask 392512  }
  0x1b   : > { %273 = vst.msk [vmem:[#allocation2 + $0x59] sm:$0x7f] %vm264_vm3, %v2228_v9  ;;  %275 = vst.msk [vmem:[#allocation2 + $0x69] sm:$0x7f] %vm264_vm3, %v2234_v11  ;;  %v2324_v27 = vld [vmem:[%s2187_s21 + $0xd8] sm:$0xff]  ;;  %v2333_v28 = vld [vmem:[%s2187_s21 + $0xd0] sm:$0xff]  ;;  %341 = vrot.lane.b32.xlu1 %v2218_v7, %s2092_s22  ;;  %339 = vrot.lane.b32.xlu0 %v2221_v8, %s2092_s22 }
  0x1c   : > { %276 = vst.msk [vmem:[#allocation2 + $0x71] sm:$0xff] %vm242_vm0, %v2249_v14  ;;  %278 = vst.msk [vmem:[#allocation2 + $0x81] sm:$0xff] %vm242_vm0, %v2265_v16  ;;  %v2336_v29 = vld [vmem:[%s2187_s21 + $0xe8] sm:$0xff]  ;;  %v2339_v30 = vld [vmem:[%s2187_s21 + $0xe0] sm:$0xff]  ;;  %vm1125_vm1 = vcmask 457088  }
  0x1d   : > { %277 = vst.msk [vmem:[#allocation2 + $0x79] sm:$0x7f] %vm264_vm3, %v2246_v13  ;;  %279 = vst.msk [vmem:[#allocation2 + $0x89] sm:$0x7f] %vm264_vm3, %v2262_v15  ;;  %v2078_v53 = vld [vmem:[%s3358_s1 + $0x20] ss:$0 sps:$4 sm:$0xff]  }
  0x1e   : > { %280 = vst.msk [vmem:[#allocation2 + $0x91] sm:$0xff] %vm242_vm0, %v2277_v18  ;;  %282 = vst.msk [vmem:[#allocation2 + $0xa1] sm:$0xff] %vm242_vm0, %v2287_v20  ;;  %2059 = vmatprep.subr.msk.bf16.mxu0 %vm1559_vm7, %v2078_v53  ;;  %v1561_v54 = vsel %vm1559_vm7, %v2078_v53, 0  ;;  %2060 = vmatprep.subr.msk.bf16.mxu1 %vm1559_vm7, %v2078_v53  ;;  %v2080_v60 = vld [vmem:[%s3358_s1 + $0x10] sm:$0xff]   ;;  %v2081_v63 = vld [vmem:[%s3358_s1 + $0x8] sm:$0xff]  }
  0x1f   : > { %281 = vst.msk [vmem:[#allocation2 + $0x99] sm:$0x7f] %vm264_vm3, %v2274_v17  ;;  %283 = vst.msk [vmem:[#allocation2 + $0xa9] sm:$0x7f] %vm264_vm3, %v2280_v19  ;;  %345 = vrot.lane.b32.xlu1 %v2228_v9, %s2092_s22  ;;  %343 = vrot.lane.b32.xlu0 %v2231_v10, %s2092_s22 }
  0x20   : > { %284 = vst.msk [vmem:[#allocation2 + $0xb1] sm:$0xff] %vm242_vm0, %v2293_v22  ;;  %286 = vst.msk [vmem:[#allocation2 + $0xc1] sm:$0xff] %vm242_vm0, %v2305_v24  ;;  %2008 = vmatpush3.bf16.msra.mxu0 %v1561_v54  ;;  %2054 = vmatpush3.bf16.msra.mxu1 %v1561_v54 }
  0x21   : > { %285 = vst.msk [vmem:[#allocation2 + $0xb9] sm:$0x7f] %vm264_vm3, %v2290_v21  ;;  %287 = vst.msk [vmem:[#allocation2 + $0xc9] sm:$0x7f] %vm264_vm3, %v2302_v23  ;;  %2009 = vmatprep.subr.bf16.mxu0 %v2079_v57  ;;  %2050 = vmatprep.subr.bf16.mxu1 %v2079_v57 }
  0x22   : > { %289 = vst.msk [vmem:[#allocation2 + $0xd9] sm:$0x7f] %vm264_vm3, %v2308_v25  ;;  %291 = vst.msk [vmem:[#allocation2 + $0xe9] sm:$0x7f] %vm264_vm3, %v2324_v27 }
  0x23   : > { %288 = vst.msk [vmem:[#allocation2 + $0xd1] sm:$0xff] %vm242_vm0, %v2321_v26  ;;  %290 = vst.msk [vmem:[#allocation2 + $0xe1] sm:$0xff] %vm242_vm0, %v2333_v28  ;;  %349 = vrot.lane.b32.xlu1 %v2234_v11, %s2092_s22  ;;  %347 = vrot.lane.b32.xlu0 %v2243_v12, %s2092_s22 }
  0x24   : > { %292 = vst.msk [vmem:[#allocation2 + $0xf1] sm:$0xff] %vm242_vm0, %v2339_v30  ;;  %2010 = vmatpush3.bf16.msra.mxu0 %v2079_v57  ;;  %2055 = vmatpush3.bf16.msra.mxu1 %v2079_v57  ;;  %vm1014_vm0 = vcmask 458112  }
  0x25   : > { %293 = vst.msk [vmem:[#allocation2 + $0xf9] sm:$0x7f] %vm264_vm3, %v2336_v29  ;;  %2011 = vmatprep.subr.bf16.mxu0 %v2080_v60  ;;  %2051 = vmatprep.subr.bf16.mxu1 %v2080_v60  ;;  %vm1281_vm3 = vcmask 582144  }
  0x26   : > { %448 = vst.msk [vmem:[#allocation2] sm:$0xff] %vm447_vm5, %v2091_v0  ;;  %449 = vst.msk [vmem:[#allocation2 + $0x8] sm:$0xff] %vm447_vm5, %v2091_v0 }
  0x27   : > { %353 = vrot.lane.b32.xlu1 %v2246_v13, %s2092_s22  ;;  %351 = vrot.lane.b32.xlu0 %v2249_v14, %s2092_s22  ;;  %451 = vst.msk [vmem:[#allocation2 + $0xf] sm:$0x1] %vm450_vm4, %v2091_v0 }
  0x28   : > { %589 = vst.msk [vmem:[#allocation2] sm:$0x1] %vm588_vm6, %v2091_v0  ;;  %2012 = vmatpush3.bf16.msra.mxu0 %v2080_v60  ;;  %2056 = vmatpush3.bf16.msra.mxu1 %v2080_v60 }
  0x29   : > { %2013 = vmatprep.subr.bf16.mxu0 %v2081_v63  ;;  %2052 = vmatprep.subr.bf16.mxu1 %v2081_v63 }
  0x2b   : > { %357 = vrot.lane.b32.xlu1 %v2262_v15, %s2092_s22  ;;  %355 = vrot.lane.b32.xlu0 %v2265_v16, %s2092_s22 }
  0x2c   : > { %2014 = vmatpush3.bf16.msra.mxu0 %v2081_v63  ;;  %2057 = vmatpush3.bf16.msra.mxu1 %v2081_v63 }
  0x2f   : > { %361 = vrot.lane.b32.xlu1 %v2274_v17, %s2092_s22  ;;  %359 = vrot.lane.b32.xlu0 %v2277_v18, %s2092_s22 }
  0x33   : > { %365 = vrot.lane.b32.xlu1 %v2280_v19, %s2092_s22  ;;  %363 = vrot.lane.b32.xlu0 %v2287_v20, %s2092_s22 }
  0x37   : > { %369 = vrot.lane.b32.xlu1 %v2290_v21, %s2092_s22  ;;  %367 = vrot.lane.b32.xlu0 %v2293_v22, %s2092_s22 }
  0x3b   : > { %373 = vrot.lane.b32.xlu1 %v2302_v23, %s2092_s22  ;;  %371 = vrot.lane.b32.xlu0 %v2305_v24, %s2092_s22 }
  0x3f   : > { %377 = vrot.lane.b32.xlu1 %v2308_v25, %s2092_s22  ;;  %375 = vrot.lane.b32.xlu0 %v2321_v26, %s2092_s22 }
  0x43   : > { %381 = vrot.lane.b32.xlu1 %v2324_v27, %s2092_s22  ;;  %379 = vrot.lane.b32.xlu0 %v2333_v28, %s2092_s22 }
  0x47   : > { %385 = vrot.lane.b32.xlu1 %v2336_v29, %s2092_s22  ;;  %383 = vrot.lane.b32.xlu0 %v2339_v30, %s2092_s22 }
  0x4b   : > { %469 = vrot.lane.b32.xlu1 %v2203_v4, %s2093_s23  ;;  %467 = vrot.lane.b32.xlu0 %v2193_v2, %s2093_s23 }
  0x4f   : > { %473 = vrot.lane.b32.xlu1 %v2196_v3, %s2093_s23  ;;  %471 = vrot.lane.b32.xlu0 %v2190_v1, %s2093_s23 }
  0x53   : > { %477 = vrot.lane.b32.xlu1 %v2206_v5, %s2093_s23  ;;  %475 = vrot.lane.b32.xlu0 %v2215_v6, %s2093_s23 }
  0x57   : > { %481 = vrot.lane.b32.xlu1 %v2218_v7, %s2093_s23  ;;  %479 = vrot.lane.b32.xlu0 %v2221_v8, %s2093_s23 }
  0x5b   : > { %485 = vrot.lane.b32.xlu1 %v2228_v9, %s2093_s23  ;;  %483 = vrot.lane.b32.xlu0 %v2231_v10, %s2093_s23 }
  0x5f   : > { %489 = vrot.lane.b32.xlu1 %v2234_v11, %s2093_s23  ;;  %487 = vrot.lane.b32.xlu0 %v2243_v12, %s2093_s23 }
  0x63   : > { %493 = vrot.lane.b32.xlu1 %v2246_v13, %s2093_s23  ;;  %491 = vrot.lane.b32.xlu0 %v2249_v14, %s2093_s23 }
  0x67   : > { %497 = vrot.lane.b32.xlu1 %v2262_v15, %s2093_s23  ;;  %495 = vrot.lane.b32.xlu0 %v2265_v16, %s2093_s23 }
  0x6b   : > { %501 = vrot.lane.b32.xlu1 %v2274_v17, %s2093_s23  ;;  %499 = vrot.lane.b32.xlu0 %v2277_v18, %s2093_s23 }
  0x6f   : > { %505 = vrot.lane.b32.xlu1 %v2280_v19, %s2093_s23  ;;  %503 = vrot.lane.b32.xlu0 %v2287_v20, %s2093_s23 }
  0x73   : > { %509 = vrot.lane.b32.xlu1 %v2290_v21, %s2093_s23  ;;  %507 = vrot.lane.b32.xlu0 %v2293_v22, %s2093_s23 }
  0x77   : > { %513 = vrot.lane.b32.xlu1 %v2302_v23, %s2093_s23  ;;  %511 = vrot.lane.b32.xlu0 %v2305_v24, %s2093_s23 }
  0x7b   : > { %517 = vrot.lane.b32.xlu1 %v2308_v25, %s2093_s23  ;;  %515 = vrot.lane.b32.xlu0 %v2321_v26, %s2093_s23 }
  0x7f   : > { %521 = vrot.lane.b32.xlu1 %v2324_v27, %s2093_s23  ;;  %519 = vrot.lane.b32.xlu0 %v2333_v28, %s2093_s23 }
  0x81   : > { %v332_v31 = vpop.permute.xlu1 %331  ;;  %v328_v32 = vpop.permute.xlu0 %327 }
  0x82   : > { %419 = vst.msk [vmem:[#allocation2 + $0x20] sm:$0xff] %vm294_vm2, %v332_v31  ;;  %417 = vst.msk [vmem:[#allocation2 + $0x10] sm:$0xff] %vm294_vm2, %v328_v32  ;;  %v2082_v31 = vld [vmem:[%s3358_s1] sm:$0xff]  }
  0x83   : > { %525 = vrot.lane.b32.xlu1 %v2336_v29, %s2093_s23  ;;  %523 = vrot.lane.b32.xlu0 %v2339_v30, %s2093_s23 }
  0x84   : > { %2015 = vmatprep.subr.bf16.mxu0 %v2082_v31  ;;  %2053 = vmatprep.subr.bf16.mxu1 %v2082_v31 }
  0x85   : > { %v334_v33 = vpop.permute.xlu1 %333  ;;  %v330_v34 = vpop.permute.xlu0 %329  ;;  %2016 = vmatpush3.bf16.msra.mxu0 %v2082_v31  ;;  %2058 = vmatpush3.bf16.msra.mxu1 %v2082_v31 }
  0x86   : > { %420 = vst.msk [vmem:[#allocation2 + $0x28] sm:$0xff] %vm294_vm2, %v334_v33  ;;  %418 = vst.msk [vmem:[#allocation2 + $0x18] sm:$0xff] %vm294_vm2, %v330_v34 }
  0x87   : > { %453 = vst.msk [vmem:[#allocation2 + $0x2f] sm:$0x1] %vm450_vm4, %v2091_v0  ;;  %452 = vst.msk [vmem:[#allocation2 + $0x1f] sm:$0x1] %vm450_vm4, %v2091_v0  ;;  %609 = vrot.lane.b32.xlu1 %v2203_v4, %s2094_s24  ;;  %607 = vrot.lane.b32.xlu0 %v2193_v2, %s2094_s24 }
  0x89   : > { %v338_v35 = vpop.permute.xlu1 %337  ;;  %v336_v36 = vpop.permute.xlu0 %335 }
  0x8a   : > { %422 = vst.msk [vmem:[#allocation2 + $0x38] sm:$0xff] %vm294_vm2, %v338_v35  ;;  %421 = vst.msk [vmem:[#allocation2 + $0x30] sm:$0xff] %vm294_vm2, %v336_v36 }
  0x8b   : > { %454 = vst.msk [vmem:[#allocation2 + $0x3f] sm:$0x1] %vm450_vm4, %v2091_v0  ;;  %613 = vrot.lane.b32.xlu1 %v2196_v3, %s2094_s24  ;;  %611 = vrot.lane.b32.xlu0 %v2190_v1, %s2094_s24 }
  0x8d   : > { %v342_v37 = vpop.permute.xlu1 %341  ;;  %v340_v38 = vpop.permute.xlu0 %339 }
  0x8e   : > { %424 = vst.msk [vmem:[#allocation2 + $0x48] sm:$0xff] %vm294_vm2, %v342_v37  ;;  %423 = vst.msk [vmem:[#allocation2 + $0x40] sm:$0xff] %vm294_vm2, %v340_v38 }
  0x8f   : > { %455 = vst.msk [vmem:[#allocation2 + $0x4f] sm:$0x1] %vm450_vm4, %v2091_v0  ;;  %617 = vrot.lane.b32.xlu1 %v2206_v5, %s2094_s24  ;;  %615 = vrot.lane.b32.xlu0 %v2215_v6, %s2094_s24 }
  0x91   : > { %v346_v39 = vpop.permute.xlu1 %345  ;;  %v344_v40 = vpop.permute.xlu0 %343 }
  0x92   : > { %426 = vst.msk [vmem:[#allocation2 + $0x58] sm:$0xff] %vm294_vm2, %v346_v39  ;;  %425 = vst.msk [vmem:[#allocation2 + $0x50] sm:$0xff] %vm294_vm2, %v344_v40 }
  0x93   : > { %456 = vst.msk [vmem:[#allocation2 + $0x5f] sm:$0x1] %vm450_vm4, %v2091_v0  ;;  %621 = vrot.lane.b32.xlu1 %v2218_v7, %s2094_s24  ;;  %619 = vrot.lane.b32.xlu0 %v2221_v8, %s2094_s24 }
  0x95   : > { %v350_v41 = vpop.permute.xlu1 %349  ;;  %v348_v42 = vpop.permute.xlu0 %347 }
  0x96   : > { %428 = vst.msk [vmem:[#allocation2 + $0x68] sm:$0xff] %vm294_vm2, %v350_v41  ;;  %427 = vst.msk [vmem:[#allocation2 + $0x60] sm:$0xff] %vm294_vm2, %v348_v42 }
  0x97   : > { %457 = vst.msk [vmem:[#allocation2 + $0x6f] sm:$0x1] %vm450_vm4, %v2091_v0  ;;  %625 = vrot.lane.b32.xlu1 %v2228_v9, %s2094_s24  ;;  %623 = vrot.lane.b32.xlu0 %v2231_v10, %s2094_s24 }
  0x99   : > { %v354_v43 = vpop.permute.xlu1 %353  ;;  %v352_v44 = vpop.permute.xlu0 %351 }
  0x9a   : > { %430 = vst.msk [vmem:[#allocation2 + $0x78] sm:$0xff] %vm294_vm2, %v354_v43  ;;  %429 = vst.msk [vmem:[#allocation2 + $0x70] sm:$0xff] %vm294_vm2, %v352_v44 }
  0x9b   : > { %458 = vst.msk [vmem:[#allocation2 + $0x7f] sm:$0x1] %vm450_vm4, %v2091_v0  ;;  %737 = vrot.lane.b32.xlu1 %v2193_v2, %s2095_s25  ;;  %627 = vrot.lane.b32.xlu0 %v2243_v12, %s2094_s24 }
  0x9d   : > { %v358_v45 = vpop.permute.xlu1 %357  ;;  %v356_v46 = vpop.permute.xlu0 %355 }
  0x9e   : > { %432 = vst.msk [vmem:[#allocation2 + $0x88] sm:$0xff] %vm294_vm2, %v358_v45  ;;  %431 = vst.msk [vmem:[#allocation2 + $0x80] sm:$0xff] %vm294_vm2, %v356_v46 }
  0x9f   : > { %459 = vst.msk [vmem:[#allocation2 + $0x8f] sm:$0x1] %vm450_vm4, %v2091_v0  ;;  %741 = vrot.lane.b32.xlu1 %v2190_v1, %s2095_s25  ;;  %739 = vrot.lane.b32.xlu0 %v2203_v4, %s2095_s25 }
  0xa1   : > { %v362_v47 = vpop.permute.xlu1 %361  ;;  %v360_v48 = vpop.permute.xlu0 %359 }
  0xa2   : > { %434 = vst.msk [vmem:[#allocation2 + $0x98] sm:$0xff] %vm294_vm2, %v362_v47  ;;  %433 = vst.msk [vmem:[#allocation2 + $0x90] sm:$0xff] %vm294_vm2, %v360_v48 }
  0xa3   : > { %460 = vst.msk [vmem:[#allocation2 + $0x9f] sm:$0x1] %vm450_vm4, %v2091_v0  ;;  %883 = vrot.lane.b32.xlu1 %v2193_v2, %s2096_s26  ;;  %743 = vrot.lane.b32.xlu0 %v2196_v3, %s2095_s25 }
  0xa5   : > { %v366_v49 = vpop.permute.xlu1 %365  ;;  %v364_v50 = vpop.permute.xlu0 %363 }
  0xa6   : > { %436 = vst.msk [vmem:[#allocation2 + $0xa8] sm:$0xff] %vm294_vm2, %v366_v49  ;;  %435 = vst.msk [vmem:[#allocation2 + $0xa0] sm:$0xff] %vm294_vm2, %v364_v50 }
  0xa7   : > { %461 = vst.msk [vmem:[#allocation2 + $0xaf] sm:$0x1] %vm450_vm4, %v2091_v0  ;;  %887 = vrot.lane.b32.xlu1 %v2190_v1, %s2096_s26  ;;  %885 = vrot.lane.b32.xlu0 %v2203_v4, %s2096_s26 }
  0xa9   : > { %v370_v51 = vpop.permute.xlu1 %369  ;;  %v368_v52 = vpop.permute.xlu0 %367 }
  0xaa   : > { %438 = vst.msk [vmem:[#allocation2 + $0xb8] sm:$0xff] %vm294_vm2, %v370_v51  ;;  %437 = vst.msk [vmem:[#allocation2 + $0xb0] sm:$0xff] %vm294_vm2, %v368_v52 }
  0xab   : > { %462 = vst.msk [vmem:[#allocation2 + $0xbf] sm:$0x1] %vm450_vm4, %v2091_v0  ;;  %1034 = vrot.lane.b32.xlu1 %v2190_v1, %s2097_s29  ;;  %889 = vrot.lane.b32.xlu0 %v2196_v3, %s2096_s26 }
  0xad   : > { %v374_v55 = vpop.permute.xlu1 %373  ;;  %v372_v56 = vpop.permute.xlu0 %371 }
  0xae   : > { %440 = vst.msk [vmem:[#allocation2 + $0xc8] sm:$0xff] %vm294_vm2, %v374_v55  ;;  %439 = vst.msk [vmem:[#allocation2 + $0xc0] sm:$0xff] %vm294_vm2, %v372_v56 }
  0xaf   : > { %463 = vst.msk [vmem:[#allocation2 + $0xcf] sm:$0x1] %vm450_vm4, %v2091_v0  ;;  %1038 = vrot.lane.b32.xlu1 %v2215_v6, %s2097_s29  ;;  %1036 = vrot.lane.b32.xlu0 %v2196_v3, %s2097_s29 }
  0xb1   : > { %v378_v58 = vpop.permute.xlu1 %377  ;;  %v376_v59 = vpop.permute.xlu0 %375 }
  0xb2   : > { %442 = vst.msk [vmem:[#allocation2 + $0xd8] sm:$0xff] %vm294_vm2, %v378_v58  ;;  %441 = vst.msk [vmem:[#allocation2 + $0xd0] sm:$0xff] %vm294_vm2, %v376_v59 }
  0xb3   : > { %464 = vst.msk [vmem:[#allocation2 + $0xdf] sm:$0x1] %vm450_vm4, %v2091_v0  ;;  %1158 = vrot.lane.b32.xlu1 %v2190_v1, %s2098_s8  ;;  %1040 = vrot.lane.b32.xlu0 %v2206_v5, %s2097_s29 }
  0xb5   : > { %v382_v61 = vpop.permute.xlu1 %381  ;;  %v380_v62 = vpop.permute.xlu0 %379 }
  0xb6   : > { %444 = vst.msk [vmem:[#allocation2 + $0xe8] sm:$0xff] %vm294_vm2, %v382_v61  ;;  %443 = vst.msk [vmem:[#allocation2 + $0xe0] sm:$0xff] %vm294_vm2, %v380_v62 }
  0xb7   : > { %465 = vst.msk [vmem:[#allocation2 + $0xef] sm:$0x1] %vm450_vm4, %v2091_v0  ;;  %1162 = vrot.lane.b32.xlu1 %v2215_v6, %s2098_s8  ;;  %1160 = vrot.lane.b32.xlu0 %v2196_v3, %s2098_s8 }
  0xb9   : > { %v386_v2 = vpop.permute.xlu1 %385  ;;  %v384_v4 = vpop.permute.xlu0 %383 }
  0xba   : > { %446 = vst.msk [vmem:[#allocation2 + $0xf8] sm:$0xff] %vm294_vm2, %v386_v2  ;;  %445 = vst.msk [vmem:[#allocation2 + $0xf0] sm:$0xff] %vm294_vm2, %v384_v4  ;;  %vm1155_vm2 = vcmask 523712  }
  0xbb   : > { %466 = vst.msk [vmem:[#allocation2 + $0xff] sm:$0x1] %vm450_vm4, %v2091_v0  ;;  %1298 = vrot.lane.b32.xlu1 %v2190_v1, %s2099_s13  ;;  %1164 = vrot.lane.b32.xlu0 %v2206_v5, %s2098_s8  ;;  %vm1388_vm4 = vcmask 589313  }
  0xbd   : > { %v470_v32 = vpop.permute.xlu1 %469  ;;  %v468_v33 = vpop.permute.xlu0 %467 }
  0xbe   : > { %559 = vst.msk [vmem:[#allocation2 + $0x17] sm:$0xff] %vm447_vm5, %v470_v32 }
  0xbf   : > { %558 = vst.msk [vmem:[#allocation2 + $0xf] sm:$0xfe] %vm557_vm8, %v468_v33  ;;  %1302 = vrot.lane.b32.xlu1 %v2215_v6, %s2099_s13  ;;  %1300 = vrot.lane.b32.xlu0 %v2196_v3, %s2099_s13 }
  0xc0   : > { %590 = vst.msk [vmem:[#allocation2 + $0x10] sm:$0x1] %vm588_vm6, %v2091_v0 }
  0xc1   : > { %v474_v1 = vpop.permute.xlu1 %473  ;;  %v472_v34 = vpop.permute.xlu0 %471 }
  0xc2   : > { %561 = vst.msk [vmem:[#allocation2 + $0x27] sm:$0xff] %vm447_vm5, %v474_v1 }
  0xc3   : > { %560 = vst.msk [vmem:[#allocation2 + $0x1f] sm:$0xfe] %vm557_vm8, %v472_v34  ;;  %745 = vrot.lane.b32.xlu1 %v2215_v6, %s2095_s25  ;;  %1304 = vrot.lane.b32.xlu0 %v2206_v5, %s2099_s13 }
  0xc4   : > { %591 = vst.msk [vmem:[#allocation2 + $0x20] sm:$0x1] %vm588_vm6, %v2091_v0 }
  0xc5   : > { %v478_v35 = vpop.permute.xlu1 %477  ;;  %v476_v36 = vpop.permute.xlu0 %475 }
  0xc6   : > { %563 = vst.msk [vmem:[#allocation2 + $0x37] sm:$0xff] %vm447_vm5, %v478_v35 }
  0xc7   : > { %562 = vst.msk [vmem:[#allocation2 + $0x2f] sm:$0xfe] %vm557_vm8, %v476_v36  ;;  %749 = vrot.lane.b32.xlu1 %v2221_v8, %s2095_s25  ;;  %747 = vrot.lane.b32.xlu0 %v2206_v5, %s2095_s25 }
  0xc8   : > { %592 = vst.msk [vmem:[#allocation2 + $0x30] sm:$0x1] %vm588_vm6, %v2091_v0 }
  0xc9   : > { %v482_v3 = vpop.permute.xlu1 %481  ;;  %v480_v37 = vpop.permute.xlu0 %479 }
  0xca   : > { %565 = vst.msk [vmem:[#allocation2 + $0x47] sm:$0xff] %vm447_vm5, %v482_v3 }
  0xcb   : > { %564 = vst.msk [vmem:[#allocation2 + $0x3f] sm:$0xfe] %vm557_vm8, %v480_v37  ;;  %891 = vrot.lane.b32.xlu1 %v2215_v6, %s2096_s26  ;;  %751 = vrot.lane.b32.xlu0 %v2218_v7, %s2095_s25 }
  0xcc   : > { %593 = vst.msk [vmem:[#allocation2 + $0x40] sm:$0x1] %vm588_vm6, %v2091_v0 }
  0xcd   : > { %v486_v38 = vpop.permute.xlu1 %485  ;;  %v484_v39 = vpop.permute.xlu0 %483 }
  0xce   : > { %567 = vst.msk [vmem:[#allocation2 + $0x57] sm:$0xff] %vm447_vm5, %v486_v38 }
  0xcf   : > { %566 = vst.msk [vmem:[#allocation2 + $0x4f] sm:$0xfe] %vm557_vm8, %v484_v39  ;;  %895 = vrot.lane.b32.xlu1 %v2221_v8, %s2096_s26  ;;  %893 = vrot.lane.b32.xlu0 %v2206_v5, %s2096_s26 }
  0xd0   : > { %594 = vst.msk [vmem:[#allocation2 + $0x50] sm:$0x1] %vm588_vm6, %v2091_v0 }
  0xd1   : > { %v490_v40 = vpop.permute.xlu1 %489  ;;  %v488_v6 = vpop.permute.xlu0 %487 }
  0xd2   : > { %569 = vst.msk [vmem:[#allocation2 + $0x67] sm:$0xff] %vm447_vm5, %v490_v40 }
  0xd3   : > { %568 = vst.msk [vmem:[#allocation2 + $0x5f] sm:$0xfe] %vm557_vm8, %v488_v6  ;;  %1042 = vrot.lane.b32.xlu1 %v2221_v8, %s2097_s29  ;;  %897 = vrot.lane.b32.xlu0 %v2218_v7, %s2096_s26 }
  0xd4   : > { %595 = vst.msk [vmem:[#allocation2 + $0x60] sm:$0x1] %vm588_vm6, %v2091_v0 }
  0xd5   : > { %v494_v41 = vpop.permute.xlu1 %493  ;;  %v492_v42 = vpop.permute.xlu0 %491 }
  0xd6   : > { %571 = vst.msk [vmem:[#allocation2 + $0x77] sm:$0xff] %vm447_vm5, %v494_v41 }
  0xd7   : > { %570 = vst.msk [vmem:[#allocation2 + $0x6f] sm:$0xfe] %vm557_vm8, %v492_v42  ;;  %1046 = vrot.lane.b32.xlu1 %v2231_v10, %s2097_s29  ;;  %1044 = vrot.lane.b32.xlu0 %v2218_v7, %s2097_s29 }
  0xd8   : > { %596 = vst.msk [vmem:[#allocation2 + $0x70] sm:$0x1] %vm588_vm6, %v2091_v0 }
  0xd9   : > { %v498_v5 = vpop.permute.xlu1 %497  ;;  %v496_v43 = vpop.permute.xlu0 %495 }
  0xda   : > { %573 = vst.msk [vmem:[#allocation2 + $0x87] sm:$0xff] %vm447_vm5, %v498_v5 }
  0xdb   : > { %572 = vst.msk [vmem:[#allocation2 + $0x7f] sm:$0xfe] %vm557_vm8, %v496_v43  ;;  %1166 = vrot.lane.b32.xlu1 %v2221_v8, %s2098_s8  ;;  %1048 = vrot.lane.b32.xlu0 %v2228_v9, %s2097_s29 }
  0xdc   : > { %597 = vst.msk [vmem:[#allocation2 + $0x80] sm:$0x1] %vm588_vm6, %v2091_v0 }
  0xdd   : > { %v502_v44 = vpop.permute.xlu1 %501  ;;  %v500_v45 = vpop.permute.xlu0 %499 }
  0xde   : > { %575 = vst.msk [vmem:[#allocation2 + $0x97] sm:$0xff] %vm447_vm5, %v502_v44 }
  0xdf   : > { %574 = vst.msk [vmem:[#allocation2 + $0x8f] sm:$0xfe] %vm557_vm8, %v500_v45  ;;  %1170 = vrot.lane.b32.xlu1 %v2231_v10, %s2098_s8  ;;  %1168 = vrot.lane.b32.xlu0 %v2218_v7, %s2098_s8 }
  0xe0   : > { %598 = vst.msk [vmem:[#allocation2 + $0x90] sm:$0x1] %vm588_vm6, %v2091_v0 }
  0xe1   : > { %v506_v46 = vpop.permute.xlu1 %505  ;;  %v504_v47 = vpop.permute.xlu0 %503 }
  0xe2   : > { %577 = vst.msk [vmem:[#allocation2 + $0xa7] sm:$0xff] %vm447_vm5, %v506_v46 }
  0xe3   : > { %576 = vst.msk [vmem:[#allocation2 + $0x9f] sm:$0xfe] %vm557_vm8, %v504_v47  ;;  %1306 = vrot.lane.b32.xlu1 %v2221_v8, %s2099_s13  ;;  %1172 = vrot.lane.b32.xlu0 %v2228_v9, %s2098_s8 }
  0xe4   : > { %599 = vst.msk [vmem:[#allocation2 + $0xa0] sm:$0x1] %vm588_vm6, %v2091_v0 }
  0xe5   : > { %v510_v48 = vpop.permute.xlu1 %509  ;;  %v508_v49 = vpop.permute.xlu0 %507 }
  0xe6   : > { %579 = vst.msk [vmem:[#allocation2 + $0xb7] sm:$0xff] %vm447_vm5, %v510_v48 }
  0xe7   : > { %578 = vst.msk [vmem:[#allocation2 + $0xaf] sm:$0xfe] %vm557_vm8, %v508_v49  ;;  %1310 = vrot.lane.b32.xlu1 %v2231_v10, %s2099_s13  ;;  %1308 = vrot.lane.b32.xlu0 %v2218_v7, %s2099_s13 }
  0xe8   : > { %600 = vst.msk [vmem:[#allocation2 + $0xb0] sm:$0x1] %vm588_vm6, %v2091_v0 }
  0xe9   : > { %v514_v50 = vpop.permute.xlu1 %513  ;;  %v512_v8 = vpop.permute.xlu0 %511 }
  0xea   : > { %581 = vst.msk [vmem:[#allocation2 + $0xc7] sm:$0xff] %vm447_vm5, %v514_v50 }
  0xeb   : > { %580 = vst.msk [vmem:[#allocation2 + $0xbf] sm:$0xfe] %vm557_vm8, %v512_v8  ;;  %629 = vrot.lane.b32.xlu1 %v2234_v11, %s2094_s24  ;;  %1312 = vrot.lane.b32.xlu0 %v2228_v9, %s2099_s13 }
  0xec   : > { %601 = vst.msk [vmem:[#allocation2 + $0xc0] sm:$0x1] %vm588_vm6, %v2091_v0 }
  0xed   : > { %v518_v51 = vpop.permute.xlu1 %517  ;;  %v516_v52 = vpop.permute.xlu0 %515 }
  0xee   : > { %583 = vst.msk [vmem:[#allocation2 + $0xd7] sm:$0xff] %vm447_vm5, %v518_v51 }
  0xef   : > { %582 = vst.msk [vmem:[#allocation2 + $0xcf] sm:$0xfe] %vm557_vm8, %v516_v52  ;;  %755 = vrot.lane.b32.xlu1 %v2228_v9, %s2095_s25  ;;  %753 = vrot.lane.b32.xlu0 %v2231_v10, %s2095_s25 }
  0xf0   : > { %602 = vst.msk [vmem:[#allocation2 + $0xd0] sm:$0x1] %vm588_vm6, %v2091_v0 }
  0xf1   : > { %v522_v7 = vpop.permute.xlu1 %521  ;;  %v520_v53 = vpop.permute.xlu0 %519 }
  0xf2   : > { %585 = vst.msk [vmem:[#allocation2 + $0xe7] sm:$0xff] %vm447_vm5, %v522_v7 }
  0xf3   : > { %584 = vst.msk [vmem:[#allocation2 + $0xdf] sm:$0xfe] %vm557_vm8, %v520_v53  ;;  %759 = vrot.lane.b32.xlu1 %v2234_v11, %s2095_s25  ;;  %757 = vrot.lane.b32.xlu0 %v2243_v12, %s2095_s25 }
  0xf4   : > { %603 = vst.msk [vmem:[#allocation2 + $0xe0] sm:$0x1] %vm588_vm6, %v2091_v0 }
  0xf5   : > { %v526_v54 = vpop.permute.xlu1 %525  ;;  %v524_v55 = vpop.permute.xlu0 %523 }
  0xf6   : > { %587 = vst.msk [vmem:[#allocation2 + $0xf7] sm:$0xff] %vm447_vm5, %v526_v54  ;;  %vm1278_vm5 = vcmask 589312  }
  0xf7   : > { %586 = vst.msk [vmem:[#allocation2 + $0xef] sm:$0xfe] %vm557_vm8, %v524_v55  ;;  %901 = vrot.lane.b32.xlu1 %v2228_v9, %s2096_s26  ;;  %899 = vrot.lane.b32.xlu0 %v2231_v10, %s2096_s26 }
  0xf8   : > { %604 = vst.msk [vmem:[#allocation2 + $0xf0] sm:$0x1] %vm588_vm6, %v2091_v0  ;;  %vm1510_vm6 = vcmask 588800  }
  0xf9   : > { %v610_v56 = vpop.permute.xlu1 %609  ;;  %v608_v57 = vpop.permute.xlu0 %607 }
  0xfa   : > { %706 = vst.msk [vmem:[#allocation2 + $0x9] sm:$0x7f] %vm705_vm9, %v610_v56 }
  0xfb   : > { %704 = vst.msk [vmem:[#allocation2 + $0x1] sm:$0xff] %vm703_vm10, %v608_v57  ;;  %905 = vrot.lane.b32.xlu1 %v2234_v11, %s2096_s26  ;;  %903 = vrot.lane.b32.xlu0 %v2243_v12, %s2096_s26 }
  0xfd   : > { %v614_v58 = vpop.permute.xlu1 %613  ;;  %v612_v59 = vpop.permute.xlu0 %611 }
  0xfe   : > { %708 = vst.msk [vmem:[#allocation2 + $0x19] sm:$0x7f] %vm705_vm9, %v614_v58 }
  0xff   : > { %707 = vst.msk [vmem:[#allocation2 + $0x11] sm:$0xff] %vm703_vm10, %v612_v59  ;;  %1052 = vrot.lane.b32.xlu1 %v2234_v11, %s2097_s29  ;;  %1050 = vrot.lane.b32.xlu0 %v2243_v12, %s2097_s29 }
 0x101   : > { %v618_v9 = vpop.permute.xlu1 %617  ;;  %v616_v10 = vpop.permute.xlu0 %615 }
 0x102   : > { %710 = vst.msk [vmem:[#allocation2 + $0x29] sm:$0x7f] %vm705_vm9, %v618_v9 }
 0x103   : > { %709 = vst.msk [vmem:[#allocation2 + $0x21] sm:$0xff] %vm703_vm10, %v616_v10  ;;  %1056 = vrot.lane.b32.xlu1 %v2246_v13, %s2097_s29  ;;  %1054 = vrot.lane.b32.xlu0 %v2249_v14, %s2097_s29 }
 0x105   : > { %v622_v60 = vpop.permute.xlu1 %621  ;;  %v620_v61 = vpop.permute.xlu0 %619 }
 0x106   : > { %712 = vst.msk [vmem:[#allocation2 + $0x39] sm:$0x7f] %vm705_vm9, %v622_v60 }
 0x107   : > { %711 = vst.msk [vmem:[#allocation2 + $0x31] sm:$0xff] %vm703_vm10, %v620_v61  ;;  %1176 = vrot.lane.b32.xlu1 %v2234_v11, %s2098_s8  ;;  %1174 = vrot.lane.b32.xlu0 %v2243_v12, %s2098_s8 }
 0x109   : > { %v626_v62 = vpop.permute.xlu1 %625  ;;  %v624_v63 = vpop.permute.xlu0 %623 }
 0x10a   : > { %714 = vst.msk [vmem:[#allocation2 + $0x49] sm:$0x7f] %vm705_vm9, %v626_v62 }
 0x10b   : > { %713 = vst.msk [vmem:[#allocation2 + $0x41] sm:$0xff] %vm703_vm10, %v624_v63  ;;  %1180 = vrot.lane.b32.xlu1 %v2246_v13, %s2098_s8  ;;  %1178 = vrot.lane.b32.xlu0 %v2249_v14, %s2098_s8 }
 0x10d   : > { %v738_v2 = vpop.permute.xlu1 %737  ;;  %v628_v4 = vpop.permute.xlu0 %627 }
 0x10e   : > { %834 = vst.msk [vmem:[#allocation2] sm:$0xff] %vm833_vm11, %v738_v2 }
 0x10f   : > { %715 = vst.msk [vmem:[#allocation2 + $0x51] sm:$0xff] %vm703_vm10, %v628_v4  ;;  %1316 = vrot.lane.b32.xlu1 %v2234_v11, %s2099_s13  ;;  %1314 = vrot.lane.b32.xlu0 %v2243_v12, %s2099_s13 }
 0x111   : > { %v742_v31 = vpop.permute.xlu1 %741  ;;  %v740_v32 = vpop.permute.xlu0 %739 }
 0x112   : > { %836 = vst.msk [vmem:[#allocation2 + $0x10] sm:$0xff] %vm833_vm11, %v742_v31  ;;  %835 = vst.msk [vmem:[#allocation2 + $0x8] sm:$0xff] %vm833_vm11, %v740_v32 }
 0x113   : > { %867 = vst.msk [vmem:[#allocation2 + $0xf] sm:$0x1] %vm866_vm12, %v2091_v0  ;;  %1320 = vrot.lane.b32.xlu1 %v2246_v13, %s2099_s13  ;;  %1318 = vrot.lane.b32.xlu0 %v2249_v14, %s2099_s13 }
 0x115   : > { %v884_v11 = vpop.permute.xlu1 %883  ;;  %v744_v12 = vpop.permute.xlu0 %743 }
 0x116   : > { %980 = vst.msk [vmem:[#allocation2 - $0x1] sm:$0xfe] %vm979_vm13, %v884_v11 }
 0x117   : > { %837 = vst.msk [vmem:[#allocation2 + $0x18] sm:$0xff] %vm833_vm11, %v744_v12  ;;  %633 = vrot.lane.b32.xlu1 %v2246_v13, %s2094_s24  ;;  %631 = vrot.lane.b32.xlu0 %v2249_v14, %s2094_s24 }
 0x118   : > { %1018 = vst.msk [vmem:[#allocation2] sm:$0x1] %vm1017_vm14, %v2091_v0 }
 0x119   : > { %868 = vst.msk [vmem:[#allocation2 + $0x1f] sm:$0x1] %vm866_vm12, %v2091_v0  ;;  %v888_v33 = vpop.permute.xlu1 %887  ;;  %v886_v1 = vpop.permute.xlu0 %885 }
 0x11a   : > { %983 = vst.msk [vmem:[#allocation2 + $0xf] sm:$0xfe] %vm979_vm13, %v888_v33 }
 0x11b   : > { %982 = vst.msk [vmem:[#allocation2 + $0x7] sm:$0xff] %vm981_vm15, %v886_v1  ;;  %637 = vrot.lane.b32.xlu1 %v2262_v15, %s2094_s24  ;;  %635 = vrot.lane.b32.xlu0 %v2265_v16, %s2094_s24 }
 0x11c   : > { %1019 = vst.msk [vmem:[#allocation2 + $0x10] sm:$0x1] %vm1017_vm14, %v2091_v0 }
 0x11d   : > { %v1035_v34 = vpop.permute.xlu1 %1034  ;;  %v890_v35 = vpop.permute.xlu0 %889 }
 0x11e   : > { %1124 = vst.msk [vmem:[#allocation2 + $0x1] sm:$0xff] %vm1014_vm0, %v1035_v34 }
 0x11f   : > { %984 = vst.msk [vmem:[#allocation2 + $0x17] sm:$0xff] %vm981_vm15, %v890_v35  ;;  %763 = vrot.lane.b32.xlu1 %v2246_v13, %s2095_s25  ;;  %761 = vrot.lane.b32.xlu0 %v2249_v14, %s2095_s25 }
 0x121   : > { %v1039_v36 = vpop.permute.xlu1 %1038  ;;  %v1037_v3 = vpop.permute.xlu0 %1036 }
 0x122   : > { %1127 = vst.msk [vmem:[#allocation2 + $0x11] sm:$0xff] %vm1014_vm0, %v1039_v36 }
 0x123   : > { %1126 = vst.msk [vmem:[#allocation2 + $0x9] sm:$0x7f] %vm1125_vm1, %v1037_v3  ;;  %767 = vrot.lane.b32.xlu1 %v2262_v15, %s2095_s25  ;;  %765 = vrot.lane.b32.xlu0 %v2265_v16, %s2095_s25 }
 0x125   : > { %v1159_v37 = vpop.permute.xlu1 %1158  ;;  %v1041_v38 = vpop.permute.xlu0 %1040 }
 0x126   : > { %1248 = vst.msk [vmem:[#allocation2] sm:$0xff] %vm1155_vm2, %v1159_v37 }
 0x127   : > { %1128 = vst.msk [vmem:[#allocation2 + $0x19] sm:$0x7f] %vm1125_vm1, %v1041_v38  ;;  %909 = vrot.lane.b32.xlu1 %v2246_v13, %s2096_s26  ;;  %907 = vrot.lane.b32.xlu0 %v2249_v14, %s2096_s26 }
 0x129   : > { %v1163_v39 = vpop.permute.xlu1 %1162  ;;  %v1161_v40 = vpop.permute.xlu0 %1160 }
 0x12a   : > { %1250 = vst.msk [vmem:[#allocation2 + $0x10] sm:$0xff] %vm1155_vm2, %v1163_v39  ;;  %1249 = vst.msk [vmem:[#allocation2 + $0x8] sm:$0xff] %vm1155_vm2, %v1161_v40 }
 0x12b   : > { %1282 = vst.msk [vmem:[#allocation2 + $0xf] sm:$0x1] %vm1281_vm3, %v2091_v0  ;;  %913 = vrot.lane.b32.xlu1 %v2262_v15, %s2096_s26  ;;  %911 = vrot.lane.b32.xlu0 %v2265_v16, %s2096_s26 }
 0x12d   : > { %v1299_v13 = vpop.permute.xlu1 %1298  ;;  %v1165_v6 = vpop.permute.xlu0 %1164 }
 0x12e   : > { %1389 = vst.msk [vmem:[#allocation2 - $0x1] sm:$0xfe] %vm1388_vm4, %v1299_v13 }
 0x12f   : > { %1251 = vst.msk [vmem:[#allocation2 + $0x18] sm:$0xff] %vm1155_vm2, %v1165_v6  ;;  %1060 = vrot.lane.b32.xlu1 %v2262_v15, %s2097_s29  ;;  %1058 = vrot.lane.b32.xlu0 %v2265_v16, %s2097_s29 }
 0x130   : > { %1283 = vst.msk [vmem:[#allocation2 + $0x1f] sm:$0x1] %vm1281_vm3, %v2091_v0 }
 0x131   : > { %v1303_v14 = vpop.permute.xlu1 %1302  ;;  %v1301_v41 = vpop.permute.xlu0 %1300 }
 0x132   : > { %1391 = vst.msk [vmem:[#allocation2 + $0xf] sm:$0xfe] %vm1388_vm4, %v1303_v14 }
 0x133   : > { %1390 = vst.msk [vmem:[#allocation2 + $0x7] sm:$0xff] %vm1278_vm5, %v1301_v41  ;;  %1064 = vrot.lane.b32.xlu1 %v2274_v17, %s2097_s29  ;;  %1062 = vrot.lane.b32.xlu0 %v2277_v18, %s2097_s29 }
 0x135   : > { %v746_v42 = vpop.permute.xlu1 %745  ;;  %v1305_v5 = vpop.permute.xlu0 %1304 }
 0x136   : > { %838 = vst.msk [vmem:[#allocation2 + $0x20] sm:$0xff] %vm833_vm11, %v746_v42 }
 0x137   : > { %1392 = vst.msk [vmem:[#allocation2 + $0x17] sm:$0xff] %vm1278_vm5, %v1305_v5  ;;  %1184 = vrot.lane.b32.xlu1 %v2262_v15, %s2098_s8  ;;  %1182 = vrot.lane.b32.xlu0 %v2265_v16, %s2098_s8 }
 0x139   : > { %v750_v43 = vpop.permute.xlu1 %749  ;;  %v748_v44 = vpop.permute.xlu0 %747 }
 0x13a   : > { %v1419_v45 = vld [vmem:[#allocation2] sm:$0xff]  ;;  %v1420_v46 = vld [vmem:[#allocation2 + $0x8] sm:$0xff]  ;;  %840 = vst.msk [vmem:[#allocation2 + $0x30] sm:$0xff] %vm833_vm11, %v750_v43  ;;  %839 = vst.msk [vmem:[#allocation2 + $0x28] sm:$0xff] %vm833_vm11, %v748_v44 }
 0x13b   : > { %v1451_v47 = vpack.c.bf16 %v1420_v46, %v1419_v45  ;;  %869 = vst.msk [vmem:[#allocation2 + $0x2f] sm:$0x1] %vm866_vm12, %v2091_v0  ;;  %1188 = vrot.lane.b32.xlu1 %v2274_v17, %s2098_s8  ;;  %1186 = vrot.lane.b32.xlu0 %v2277_v18, %s2098_s8 }
 0x13d   : > { %2017 = vmatprep.mubr.msk.bf16.mxu0 %vm1510_vm6, %v1451_v47  ;;  %v892_v48 = vpop.permute.xlu1 %891  ;;  %v752_v49 = vpop.permute.xlu0 %751 }
 0x13e   : > { %v1421_v50 = vld [vmem:[#allocation2 + $0x10] sm:$0xff]  ;;  %v1422_v8 = vld [vmem:[#allocation2 + $0x18] sm:$0xff]  ;;  %985 = vst.msk [vmem:[#allocation2 + $0x1f] sm:$0xfe] %vm979_vm13, %v892_v48 }
 0x13f   : > { %841 = vst.msk [vmem:[#allocation2 + $0x38] sm:$0xff] %vm833_vm11, %v752_v49  ;;  %v1452_v51 = vpack.c.bf16 %v1422_v8, %v1421_v50  ;;  %1324 = vrot.lane.b32.xlu1 %v2262_v15, %s2099_s13  ;;  %1322 = vrot.lane.b32.xlu0 %v2265_v16, %s2099_s13 }
 0x140   : > { %1020 = vst.msk [vmem:[#allocation2 + $0x20] sm:$0x1] %vm1017_vm14, %v2091_v0 }
 0x141   : > { %870 = vst.msk [vmem:[#allocation2 + $0x3f] sm:$0x1] %vm866_vm12, %v2091_v0  ;;  %2018 = vmatmul.mubr.msk.bf16.vlgmr.msra.gmra.mxu0 %vm1510_vm6, %v1452_v51  ;;  %v896_v52 = vpop.permute.xlu1 %895  ;;  %v894_v7 = vpop.permute.xlu0 %893 }
 0x142   : > { %987 = vst.msk [vmem:[#allocation2 + $0x2f] sm:$0xfe] %vm979_vm13, %v896_v52 }
 0x143   : > { %986 = vst.msk [vmem:[#allocation2 + $0x27] sm:$0xff] %vm981_vm15, %v894_v7  ;;  %1328 = vrot.lane.b32.xlu1 %v2274_v17, %s2099_s13  ;;  %1326 = vrot.lane.b32.xlu0 %v2277_v18, %s2099_s13 }
 0x144   : > { %1021 = vst.msk [vmem:[#allocation2 + $0x30] sm:$0x1] %vm1017_vm14, %v2091_v0 }
 0x145   : > { %v1043_v15 = vpop.permute.xlu1 %1042  ;;  %v898_v53 = vpop.permute.xlu0 %897 }
 0x146   : > { %1129 = vst.msk [vmem:[#allocation2 + $0x21] sm:$0xff] %vm1014_vm0, %v1043_v15 }
 0x147   : > { %988 = vst.msk [vmem:[#allocation2 + $0x37] sm:$0xff] %vm981_vm15, %v898_v53  ;;  %641 = vrot.lane.b32.xlu1 %v2274_v17, %s2094_s24  ;;  %639 = vrot.lane.b32.xlu0 %v2277_v18, %s2094_s24 }
 0x149   : > { %v1047_v16 = vpop.permute.xlu1 %1046  ;;  %v1045_v54 = vpop.permute.xlu0 %1044 }
 0x14a   : > { %1131 = vst.msk [vmem:[#allocation2 + $0x31] sm:$0xff] %vm1014_vm0, %v1047_v16 }
 0x14b   : > { %1130 = vst.msk [vmem:[#allocation2 + $0x29] sm:$0x7f] %vm1125_vm1, %v1045_v54  ;;  %645 = vrot.lane.b32.xlu1 %v2280_v19, %s2094_s24  ;;  %643 = vrot.lane.b32.xlu0 %v2287_v20, %s2094_s24 }
 0x14d   : > { %v1167_v55 = vpop.permute.xlu1 %1166  ;;  %v1049_v56 = vpop.permute.xlu0 %1048 }
 0x14e   : > { %1252 = vst.msk [vmem:[#allocation2 + $0x20] sm:$0xff] %vm1155_vm2, %v1167_v55 }
 0x14f   : > { %1132 = vst.msk [vmem:[#allocation2 + $0x39] sm:$0x7f] %vm1125_vm1, %v1049_v56  ;;  %771 = vrot.lane.b32.xlu1 %v2274_v17, %s2095_s25  ;;  %769 = vrot.lane.b32.xlu0 %v2277_v18, %s2095_s25 }
 0x151   : > { %v1171_v57 = vpop.permute.xlu1 %1170  ;;  %v1169_v58 = vpop.permute.xlu0 %1168 }
 0x152   : > { %1254 = vst.msk [vmem:[#allocation2 + $0x30] sm:$0xff] %vm1155_vm2, %v1171_v57  ;;  %1253 = vst.msk [vmem:[#allocation2 + $0x28] sm:$0xff] %vm1155_vm2, %v1169_v58 }
 0x153   : > { %1284 = vst.msk [vmem:[#allocation2 + $0x2f] sm:$0x1] %vm1281_vm3, %v2091_v0  ;;  %775 = vrot.lane.b32.xlu1 %v2280_v19, %s2095_s25  ;;  %773 = vrot.lane.b32.xlu0 %v2287_v20, %s2095_s25 }
 0x155   : > { %v1307_v59 = vpop.permute.xlu1 %1306  ;;  %v1173_v9 = vpop.permute.xlu0 %1172 }
 0x156   : > { %1393 = vst.msk [vmem:[#allocation2 + $0x1f] sm:$0xfe] %vm1388_vm4, %v1307_v59 }
 0x157   : > { %1255 = vst.msk [vmem:[#allocation2 + $0x38] sm:$0xff] %vm1155_vm2, %v1173_v9  ;;  %917 = vrot.lane.b32.xlu1 %v2274_v17, %s2096_s26  ;;  %915 = vrot.lane.b32.xlu0 %v2277_v18, %s2096_s26 }
 0x158   : > { %1285 = vst.msk [vmem:[#allocation2 + $0x3f] sm:$0x1] %vm1281_vm3, %v2091_v0 }
 0x159   : > { %v1311_v10 = vpop.permute.xlu1 %1310  ;;  %v1309_v60 = vpop.permute.xlu0 %1308 }
 0x15a   : > { %1395 = vst.msk [vmem:[#allocation2 + $0x2f] sm:$0xfe] %vm1388_vm4, %v1311_v10 }
 0x15b   : > { %1394 = vst.msk [vmem:[#allocation2 + $0x27] sm:$0xff] %vm1278_vm5, %v1309_v60  ;;  %921 = vrot.lane.b32.xlu1 %v2280_v19, %s2096_s26  ;;  %919 = vrot.lane.b32.xlu0 %v2287_v20, %s2096_s26 }
 0x15d   : > { %v630_v61 = vpop.permute.xlu1 %629  ;;  %v1313_v62 = vpop.permute.xlu0 %1312 }
 0x15e   : > { %716 = vst.msk [vmem:[#allocation2 + $0x59] sm:$0x7f] %vm705_vm9, %v630_v61 }
 0x15f   : > { %1396 = vst.msk [vmem:[#allocation2 + $0x37] sm:$0xff] %vm1278_vm5, %v1313_v62  ;;  %1068 = vrot.lane.b32.xlu1 %v2280_v19, %s2097_s29  ;;  %1066 = vrot.lane.b32.xlu0 %v2287_v20, %s2097_s29 }
 0x161   : > { %v756_v17 = vpop.permute.xlu1 %755  ;;  %v754_v18 = vpop.permute.xlu0 %753 }
 0x162   : > { %v1423_v63 = vld [vmem:[#allocation2 + $0x20] sm:$0xff]  ;;  %v1424_v2 = vld [vmem:[#allocation2 + $0x28] sm:$0xff]  ;;  %843 = vst.msk [vmem:[#allocation2 + $0x48] sm:$0xff] %vm833_vm11, %v756_v17  ;;  %842 = vst.msk [vmem:[#allocation2 + $0x40] sm:$0xff] %vm833_vm11, %v754_v18 }
 0x163   : > { %v1453_v4 = vpack.c.bf16 %v1424_v2, %v1423_v63  ;;  %871 = vst.msk [vmem:[#allocation2 + $0x4f] sm:$0x1] %vm866_vm12, %v2091_v0  ;;  %1072 = vrot.lane.b32.xlu1 %v2290_v21, %s2097_s29  ;;  %1070 = vrot.lane.b32.xlu0 %v2293_v22, %s2097_s29 }
 0x165   : > { %2021 = vmatprep.mubr.msk.bf16.mxu0 %vm1510_vm6, %v1453_v4  ;;  %v760_v31 = vpop.permute.xlu1 %759  ;;  %v758_v32 = vpop.permute.xlu0 %757 }
 0x166   : > { %v1425_v11 = vld [vmem:[#allocation2 + $0x30] sm:$0xff]  ;;  %v1426_v12 = vld [vmem:[#allocation2 + $0x38] sm:$0xff]  ;;  %845 = vst.msk [vmem:[#allocation2 + $0x58] sm:$0xff] %vm833_vm11, %v760_v31  ;;  %844 = vst.msk [vmem:[#allocation2 + $0x50] sm:$0xff] %vm833_vm11, %v758_v32 }
 0x167   : > { %v1454_v33 = vpack.c.bf16 %v1426_v12, %v1425_v11  ;;  %872 = vst.msk [vmem:[#allocation2 + $0x5f] sm:$0x1] %vm866_vm12, %v2091_v0  ;;  %1192 = vrot.lane.b32.xlu1 %v2280_v19, %s2098_s8  ;;  %1190 = vrot.lane.b32.xlu0 %v2287_v20, %s2098_s8 }
 0x169   : > { %2022 = vmatmul.mubr.msk.bf16.gmra.mxu0 %vm1510_vm6, %v1454_v33  ;;  %v902_v1 = vpop.permute.xlu1 %901  ;;  %v900_v34 = vpop.permute.xlu0 %899 }
 0x16a   : > { %990 = vst.msk [vmem:[#allocation2 + $0x47] sm:$0xff] %vm981_vm15, %v902_v1 }
 0x16b   : > { %989 = vst.msk [vmem:[#allocation2 + $0x3f] sm:$0xfe] %vm979_vm13, %v900_v34  ;;  %1196 = vrot.lane.b32.xlu1 %v2290_v21, %s2098_s8  ;;  %1194 = vrot.lane.b32.xlu0 %v2293_v22, %s2098_s8 }
 0x16c   : > { %1022 = vst.msk [vmem:[#allocation2 + $0x40] sm:$0x1] %vm1017_vm14, %v2091_v0 }
 0x16d   : > { %v906_v35 = vpop.permute.xlu1 %905  ;;  %v904_v36 = vpop.permute.xlu0 %903 }
 0x16e   : > { %992 = vst.msk [vmem:[#allocation2 + $0x57] sm:$0xff] %vm981_vm15, %v906_v35 }
 0x16f   : > { %991 = vst.msk [vmem:[#allocation2 + $0x4f] sm:$0xfe] %vm979_vm13, %v904_v36  ;;  %1332 = vrot.lane.b32.xlu1 %v2280_v19, %s2099_s13  ;;  %1330 = vrot.lane.b32.xlu0 %v2287_v20, %s2099_s13 }
 0x170   : > { %1023 = vst.msk [vmem:[#allocation2 + $0x50] sm:$0x1] %vm1017_vm14, %v2091_v0 }
 0x171   : > { %v1053_v3 = vpop.permute.xlu1 %1052  ;;  %v1051_v37 = vpop.permute.xlu0 %1050 }
 0x172   : > { %1134 = vst.msk [vmem:[#allocation2 + $0x49] sm:$0x7f] %vm1125_vm1, %v1053_v3 }
 0x173   : > { %1133 = vst.msk [vmem:[#allocation2 + $0x41] sm:$0xff] %vm1014_vm0, %v1051_v37  ;;  %1336 = vrot.lane.b32.xlu1 %v2290_v21, %s2099_s13  ;;  %1334 = vrot.lane.b32.xlu0 %v2293_v22, %s2099_s13 }
 0x175   : > { %v1057_v38 = vpop.permute.xlu1 %1056  ;;  %v1055_v39 = vpop.permute.xlu0 %1054 }
 0x176   : > { %1136 = vst.msk [vmem:[#allocation2 + $0x59] sm:$0x7f] %vm1125_vm1, %v1057_v38 }
 0x177   : > { %1135 = vst.msk [vmem:[#allocation2 + $0x51] sm:$0xff] %vm1014_vm0, %v1055_v39  ;;  %649 = vrot.lane.b32.xlu1 %v2290_v21, %s2094_s24  ;;  %647 = vrot.lane.b32.xlu0 %v2293_v22, %s2094_s24 }
 0x179   : > { %v1177_v19 = vpop.permute.xlu1 %1176  ;;  %v1175_v20 = vpop.permute.xlu0 %1174 }
 0x17a   : > { %1257 = vst.msk [vmem:[#allocation2 + $0x48] sm:$0xff] %vm1155_vm2, %v1177_v19  ;;  %1256 = vst.msk [vmem:[#allocation2 + $0x40] sm:$0xff] %vm1155_vm2, %v1175_v20 }
 0x17b   : > { %1286 = vst.msk [vmem:[#allocation2 + $0x4f] sm:$0x1] %vm1281_vm3, %v2091_v0  ;;  %653 = vrot.lane.b32.xlu1 %v2302_v23, %s2094_s24  ;;  %651 = vrot.lane.b32.xlu0 %v2305_v24, %s2094_s24 }
 0x17d   : > { %v1181_v40 = vpop.permute.xlu1 %1180  ;;  %v1179_v13 = vpop.permute.xlu0 %1178 }
 0x17e   : > { %1259 = vst.msk [vmem:[#allocation2 + $0x58] sm:$0xff] %vm1155_vm2, %v1181_v40  ;;  %1258 = vst.msk [vmem:[#allocation2 + $0x50] sm:$0xff] %vm1155_vm2, %v1179_v13 }
 0x17f   : > { %1287 = vst.msk [vmem:[#allocation2 + $0x5f] sm:$0x1] %vm1281_vm3, %v2091_v0  ;;  %779 = vrot.lane.b32.xlu1 %v2290_v21, %s2095_s25  ;;  %777 = vrot.lane.b32.xlu0 %v2293_v22, %s2095_s25 }
 0x181   : > { %v1317_v6 = vpop.permute.xlu1 %1316  ;;  %v1315_v14 = vpop.permute.xlu0 %1314 }
 0x182   : > { %1398 = vst.msk [vmem:[#allocation2 + $0x47] sm:$0xff] %vm1278_vm5, %v1317_v6 }
 0x183   : > { %1397 = vst.msk [vmem:[#allocation2 + $0x3f] sm:$0xfe] %vm1388_vm4, %v1315_v14  ;;  %783 = vrot.lane.b32.xlu1 %v2302_v23, %s2095_s25  ;;  %781 = vrot.lane.b32.xlu0 %v2305_v24, %s2095_s25 }
 0x185   : > { %v1321_v41 = vpop.permute.xlu1 %1320  ;;  %v1319_v42 = vpop.permute.xlu0 %1318 }
 0x186   : > { %1400 = vst.msk [vmem:[#allocation2 + $0x57] sm:$0xff] %vm1278_vm5, %v1321_v41 }
 0x187   : > { %1399 = vst.msk [vmem:[#allocation2 + $0x4f] sm:$0xfe] %vm1388_vm4, %v1319_v42  ;;  %925 = vrot.lane.b32.xlu1 %v2290_v21, %s2096_s26  ;;  %923 = vrot.lane.b32.xlu0 %v2293_v22, %s2096_s26 }
 0x189   : > { %v634_v5 = vpop.permute.xlu1 %633  ;;  %v632_v43 = vpop.permute.xlu0 %631  ;;  %v1428_v45 = vld [vmem:[#allocation2 + $0x48] sm:$0xff] }
 0x18a   : > { %v1427_v44 = vld [vmem:[#allocation2 + $0x40] sm:$0xff]  ;;  %718 = vst.msk [vmem:[#allocation2 + $0x69] sm:$0x7f] %vm705_vm9, %v634_v5 }
 0x18b   : > { %717 = vst.msk [vmem:[#allocation2 + $0x61] sm:$0xff] %vm703_vm10, %v632_v43  ;;  %v1455_v46 = vpack.c.bf16 %v1428_v45, %v1427_v44  ;;  %929 = vrot.lane.b32.xlu1 %v2302_v23, %s2096_s26  ;;  %927 = vrot.lane.b32.xlu0 %v2305_v24, %s2096_s26 }
 0x18d   : > { %2025 = vmatprep.mubr.msk.bf16.mxu0 %vm1510_vm6, %v1455_v46  ;;  %v638_v21 = vpop.permute.xlu1 %637  ;;  %v636_v47 = vpop.permute.xlu0 %635  ;;  %v1430_v48 = vld [vmem:[#allocation2 + $0x58] sm:$0xff] }
 0x18e   : > { %v1429_v22 = vld [vmem:[#allocation2 + $0x50] sm:$0xff]  ;;  %720 = vst.msk [vmem:[#allocation2 + $0x79] sm:$0x7f] %vm705_vm9, %v638_v21 }
 0x18f   : > { %719 = vst.msk [vmem:[#allocation2 + $0x71] sm:$0xff] %vm703_vm10, %v636_v47  ;;  %v1456_v49 = vpack.c.bf16 %v1430_v48, %v1429_v22  ;;  %1076 = vrot.lane.b32.xlu1 %v2302_v23, %s2097_s29  ;;  %1074 = vrot.lane.b32.xlu0 %v2305_v24, %s2097_s29 }
 0x191   : > { %2026 = vmatmul.mubr.msk.bf16.gmra.mxu0 %vm1510_vm6, %v1456_v49  ;;  %v764_v50 = vpop.permute.xlu1 %763  ;;  %v762_v8 = vpop.permute.xlu0 %761 }
 0x192   : > { %847 = vst.msk [vmem:[#allocation2 + $0x68] sm:$0xff] %vm833_vm11, %v764_v50  ;;  %846 = vst.msk [vmem:[#allocation2 + $0x60] sm:$0xff] %vm833_vm11, %v762_v8 }
 0x193   : > { %873 = vst.msk [vmem:[#allocation2 + $0x6f] sm:$0x1] %vm866_vm12, %v2091_v0  ;;  %1080 = vrot.lane.b32.xlu1 %v2308_v25, %s2097_s29  ;;  %1078 = vrot.lane.b32.xlu0 %v2321_v26, %s2097_s29 }
 0x195   : > { %v768_v51 = vpop.permute.xlu1 %767  ;;  %v766_v52 = vpop.permute.xlu0 %765 }
 0x196   : > { %849 = vst.msk [vmem:[#allocation2 + $0x78] sm:$0xff] %vm833_vm11, %v768_v51  ;;  %848 = vst.msk [vmem:[#allocation2 + $0x70] sm:$0xff] %vm833_vm11, %v766_v52 }
 0x197   : > { %874 = vst.msk [vmem:[#allocation2 + $0x7f] sm:$0x1] %vm866_vm12, %v2091_v0  ;;  %1200 = vrot.lane.b32.xlu1 %v2302_v23, %s2098_s8  ;;  %1198 = vrot.lane.b32.xlu0 %v2305_v24, %s2098_s8 }
 0x199   : > { %v910_v7 = vpop.permute.xlu1 %909  ;;  %v908_v15 = vpop.permute.xlu0 %907 }
 0x19a   : > { %994 = vst.msk [vmem:[#allocation2 + $0x67] sm:$0xff] %vm981_vm15, %v910_v7 }
 0x19b   : > { %993 = vst.msk [vmem:[#allocation2 + $0x5f] sm:$0xfe] %vm979_vm13, %v908_v15  ;;  %1204 = vrot.lane.b32.xlu1 %v2308_v25, %s2098_s8  ;;  %1202 = vrot.lane.b32.xlu0 %v2321_v26, %s2098_s8 }
 0x19c   : > { %1024 = vst.msk [vmem:[#allocation2 + $0x60] sm:$0x1] %vm1017_vm14, %v2091_v0 }
 0x19d   : > { %v914_v53 = vpop.permute.xlu1 %913  ;;  %v912_v16 = vpop.permute.xlu0 %911 }
 0x19e   : > { %996 = vst.msk [vmem:[#allocation2 + $0x77] sm:$0xff] %vm981_vm15, %v914_v53 }
 0x19f   : > { %995 = vst.msk [vmem:[#allocation2 + $0x6f] sm:$0xfe] %vm979_vm13, %v912_v16  ;;  %1340 = vrot.lane.b32.xlu1 %v2302_v23, %s2099_s13  ;;  %1338 = vrot.lane.b32.xlu0 %v2305_v24, %s2099_s13  ;;  %v3175_v16 = vld [vmem:[%s3359_s2] ss:$0 sm:$0xff] }
 0x1a0   : > { %1025 = vst.msk [vmem:[#allocation2 + $0x70] sm:$0x1] %vm1017_vm14, %v2091_v0 }
 0x1a1   : > { %v1061_v54 = vpop.permute.xlu1 %1060  ;;  %v1059_v55 = vpop.permute.xlu0 %1058 }
 0x1a2   : > { %1138 = vst.msk [vmem:[#allocation2 + $0x69] sm:$0x7f] %vm1125_vm1, %v1061_v54 }
 0x1a3   : > { %1137 = vst.msk [vmem:[#allocation2 + $0x61] sm:$0xff] %vm1014_vm0, %v1059_v55  ;;  %1344 = vrot.lane.b32.xlu1 %v2308_v25, %s2099_s13  ;;  %1342 = vrot.lane.b32.xlu0 %v2321_v26, %s2099_s13 }
 0x1a5   : > { %v1065_v56 = vpop.permute.xlu1 %1064  ;;  %v1063_v57 = vpop.permute.xlu0 %1062 }
 0x1a6   : > { %1140 = vst.msk [vmem:[#allocation2 + $0x79] sm:$0x7f] %vm1125_vm1, %v1065_v56 }
 0x1a7   : > { %1139 = vst.msk [vmem:[#allocation2 + $0x71] sm:$0xff] %vm1014_vm0, %v1063_v57  ;;  %657 = vrot.lane.b32.xlu1 %v2308_v25, %s2094_s24  ;;  %655 = vrot.lane.b32.xlu0 %v2321_v26, %s2094_s24 }
 0x1a9   : > { %v1185_v23 = vpop.permute.xlu1 %1184  ;;  %v1183_v24 = vpop.permute.xlu0 %1182 }
 0x1aa   : > { %1261 = vst.msk [vmem:[#allocation2 + $0x68] sm:$0xff] %vm1155_vm2, %v1185_v23  ;;  %1260 = vst.msk [vmem:[#allocation2 + $0x60] sm:$0xff] %vm1155_vm2, %v1183_v24 }
 0x1ab   : > { %1288 = vst.msk [vmem:[#allocation2 + $0x6f] sm:$0x1] %vm1281_vm3, %v2091_v0  ;;  %661 = vrot.lane.b32.xlu1 %v2324_v27, %s2094_s24  ;;  %659 = vrot.lane.b32.xlu0 %v2333_v28, %s2094_s24 }
 0x1ad   : > { %v1189_v58 = vpop.permute.xlu1 %1188  ;;  %v1187_v59 = vpop.permute.xlu0 %1186 }
 0x1ae   : > { %1263 = vst.msk [vmem:[#allocation2 + $0x78] sm:$0xff] %vm1155_vm2, %v1189_v58  ;;  %1262 = vst.msk [vmem:[#allocation2 + $0x70] sm:$0xff] %vm1155_vm2, %v1187_v59 }
 0x1af   : > { %1289 = vst.msk [vmem:[#allocation2 + $0x7f] sm:$0x1] %vm1281_vm3, %v2091_v0  ;;  %787 = vrot.lane.b32.xlu1 %v2308_v25, %s2095_s25  ;;  %785 = vrot.lane.b32.xlu0 %v2321_v26, %s2095_s25 }
 0x1b1   : > { %v1325_v9 = vpop.permute.xlu1 %1324  ;;  %v1323_v10 = vpop.permute.xlu0 %1322 }
 0x1b2   : > { %1402 = vst.msk [vmem:[#allocation2 + $0x67] sm:$0xff] %vm1278_vm5, %v1325_v9 }
 0x1b3   : > { %1401 = vst.msk [vmem:[#allocation2 + $0x5f] sm:$0xfe] %vm1388_vm4, %v1323_v10  ;;  %791 = vrot.lane.b32.xlu1 %v2324_v27, %s2095_s25  ;;  %789 = vrot.lane.b32.xlu0 %v2333_v28, %s2095_s25 }
 0x1b5   : > { %v1329_v60 = vpop.permute.xlu1 %1328  ;;  %v1327_v61 = vpop.permute.xlu0 %1326 }
 0x1b6   : > { %1404 = vst.msk [vmem:[#allocation2 + $0x77] sm:$0xff] %vm1278_vm5, %v1329_v60 }
 0x1b7   : > { %1403 = vst.msk [vmem:[#allocation2 + $0x6f] sm:$0xfe] %vm1388_vm4, %v1327_v61  ;;  %933 = vrot.lane.b32.xlu1 %v2308_v25, %s2096_s26  ;;  %931 = vrot.lane.b32.xlu0 %v2321_v26, %s2096_s26 }
 0x1b9   : > { %v642_v62 = vpop.permute.xlu1 %641  ;;  %v640_v17 = vpop.permute.xlu0 %639  ;;  %v1432_v63 = vld [vmem:[#allocation2 + $0x68] sm:$0xff] }
 0x1ba   : > { %v1431_v18 = vld [vmem:[#allocation2 + $0x60] sm:$0xff]  ;;  %722 = vst.msk [vmem:[#allocation2 + $0x89] sm:$0x7f] %vm705_vm9, %v642_v62 }
 0x1bb   : > { %721 = vst.msk [vmem:[#allocation2 + $0x81] sm:$0xff] %vm703_vm10, %v640_v17  ;;  %v1457_v2 = vpack.c.bf16 %v1432_v63, %v1431_v18  ;;  %937 = vrot.lane.b32.xlu1 %v2324_v27, %s2096_s26  ;;  %935 = vrot.lane.b32.xlu0 %v2333_v28, %s2096_s26 }
 0x1bd   : > { %2029 = vmatprep.mubr.msk.bf16.mxu0 %vm1510_vm6, %v1457_v2  ;;  %v646_v25 = vpop.permute.xlu1 %645  ;;  %v644_v4 = vpop.permute.xlu0 %643  ;;  %v1434_v31 = vld [vmem:[#allocation2 + $0x78] sm:$0xff] }
 0x1be   : > { %v1433_v26 = vld [vmem:[#allocation2 + $0x70] sm:$0xff]  ;;  %724 = vst.msk [vmem:[#allocation2 + $0x99] sm:$0x7f] %vm705_vm9, %v646_v25 }
 0x1bf   : > { %723 = vst.msk [vmem:[#allocation2 + $0x91] sm:$0xff] %vm703_vm10, %v644_v4  ;;  %v1458_v32 = vpack.c.bf16 %v1434_v31, %v1433_v26  ;;  %1084 = vrot.lane.b32.xlu1 %v2324_v27, %s2097_s29  ;;  %1082 = vrot.lane.b32.xlu0 %v2333_v28, %s2097_s29 }
 0x1c1   : > { %2030 = vmatmul.mubr.msk.bf16.gmra.mxu0 %vm1510_vm6, %v1458_v32  ;;  %v772_v11 = vpop.permute.xlu1 %771  ;;  %v770_v12 = vpop.permute.xlu0 %769 }
 0x1c2   : > { %851 = vst.msk [vmem:[#allocation2 + $0x88] sm:$0xff] %vm833_vm11, %v772_v11  ;;  %850 = vst.msk [vmem:[#allocation2 + $0x80] sm:$0xff] %vm833_vm11, %v770_v12 }
 0x1c3   : > { %875 = vst.msk [vmem:[#allocation2 + $0x8f] sm:$0x1] %vm866_vm12, %v2091_v0  ;;  %1088 = vrot.lane.b32.xlu1 %v2336_v29, %s2097_s29  ;;  %1086 = vrot.lane.b32.xlu0 %v2339_v30, %s2097_s29 }
 0x1c5   : > { %v776_v33 = vpop.permute.xlu1 %775  ;;  %v774_v1 = vpop.permute.xlu0 %773 }
 0x1c6   : > { %853 = vst.msk [vmem:[#allocation2 + $0x98] sm:$0xff] %vm833_vm11, %v776_v33  ;;  %852 = vst.msk [vmem:[#allocation2 + $0x90] sm:$0xff] %vm833_vm11, %v774_v1 }
 0x1c7   : > { %876 = vst.msk [vmem:[#allocation2 + $0x9f] sm:$0x1] %vm866_vm12, %v2091_v0  ;;  %1208 = vrot.lane.b32.xlu1 %v2324_v27, %s2098_s8  ;;  %1206 = vrot.lane.b32.xlu0 %v2333_v28, %s2098_s8 }
 0x1c9   : > { %v918_v34 = vpop.permute.xlu1 %917  ;;  %v916_v35 = vpop.permute.xlu0 %915 }
 0x1ca   : > { %998 = vst.msk [vmem:[#allocation2 + $0x87] sm:$0xff] %vm981_vm15, %v918_v34 }
 0x1cb   : > { %997 = vst.msk [vmem:[#allocation2 + $0x7f] sm:$0xfe] %vm979_vm13, %v916_v35  ;;  %1212 = vrot.lane.b32.xlu1 %v2336_v29, %s2098_s8  ;;  %1210 = vrot.lane.b32.xlu0 %v2339_v30, %s2098_s8 }
 0x1cc   : > { %1026 = vst.msk [vmem:[#allocation2 + $0x80] sm:$0x1] %vm1017_vm14, %v2091_v0 }
 0x1cd   : > { %v922_v36 = vpop.permute.xlu1 %921  ;;  %v920_v3 = vpop.permute.xlu0 %919 }
 0x1ce   : > { %1000 = vst.msk [vmem:[#allocation2 + $0x97] sm:$0xff] %vm981_vm15, %v922_v36 }
 0x1cf   : > { %999 = vst.msk [vmem:[#allocation2 + $0x8f] sm:$0xfe] %vm979_vm13, %v920_v3  ;;  %1348 = vrot.lane.b32.xlu1 %v2324_v27, %s2099_s13  ;;  %1346 = vrot.lane.b32.xlu0 %v2333_v28, %s2099_s13  ;;  %v241_v27 = vld [vmem:[%s2187_s21 + $0xf8] sm:$0xff]  ;;  %v240_v28 = vld [vmem:[%s2187_s21 + $0xf0] sm:$0xff]  ;;  %s3184_s21 = scalar_lea.vmem %s3360_s3, %s1984_s18  ;;  %s1959_s18 = sshll.u32 %s3364_s16, 1 }
 0x1d0   : > { %1027 = vst.msk [vmem:[#allocation2 + $0x90] sm:$0x1] %vm1017_vm14, %v2091_v0 }
 0x1d1   : > { %v1069_v37 = vpop.permute.xlu1 %1068  ;;  %v1067_v38 = vpop.permute.xlu0 %1066 }
 0x1d2   : > { %1142 = vst.msk [vmem:[#allocation2 + $0x89] sm:$0x7f] %vm1125_vm1, %v1069_v37 }
 0x1d3   : > { %1141 = vst.msk [vmem:[#allocation2 + $0x81] sm:$0xff] %vm1014_vm0, %v1067_v38  ;;  %1352 = vrot.lane.b32.xlu1 %v2336_v29, %s2099_s13  ;;  %1350 = vrot.lane.b32.xlu0 %v2339_v30, %s2099_s13 }
 0x1d5   : > { %v1073_v39 = vpop.permute.xlu1 %1072  ;;  %v1071_v19 = vpop.permute.xlu0 %1070 }
 0x1d6   : > { %1144 = vst.msk [vmem:[#allocation2 + $0x99] sm:$0x7f] %vm1125_vm1, %v1073_v39 }
 0x1d7   : > { %1143 = vst.msk [vmem:[#allocation2 + $0x91] sm:$0xff] %vm1014_vm0, %v1071_v19  ;;  %665 = vrot.lane.b32.xlu1 %v2336_v29, %s2094_s24  ;;  %663 = vrot.lane.b32.xlu0 %v2339_v30, %s2094_s24 }
 0x1d9   : > { %v1193_v20 = vpop.permute.xlu1 %1192  ;;  %v1191_v40 = vpop.permute.xlu0 %1190 }
 0x1da   : > { %1265 = vst.msk [vmem:[#allocation2 + $0x88] sm:$0xff] %vm1155_vm2, %v1193_v20  ;;  %1264 = vst.msk [vmem:[#allocation2 + $0x80] sm:$0xff] %vm1155_vm2, %v1191_v40 }
 0x1db   : > { %1290 = vst.msk [vmem:[#allocation2 + $0x8f] sm:$0x1] %vm1281_vm3, %v2091_v0  ;;  %669 = vrot.lane.b32.xlu1 %v241_v27, %s2094_s24  ;;  %667 = vrot.lane.b32.xlu0 %v240_v28, %s2094_s24  ;;  %s208_s24 = scalar_lea.vmem %s3361_s4, %s1959_s18 }
 0x1dd   : > { %v1197_v13 = vpop.permute.xlu1 %1196  ;;  %v1195_v6 = vpop.permute.xlu0 %1194 }
 0x1de   : > { %1267 = vst.msk [vmem:[#allocation2 + $0x98] sm:$0xff] %vm1155_vm2, %v1197_v13  ;;  %1266 = vst.msk [vmem:[#allocation2 + $0x90] sm:$0xff] %vm1155_vm2, %v1195_v6 }
 0x1df   : > { %1291 = vst.msk [vmem:[#allocation2 + $0x9f] sm:$0x1] %vm1281_vm3, %v2091_v0  ;;  %795 = vrot.lane.b32.xlu1 %v2336_v29, %s2095_s25  ;;  %793 = vrot.lane.b32.xlu0 %v2339_v30, %s2095_s25 }
 0x1e1   : > { %v1333_v14 = vpop.permute.xlu1 %1332  ;;  %v1331_v41 = vpop.permute.xlu0 %1330 }
 0x1e2   : > { %1406 = vst.msk [vmem:[#allocation2 + $0x87] sm:$0xff] %vm1278_vm5, %v1333_v14 }
 0x1e3   : > { %1405 = vst.msk [vmem:[#allocation2 + $0x7f] sm:$0xfe] %vm1388_vm4, %v1331_v41  ;;  %799 = vrot.lane.b32.xlu1 %v241_v27, %s2095_s25  ;;  %797 = vrot.lane.b32.xlu0 %v240_v28, %s2095_s25 }
 0x1e5   : > { %v1337_v42 = vpop.permute.xlu1 %1336  ;;  %v1335_v5 = vpop.permute.xlu0 %1334 }
 0x1e6   : > { %1408 = vst.msk [vmem:[#allocation2 + $0x97] sm:$0xff] %vm1278_vm5, %v1337_v42 }
 0x1e7   : > { %1407 = vst.msk [vmem:[#allocation2 + $0x8f] sm:$0xfe] %vm1388_vm4, %v1335_v5  ;;  %941 = vrot.lane.b32.xlu1 %v2336_v29, %s2096_s26  ;;  %939 = vrot.lane.b32.xlu0 %v2339_v30, %s2096_s26 }
 0x1e9   : > { %v650_v43 = vpop.permute.xlu1 %649  ;;  %v648_v44 = vpop.permute.xlu0 %647  ;;  %v1436_v46 = vld [vmem:[#allocation2 + $0x88] sm:$0xff] }
 0x1ea   : > { %v1435_v45 = vld [vmem:[#allocation2 + $0x80] sm:$0xff]  ;;  %726 = vst.msk [vmem:[#allocation2 + $0xa9] sm:$0x7f] %vm705_vm9, %v650_v43 }
 0x1eb   : > { %725 = vst.msk [vmem:[#allocation2 + $0xa1] sm:$0xff] %vm703_vm10, %v648_v44  ;;  %v1459_v21 = vpack.c.bf16 %v1436_v46, %v1435_v45  ;;  %945 = vrot.lane.b32.xlu1 %v241_v27, %s2096_s26  ;;  %943 = vrot.lane.b32.xlu0 %v240_v28, %s2096_s26 }
 0x1ed   : > { %2033 = vmatprep.mubr.msk.bf16.mxu1 %vm1510_vm6, %v1459_v21  ;;  %v654_v47 = vpop.permute.xlu1 %653  ;;  %v652_v29 = vpop.permute.xlu0 %651  ;;  %v1438_v48 = vld [vmem:[#allocation2 + $0x98] sm:$0xff] }
 0x1ee   : > { %v1437_v22 = vld [vmem:[#allocation2 + $0x90] sm:$0xff]  ;;  %728 = vst.msk [vmem:[#allocation2 + $0xb9] sm:$0x7f] %vm705_vm9, %v654_v47 }
 0x1ef   : > { %727 = vst.msk [vmem:[#allocation2 + $0xb1] sm:$0xff] %vm703_vm10, %v652_v29  ;;  %v1460_v30 = vpack.c.bf16 %v1438_v48, %v1437_v22  ;;  %1092 = vrot.lane.b32.xlu1 %v241_v27, %s2097_s29  ;;  %1090 = vrot.lane.b32.xlu0 %v240_v28, %s2097_s29 }
 0x1f1   : > { %2034 = vmatmul.mubr.msk.bf16.vlgmr.msra.gmra.mxu1 %vm1510_vm6, %v1460_v30  ;;  %v780_v49 = vpop.permute.xlu1 %779  ;;  %v778_v50 = vpop.permute.xlu0 %777 }
 0x1f2   : > { %855 = vst.msk [vmem:[#allocation2 + $0xa8] sm:$0xff] %vm833_vm11, %v780_v49  ;;  %854 = vst.msk [vmem:[#allocation2 + $0xa0] sm:$0xff] %vm833_vm11, %v778_v50 }
 0x1f3   : > { %877 = vst.msk [vmem:[#allocation2 + $0xaf] sm:$0x1] %vm866_vm12, %v2091_v0  ;;  %1216 = vrot.lane.b32.xlu1 %v241_v27, %s2098_s8  ;;  %1214 = vrot.lane.b32.xlu0 %v240_v28, %s2098_s8 }
 0x1f5   : > { %v784_v8 = vpop.permute.xlu1 %783  ;;  %v782_v51 = vpop.permute.xlu0 %781 }
 0x1f6   : > { %857 = vst.msk [vmem:[#allocation2 + $0xb8] sm:$0xff] %vm833_vm11, %v784_v8  ;;  %856 = vst.msk [vmem:[#allocation2 + $0xb0] sm:$0xff] %vm833_vm11, %v782_v51 }
 0x1f7   : > { %878 = vst.msk [vmem:[#allocation2 + $0xbf] sm:$0x1] %vm866_vm12, %v2091_v0  ;;  %1356 = vrot.lane.b32.xlu1 %v241_v27, %s2099_s13  ;;  %1354 = vrot.lane.b32.xlu0 %v240_v28, %s2099_s13 }
 0x1f9   : > { %v926_v52 = vpop.permute.xlu1 %925  ;;  %v924_v7 = vpop.permute.xlu0 %923 }
 0x1fa   : > { %1002 = vst.msk [vmem:[#allocation2 + $0xa7] sm:$0xff] %vm981_vm15, %v926_v52 }
 0x1fb   : > { %1001 = vst.msk [vmem:[#allocation2 + $0x9f] sm:$0xfe] %vm979_vm13, %v924_v7 }
 0x1fc   : > { %1028 = vst.msk [vmem:[#allocation2 + $0xa0] sm:$0x1] %vm1017_vm14, %v2091_v0 }
 0x1fd   : > { %v930_v15 = vpop.permute.xlu1 %929  ;;  %v928_v53 = vpop.permute.xlu0 %927 }
 0x1fe   : > { %1004 = vst.msk [vmem:[#allocation2 + $0xb7] sm:$0xff] %vm981_vm15, %v930_v15 }
 0x1ff   : > { %1003 = vst.msk [vmem:[#allocation2 + $0xaf] sm:$0xfe] %vm979_vm13, %v928_v53 }
 0x200   : > { %1029 = vst.msk [vmem:[#allocation2 + $0xb0] sm:$0x1] %vm1017_vm14, %v2091_v0 }
 0x201   : > { %v2019_v54 = vpop.f32.mrf.mxu0  ;;  %v1077_v56 = vpop.permute.xlu1 %1076 }
 0x202   : > { %v1606_v55 = vadd.f32 %v2019_v54, %v3175_v16  ;;  %v1075_v57 = vpop.permute.xlu0 %1074  ;;  %1146 = vst.msk [vmem:[#allocation2 + $0xa9] sm:$0x7f] %vm1125_vm1, %v1077_v56 }
 0x203   : > { %1145 = vst.msk [vmem:[#allocation2 + $0xa1] sm:$0xff] %vm1014_vm0, %v1075_v57  ;;  %v1597_v23 = vpop.f32.mrf.mxu0 }
 0x204   : > { %1834 = vst [vmem:[%s3184_s21 + $0x10] sm:$0xff] %v1606_v55  ;;  %v1598_v24 = vadd.f32 %v3175_v16, %v1597_v23  ;;  %v1764_v25 = vmul.f32 %v1606_v55, %v1606_v55 }
 0x205   : > { %v2020_v58 = vpop.f32.mrf.mxu0  ;;  %v1081_v9 = vpop.permute.xlu1 %1080 }
 0x206   : > { %1832 = vst [vmem:[%s3184_s21] sm:$0xff] %v1598_v24  ;;  %v1609_v59 = vadd.f32 %v2020_v58, %v3175_v16  ;;  %v1079_v10 = vpop.permute.xlu0 %1078  ;;  %1148 = vst.msk [vmem:[#allocation2 + $0xb9] sm:$0x7f] %vm1125_vm1, %v1081_v9  ;;  %v1762_v62 = vmul.f32 %v1598_v24, %v1598_v24 }
 0x207   : > { %1147 = vst.msk [vmem:[#allocation2 + $0xb1] sm:$0xff] %vm1014_vm0, %v1079_v10  ;;  %v1600_v60 = vpop.f32.mrf.mxu0 }
 0x208   : > { %1835 = vst [vmem:[%s3184_s21 + $0x18] sm:$0xff] %v1609_v59  ;;  %v1601_v61 = vadd.f32 %v3175_v16, %v1600_v60  ;;  %v1765_v31 = vmul.f32 %v1609_v59, %v1609_v59 }
 0x209   : > { %v1201_v63 = vpop.permute.xlu1 %1200 }
 0x20a   : > { %v1724_v17 = vadd.f32 %v1601_v61, %v1598_v24  ;;  %v1763_v18 = vmul.f32 %v1601_v61, %v1601_v61  ;;  %1833 = vst [vmem:[%s3184_s21 + $0x8] sm:$0xff] %v1601_v61  ;;  %v1199_v2 = vpop.permute.xlu0 %1198  ;;  %1269 = vst.msk [vmem:[#allocation2 + $0xa8] sm:$0xff] %vm1155_vm2, %v1201_v63 }
 0x20b   : > { %1268 = vst.msk [vmem:[#allocation2 + $0xa0] sm:$0xff] %vm1155_vm2, %v1199_v2 }
 0x20c   : > { %v1725_v4 = vadd.f32 %v1724_v17, %v1606_v55  ;;  %v1794_v26 = vadd.f32 %v1763_v18, %v1762_v62  ;;  %1292 = vst.msk [vmem:[#allocation2 + $0xaf] sm:$0x1] %vm1281_vm3, %v2091_v0 }
 0x20d   : > { %v1205_v11 = vpop.permute.xlu1 %1204 }
 0x20e   : > { %v1795_v32 = vadd.f32 %v1794_v26, %v1764_v25  ;;  %v1203_v12 = vpop.permute.xlu0 %1202  ;;  %v1726_v33 = vadd.f32 %v1725_v4, %v1609_v59  ;;  %1271 = vst.msk [vmem:[#allocation2 + $0xb8] sm:$0xff] %vm1155_vm2, %v1205_v11 }
 0x20f   : > { %1270 = vst.msk [vmem:[#allocation2 + $0xb0] sm:$0xff] %vm1155_vm2, %v1203_v12 }
 0x210   : > { %1293 = vst.msk [vmem:[#allocation2 + $0xbf] sm:$0x1] %vm1281_vm3, %v2091_v0  ;;  %v1796_v1 = vadd.f32 %v1795_v32, %v1765_v31 }
 0x211   : > { %v1341_v34 = vpop.permute.xlu1 %1340 }
 0x212   : > { %v1339_v35 = vpop.permute.xlu0 %1338  ;;  %1410 = vst.msk [vmem:[#allocation2 + $0xa7] sm:$0xff] %vm1278_vm5, %v1341_v34 }
 0x213   : > { %1409 = vst.msk [vmem:[#allocation2 + $0x9f] sm:$0xfe] %vm1388_vm4, %v1339_v35 }
 0x215   : > { %v1345_v36 = vpop.permute.xlu1 %1344 }
 0x216   : > { %v1343_v3 = vpop.permute.xlu0 %1342  ;;  %1412 = vst.msk [vmem:[#allocation2 + $0xb7] sm:$0xff] %vm1278_vm5, %v1345_v36 }
 0x217   : > { %1411 = vst.msk [vmem:[#allocation2 + $0xaf] sm:$0xfe] %vm1388_vm4, %v1343_v3 }
 0x219   : > { %v658_v37 = vpop.permute.xlu1 %657  ;;  %v1440_v19 = vld [vmem:[#allocation2 + $0xa8] sm:$0xff] }
 0x21a   : > { %v656_v38 = vpop.permute.xlu0 %655  ;;  %v1439_v39 = vld [vmem:[#allocation2 + $0xa0] sm:$0xff]  ;;  %730 = vst.msk [vmem:[#allocation2 + $0xc9] sm:$0x7f] %vm705_vm9, %v658_v37 }
 0x21b   : > { %729 = vst.msk [vmem:[#allocation2 + $0xc1] sm:$0xff] %vm703_vm10, %v656_v38  ;;  %v1461_v27 = vpack.c.bf16 %v1440_v19, %v1439_v39 }
 0x21d   : > { %2037 = vmatprep.mubr.msk.bf16.mxu1 %vm1510_vm6, %v1461_v27  ;;  %v662_v28 = vpop.permute.xlu1 %661  ;;  %v1442_v13 = vld [vmem:[#allocation2 + $0xb8] sm:$0xff] }
 0x21e   : > { %v660_v20 = vpop.permute.xlu0 %659  ;;  %v1441_v40 = vld [vmem:[#allocation2 + $0xb0] sm:$0xff]  ;;  %732 = vst.msk [vmem:[#allocation2 + $0xd9] sm:$0x7f] %vm705_vm9, %v662_v28 }
 0x21f   : > { %731 = vst.msk [vmem:[#allocation2 + $0xd1] sm:$0xff] %vm703_vm10, %v660_v20  ;;  %v1462_v6 = vpack.c.bf16 %v1442_v13, %v1441_v40 }
 0x221   : > { %2038 = vmatmul.mubr.msk.bf16.gmra.mxu1 %vm1510_vm6, %v1462_v6  ;;  %v788_v14 = vpop.permute.xlu1 %787 }
 0x222   : > { %v786_v41 = vpop.permute.xlu0 %785  ;;  %859 = vst.msk [vmem:[#allocation2 + $0xc8] sm:$0xff] %vm833_vm11, %v788_v14 }
 0x223   : > { %858 = vst.msk [vmem:[#allocation2 + $0xc0] sm:$0xff] %vm833_vm11, %v786_v41 }
 0x224   : > { %879 = vst.msk [vmem:[#allocation2 + $0xcf] sm:$0x1] %vm866_vm12, %v2091_v0 }
 0x225   : > { %v792_v42 = vpop.permute.xlu1 %791 }
 0x226   : > { %v790_v5 = vpop.permute.xlu0 %789  ;;  %861 = vst.msk [vmem:[#allocation2 + $0xd8] sm:$0xff] %vm833_vm11, %v792_v42 }
 0x227   : > { %860 = vst.msk [vmem:[#allocation2 + $0xd0] sm:$0xff] %vm833_vm11, %v790_v5 }
 0x228   : > { %880 = vst.msk [vmem:[#allocation2 + $0xdf] sm:$0x1] %vm866_vm12, %v2091_v0 }
 0x229   : > { %v2023_v43 = vpop.f32.mrf.mxu0  ;;  %v934_v45 = vpop.permute.xlu1 %933 }
 0x22a   : > { %v1622_v44 = vadd.f32 %v2023_v43, %v3175_v16  ;;  %v932_v46 = vpop.permute.xlu0 %931  ;;  %1006 = vst.msk [vmem:[#allocation2 + $0xc7] sm:$0xff] %vm981_vm15, %v934_v45 }
 0x22b   : > { %1005 = vst.msk [vmem:[#allocation2 + $0xbf] sm:$0xfe] %vm979_vm13, %v932_v46  ;;  %v1613_v21 = vpop.f32.mrf.mxu0 }
 0x22c   : > { %1838 = vst [vmem:[%s3184_s21 + $0x30] sm:$0xff] %v1622_v44  ;;  %1030 = vst.msk [vmem:[#allocation2 + $0xc0] sm:$0x1] %vm1017_vm14, %v2091_v0  ;;  %v1614_v47 = vadd.f32 %v3175_v16, %v1613_v21  ;;  %v1768_v55 = vmul.f32 %v1622_v44, %v1622_v44 }
 0x22d   : > { %v2024_v29 = vpop.f32.mrf.mxu0  ;;  %v938_v49 = vpop.permute.xlu1 %937 }
 0x22e   : > { %v1727_v22 = vadd.f32 %v1726_v33, %v1614_v47  ;;  %v1766_v48 = vmul.f32 %v1614_v47, %v1614_v47  ;;  %1836 = vst [vmem:[%s3184_s21 + $0x20] sm:$0xff] %v1614_v47  ;;  %v1625_v30 = vadd.f32 %v2024_v29, %v3175_v16  ;;  %v936_v50 = vpop.permute.xlu0 %935  ;;  %1008 = vst.msk [vmem:[#allocation2 + $0xd7] sm:$0xff] %vm981_vm15, %v938_v49 }
 0x22f   : > { %1007 = vst.msk [vmem:[#allocation2 + $0xcf] sm:$0xfe] %vm979_vm13, %v936_v50  ;;  %v1616_v8 = vpop.f32.mrf.mxu0 }
 0x230   : > { %v1797_v51 = vadd.f32 %v1796_v1, %v1766_v48  ;;  %1839 = vst [vmem:[%s3184_s21 + $0x38] sm:$0xff] %v1625_v30  ;;  %1031 = vst.msk [vmem:[#allocation2 + $0xd0] sm:$0x1] %vm1017_vm14, %v2091_v0  ;;  %v1617_v52 = vadd.f32 %v3175_v16, %v1616_v8  ;;  %v1769_v23 = vmul.f32 %v1625_v30, %v1625_v30 }
 0x231   : > { %v1085_v53 = vpop.permute.xlu1 %1084 }
 0x232   : > { %v1728_v7 = vadd.f32 %v1727_v22, %v1617_v52  ;;  %v1767_v15 = vmul.f32 %v1617_v52, %v1617_v52  ;;  %1837 = vst [vmem:[%s3184_s21 + $0x28] sm:$0xff] %v1617_v52  ;;  %v1083_v54 = vpop.permute.xlu0 %1082  ;;  %1150 = vst.msk [vmem:[#allocation2 + $0xc9] sm:$0x7f] %vm1125_vm1, %v1085_v53 }
 0x233   : > { %1149 = vst.msk [vmem:[#allocation2 + $0xc1] sm:$0xff] %vm1014_vm0, %v1083_v54 }
 0x234   : > { %v1729_v56 = vadd.f32 %v1728_v7, %v1622_v44  ;;  %v1798_v57 = vadd.f32 %v1797_v51, %v1767_v15 }
 0x235   : > { %v1089_v58 = vpop.permute.xlu1 %1088 }
 0x236   : > { %v1799_v24 = vadd.f32 %v1798_v57, %v1768_v55  ;;  %v1087_v59 = vpop.permute.xlu0 %1086  ;;  %v1730_v9 = vadd.f32 %v1729_v56, %v1625_v30  ;;  %1152 = vst.msk [vmem:[#allocation2 + $0xd9] sm:$0x7f] %vm1125_vm1, %v1089_v58 }
 0x237   : > { %1151 = vst.msk [vmem:[#allocation2 + $0xd1] sm:$0xff] %vm1014_vm0, %v1087_v59 }
 0x238   : > { %v1800_v10 = vadd.f32 %v1799_v24, %v1769_v23 }
 0x239   : > { %v1209_v60 = vpop.permute.xlu1 %1208 }
 0x23a   : > { %v1207_v61 = vpop.permute.xlu0 %1206  ;;  %1273 = vst.msk [vmem:[#allocation2 + $0xc8] sm:$0xff] %vm1155_vm2, %v1209_v60 }
 0x23b   : > { %1272 = vst.msk [vmem:[#allocation2 + $0xc0] sm:$0xff] %vm1155_vm2, %v1207_v61 }
 0x23c   : > { %1294 = vst.msk [vmem:[#allocation2 + $0xcf] sm:$0x1] %vm1281_vm3, %v2091_v0 }
 0x23d   : > { %v1213_v62 = vpop.permute.xlu1 %1212 }
 0x23e   : > { %v1211_v17 = vpop.permute.xlu0 %1210  ;;  %1275 = vst.msk [vmem:[#allocation2 + $0xd8] sm:$0xff] %vm1155_vm2, %v1213_v62 }
 0x23f   : > { %1274 = vst.msk [vmem:[#allocation2 + $0xd0] sm:$0xff] %vm1155_vm2, %v1211_v17 }
 0x240   : > { %1295 = vst.msk [vmem:[#allocation2 + $0xdf] sm:$0x1] %vm1281_vm3, %v2091_v0 }
 0x241   : > { %v1349_v18 = vpop.permute.xlu1 %1348 }
 0x242   : > { %v1347_v63 = vpop.permute.xlu0 %1346  ;;  %1414 = vst.msk [vmem:[#allocation2 + $0xc7] sm:$0xff] %vm1278_vm5, %v1349_v18 }
 0x243   : > { %1413 = vst.msk [vmem:[#allocation2 + $0xbf] sm:$0xfe] %vm1388_vm4, %v1347_v63 }
 0x245   : > { %v1353_v2 = vpop.permute.xlu1 %1352 }
 0x246   : > { %v1351_v25 = vpop.permute.xlu0 %1350  ;;  %1416 = vst.msk [vmem:[#allocation2 + $0xd7] sm:$0xff] %vm1278_vm5, %v1353_v2 }
 0x247   : > { %1415 = vst.msk [vmem:[#allocation2 + $0xcf] sm:$0xfe] %vm1388_vm4, %v1351_v25 }
 0x249   : > { %v666_v4 = vpop.permute.xlu1 %665  ;;  %v1444_v32 = vld [vmem:[#allocation2 + $0xc8] sm:$0xff] }
 0x24a   : > { %v664_v26 = vpop.permute.xlu0 %663  ;;  %v1443_v31 = vld [vmem:[#allocation2 + $0xc0] sm:$0xff]  ;;  %734 = vst.msk [vmem:[#allocation2 + $0xe9] sm:$0x7f] %vm705_vm9, %v666_v4 }
 0x24b   : > { %733 = vst.msk [vmem:[#allocation2 + $0xe1] sm:$0xff] %vm703_vm10, %v664_v26  ;;  %v1463_v11 = vpack.c.bf16 %v1444_v32, %v1443_v31 }
 0x24d   : > { %2041 = vmatprep.mubr.msk.bf16.mxu1 %vm1510_vm6, %v1463_v11  ;;  %v670_v12 = vpop.permute.xlu1 %669  ;;  %v1446_v34 = vld [vmem:[#allocation2 + $0xd8] sm:$0xff] }
 0x24e   : > { %v668_v33 = vpop.permute.xlu0 %667  ;;  %v1445_v1 = vld [vmem:[#allocation2 + $0xd0] sm:$0xff]  ;;  %736 = vst.msk [vmem:[#allocation2 + $0xf9] sm:$0x7f] %vm705_vm9, %v670_v12 }
 0x24f   : > { %735 = vst.msk [vmem:[#allocation2 + $0xf1] sm:$0xff] %vm703_vm10, %v668_v33  ;;  %v1464_v35 = vpack.c.bf16 %v1446_v34, %v1445_v1 }
 0x251   : > { %v2027_v36 = vpop.f32.mrf.mxu0  ;;  %2042 = vmatmul.mubr.msk.bf16.gmra.mxu1 %vm1510_vm6, %v1464_v35  ;;  %v796_v37 = vpop.permute.xlu1 %795 }
 0x252   : > { %v1638_v3 = vadd.f32 %v2027_v36, %v3175_v16  ;;  %v794_v38 = vpop.permute.xlu0 %793  ;;  %863 = vst.msk [vmem:[#allocation2 + $0xe8] sm:$0xff] %vm833_vm11, %v796_v37 }
 0x253   : > { %862 = vst.msk [vmem:[#allocation2 + $0xe0] sm:$0xff] %vm833_vm11, %v794_v38  ;;  %v1629_v39 = vpop.f32.mrf.mxu0 }
 0x254   : > { %1842 = vst [vmem:[%s3184_s21 + $0x50] sm:$0xff] %v1638_v3  ;;  %881 = vst.msk [vmem:[#allocation2 + $0xef] sm:$0x1] %vm866_vm12, %v2091_v0  ;;  %v1630_v19 = vadd.f32 %v3175_v16, %v1629_v39  ;;  %v1772_v46 = vmul.f32 %v1638_v3, %v1638_v3 }
 0x255   : > { %v2028_v27 = vpop.f32.mrf.mxu0  ;;  %v800_v13 = vpop.permute.xlu1 %799 }
 0x256   : > { %v1731_v28 = vadd.f32 %v1730_v9, %v1630_v19  ;;  %v1770_v20 = vmul.f32 %v1630_v19, %v1630_v19  ;;  %1840 = vst [vmem:[%s3184_s21 + $0x40] sm:$0xff] %v1630_v19  ;;  %v1641_v40 = vadd.f32 %v2028_v27, %v3175_v16  ;;  %v798_v6 = vpop.permute.xlu0 %797  ;;  %865 = vst.msk [vmem:[#allocation2 + $0xf8] sm:$0xff] %vm833_vm11, %v800_v13 }
 0x257   : > { %864 = vst.msk [vmem:[#allocation2 + $0xf0] sm:$0xff] %vm833_vm11, %v798_v6  ;;  %v1632_v14 = vpop.f32.mrf.mxu0 }
 0x258   : > { %v1801_v41 = vadd.f32 %v1800_v10, %v1770_v20  ;;  %1843 = vst [vmem:[%s3184_s21 + $0x58] sm:$0xff] %v1641_v40  ;;  %882 = vst.msk [vmem:[#allocation2 + $0xff] sm:$0x1] %vm866_vm12, %v2091_v0  ;;  %v1633_v42 = vadd.f32 %v3175_v16, %v1632_v14  ;;  %v1773_v29 = vmul.f32 %v1641_v40, %v1641_v40 }
 0x259   : > { %v942_v44 = vpop.permute.xlu1 %941 }
 0x25a   : > { %v1732_v5 = vadd.f32 %v1731_v28, %v1633_v42  ;;  %v1771_v43 = vmul.f32 %v1633_v42, %v1633_v42  ;;  %1841 = vst [vmem:[%s3184_s21 + $0x48] sm:$0xff] %v1633_v42  ;;  %v940_v45 = vpop.permute.xlu0 %939  ;;  %1010 = vst.msk [vmem:[#allocation2 + $0xe7] sm:$0xff] %vm981_vm15, %v942_v44 }
 0x25b   : > { %1009 = vst.msk [vmem:[#allocation2 + $0xdf] sm:$0xfe] %vm979_vm13, %v940_v45 }
 0x25c   : > { %v1733_v21 = vadd.f32 %v1732_v5, %v1638_v3  ;;  %v1802_v47 = vadd.f32 %v1801_v41, %v1771_v43  ;;  %1032 = vst.msk [vmem:[#allocation2 + $0xe0] sm:$0x1] %vm1017_vm14, %v2091_v0 }
 0x25d   : > { %v946_v48 = vpop.permute.xlu1 %945 }
 0x25e   : > { %v1803_v22 = vadd.f32 %v1802_v47, %v1772_v46  ;;  %v944_v30 = vpop.permute.xlu0 %943  ;;  %v1734_v49 = vadd.f32 %v1733_v21, %v1641_v40  ;;  %1012 = vst.msk [vmem:[#allocation2 + $0xf7] sm:$0xff] %vm981_vm15, %v946_v48 }
 0x25f   : > { %1011 = vst.msk [vmem:[#allocation2 + $0xef] sm:$0xfe] %vm979_vm13, %v944_v30 }
 0x260   : > { %1016 = vst.msk [vmem:[#allocation2 + $0xf8] sm:$0xff] %vm1014_vm0, %v2091_v0  ;;  %1015 = vst.msk [vmem:[#allocation2 + $0xf0] sm:$0xff] %vm1014_vm0, %v2091_v0  ;;  %v1804_v50 = vadd.f32 %v1803_v22, %v1773_v29 }
 0x261   : > { %1157 = vst.msk [vmem:[#allocation2 + $0xf8] sm:$0xff] %vm1155_vm2, %v2091_v0  ;;  %v1093_v8 = vpop.permute.xlu1 %1092 }
 0x262   : > { %1033 = vst.msk [vmem:[#allocation2 + $0xf0] sm:$0x1] %vm1017_vm14, %v2091_v0  ;;  %v1091_v51 = vpop.permute.xlu0 %1090 }
 0x263   : > { %1280 = vst.msk [vmem:[#allocation2 + $0xf8] sm:$0xff] %vm1278_vm5, %v2091_v0 }
 0x264   : > { %1156 = vst.msk [vmem:[#allocation2 + $0xf0] sm:$0xff] %vm1155_vm2, %v2091_v0 }
 0x265   : > { %1297 = vst.msk [vmem:[#allocation2 + $0xff] sm:$0x1] %vm1281_vm3, %v2091_v0  ;;  %v1217_v52 = vpop.permute.xlu1 %1216 }
 0x266   : > { %1279 = vst.msk [vmem:[#allocation2 + $0xf0] sm:$0xff] %vm1278_vm5, %v2091_v0  ;;  %v1215_v7 = vpop.permute.xlu0 %1214 }
 0x267   : > { %1154 = vst.msk [vmem:[#allocation2 + $0xe9] sm:$0x7f] %vm1125_vm1, %v1093_v8 }
 0x268   : > { %1153 = vst.msk [vmem:[#allocation2 + $0xe1] sm:$0xff] %vm1014_vm0, %v1091_v51 }
 0x269   : > { %1277 = vst.msk [vmem:[#allocation2 + $0xe8] sm:$0xff] %vm1155_vm2, %v1217_v52  ;;  %1276 = vst.msk [vmem:[#allocation2 + $0xe0] sm:$0xff] %vm1155_vm2, %v1215_v7  ;;  %v1357_v15 = vpop.permute.xlu1 %1356 }
 0x26a   : > { %1296 = vst.msk [vmem:[#allocation2 + $0xef] sm:$0x1] %vm1281_vm3, %v2091_v0  ;;  %v1355_v53 = vpop.permute.xlu0 %1354 }
 0x26b   : > { %1418 = vst.msk [vmem:[#allocation2 + $0xe7] sm:$0xff] %vm1278_vm5, %v1357_v15 }
 0x26c   : > { %1417 = vst.msk [vmem:[#allocation2 + $0xdf] sm:$0xfe] %vm1388_vm4, %v1355_v53  ;;  %v1450_v55 = vld [vmem:[#allocation2 + $0xf8] sm:$0xff] }
 0x26d   : > { %v1449_v54 = vld [vmem:[#allocation2 + $0xf0] sm:$0xff] }
 0x26e   : > { %v1466_v23 = vpack.c.bf16 %v1450_v55, %v1449_v54 }
 0x272   : > { %v1448_v57 = vld [vmem:[#allocation2 + $0xe8] sm:$0xff] }
 0x273   : > { %v1447_v56 = vld [vmem:[#allocation2 + $0xe0] sm:$0xff] }
 0x274   : > { %v1465_v24 = vpack.c.bf16 %v1448_v57, %v1447_v56 }
 0x276   : > { %2045 = vmatprep.mubr.msk.bf16.mxu1 %vm1510_vm6, %v1465_v24 }
 0x277   : > { %2046 = vmatmul.mubr.msk.bf16.gmra.mxu1 %vm1510_vm6, %v1466_v23 }
 0x281   : > { %v2031_v0 = vpop.f32.mrf.mxu0 }
 0x282   : > { %v1654_v58 = vadd.f32 %v2031_v0, %v3175_v16 }
 0x283   : > { %v1645_v59 = vpop.f32.mrf.mxu0 }
 0x284   : > { %1846 = vst [vmem:[%s3184_s21 + $0x70] sm:$0xff] %v1654_v58  ;;  %v1646_v9 = vadd.f32 %v3175_v16, %v1645_v59  ;;  %v1776_v4 = vmul.f32 %v1654_v58, %v1654_v58 }
 0x285   : > { %v2032_v10 = vpop.f32.mrf.mxu0 }
 0x286   : > { %v1735_v60 = vadd.f32 %v1734_v49, %v1646_v9  ;;  %v1774_v61 = vmul.f32 %v1646_v9, %v1646_v9  ;;  %1844 = vst [vmem:[%s3184_s21 + $0x60] sm:$0xff] %v1646_v9  ;;  %v1657_v62 = vadd.f32 %v2032_v10, %v3175_v16 }
 0x287   : > { %v1648_v17 = vpop.f32.mrf.mxu0 }
 0x288   : > { %v1805_v18 = vadd.f32 %v1804_v50, %v1774_v61  ;;  %1847 = vst [vmem:[%s3184_s21 + $0x78] sm:$0xff] %v1657_v62  ;;  %v1649_v63 = vadd.f32 %v3175_v16, %v1648_v17  ;;  %v1777_v32 = vmul.f32 %v1657_v62, %v1657_v62 }
 0x28a   : > { %v1736_v2 = vadd.f32 %v1735_v60, %v1649_v63  ;;  %v1775_v25 = vmul.f32 %v1649_v63, %v1649_v63  ;;  %1845 = vst [vmem:[%s3184_s21 + $0x68] sm:$0xff] %v1649_v63 }
 0x28c   : > { %v1737_v26 = vadd.f32 %v1736_v2, %v1654_v58  ;;  %v1806_v31 = vadd.f32 %v1805_v18, %v1775_v25 }
 0x28e   : > { %v1807_v11 = vadd.f32 %v1806_v31, %v1776_v4  ;;  %v1738_v12 = vadd.f32 %v1737_v26, %v1657_v62 }
 0x290   : > { %v1808_v33 = vadd.f32 %v1807_v11, %v1777_v32 }
 0x2b1   : > { %v2035_v1 = vpop.f32.mrf.mxu1 }
 0x2b2   : > { %v1670_v34 = vadd.f32 %v2035_v1, %v3175_v16 }
 0x2b3   : > { %v1661_v35 = vpop.f32.mrf.mxu1 }
 0x2b4   : > { %1850 = vst [vmem:[%s3184_s21 + $0x90] sm:$0xff] %v1670_v34  ;;  %v1662_v36 = vadd.f32 %v3175_v16, %v1661_v35  ;;  %v1780_v13 = vmul.f32 %v1670_v34, %v1670_v34 }
 0x2b5   : > { %v2036_v3 = vpop.f32.mrf.mxu1 }
 0x2b6   : > { %v1739_v37 = vadd.f32 %v1738_v12, %v1662_v36  ;;  %v1778_v38 = vmul.f32 %v1662_v36, %v1662_v36  ;;  %1848 = vst [vmem:[%s3184_s21 + $0x80] sm:$0xff] %v1662_v36  ;;  %v1673_v39 = vadd.f32 %v2036_v3, %v3175_v16 }
 0x2b7   : > { %v1664_v19 = vpop.f32.mrf.mxu1 }
 0x2b8   : > { %v1809_v27 = vadd.f32 %v1808_v33, %v1778_v38  ;;  %1851 = vst [vmem:[%s3184_s21 + $0x98] sm:$0xff] %v1673_v39  ;;  %v1665_v28 = vadd.f32 %v3175_v16, %v1664_v19  ;;  %v1781_v41 = vmul.f32 %v1673_v39, %v1673_v39 }
 0x2ba   : > { %v1740_v20 = vadd.f32 %v1739_v37, %v1665_v28  ;;  %v1779_v40 = vmul.f32 %v1665_v28, %v1665_v28  ;;  %1849 = vst [vmem:[%s3184_s21 + $0x88] sm:$0xff] %v1665_v28 }
 0x2bc   : > { %v1741_v6 = vadd.f32 %v1740_v20, %v1670_v34  ;;  %v1810_v14 = vadd.f32 %v1809_v27, %v1779_v40 }
 0x2be   : > { %v1811_v42 = vadd.f32 %v1810_v14, %v1780_v13  ;;  %v1742_v5 = vadd.f32 %v1741_v6, %v1673_v39 }
 0x2c0   : > { %v1812_v43 = vadd.f32 %v1811_v42, %v1781_v41 }
 0x2e1   : > { %v2039_v44 = vpop.f32.mrf.mxu1 }
 0x2e2   : > { %v1686_v45 = vadd.f32 %v2039_v44, %v3175_v16 }
 0x2e3   : > { %v1677_v46 = vpop.f32.mrf.mxu1 }
 0x2e4   : > { %1854 = vst [vmem:[%s3184_s21 + $0xb0] sm:$0xff] %v1686_v45  ;;  %v1678_v21 = vadd.f32 %v3175_v16, %v1677_v46  ;;  %v1784_v52 = vmul.f32 %v1686_v45, %v1686_v45 }
 0x2e5   : > { %v2040_v47 = vpop.f32.mrf.mxu1 }
 0x2e6   : > { %v1743_v29 = vadd.f32 %v1742_v5, %v1678_v21  ;;  %v1782_v22 = vmul.f32 %v1678_v21, %v1678_v21  ;;  %1852 = vst [vmem:[%s3184_s21 + $0xa0] sm:$0xff] %v1678_v21  ;;  %v1689_v48 = vadd.f32 %v2040_v47, %v3175_v16 }
 0x2e7   : > { %v1680_v30 = vpop.f32.mrf.mxu1 }
 0x2e8   : > { %v1813_v49 = vadd.f32 %v1812_v43, %v1782_v22  ;;  %1855 = vst [vmem:[%s3184_s21 + $0xb8] sm:$0xff] %v1689_v48  ;;  %v1681_v50 = vadd.f32 %v3175_v16, %v1680_v30  ;;  %v1785_v53 = vmul.f32 %v1689_v48, %v1689_v48 }
 0x2ea   : > { %v1744_v8 = vadd.f32 %v1743_v29, %v1681_v50  ;;  %v1783_v51 = vmul.f32 %v1681_v50, %v1681_v50  ;;  %1853 = vst [vmem:[%s3184_s21 + $0xa8] sm:$0xff] %v1681_v50 }
 0x2ec   : > { %v1745_v7 = vadd.f32 %v1744_v8, %v1686_v45  ;;  %v1814_v15 = vadd.f32 %v1813_v49, %v1783_v51 }
 0x2ee   : > { %v1815_v54 = vadd.f32 %v1814_v15, %v1784_v52  ;;  %v1746_v55 = vadd.f32 %v1745_v7, %v1689_v48 }
 0x2f0   : > { %v1816_v56 = vadd.f32 %v1815_v54, %v1785_v53 }
 0x311   : > { %v2043_v57 = vpop.f32.mrf.mxu1 }
 0x312   : > { %v1702_v23 = vadd.f32 %v2043_v57, %v3175_v16 }
 0x313   : > { %v1693_v24 = vpop.f32.mrf.mxu1 }
 0x314   : > { %1858 = vst [vmem:[%s3184_s21 + $0xd0] sm:$0xff] %v1702_v23  ;;  %v1694_v0 = vadd.f32 %v3175_v16, %v1693_v24  ;;  %v1788_v25 = vmul.f32 %v1702_v23, %v1702_v23 }
 0x315   : > { %v2044_v58 = vpop.f32.mrf.mxu1 }
 0x316   : > { %1856 = vst [vmem:[%s3184_s21 + $0xc0] sm:$0xff] %v1694_v0  ;;  %v1705_v59 = vadd.f32 %v2044_v58, %v3175_v16  ;;  %v1786_v60 = vmul.f32 %v1694_v0, %v1694_v0  ;;  %v1747_v61 = vadd.f32 %v1746_v55, %v1694_v0 }
 0x317   : > { %v1696_v9 = vpop.f32.mrf.mxu1 }
 0x318   : > { %1859 = vst [vmem:[%s3184_s21 + $0xd8] sm:$0xff] %v1705_v59  ;;  %v1697_v10 = vadd.f32 %v3175_v16, %v1696_v9  ;;  %v1817_v17 = vadd.f32 %v1816_v56, %v1786_v60  ;;  %v1789_v33 = vmul.f32 %v1705_v59, %v1705_v59 }
 0x31a   : > { %1857 = vst [vmem:[%s3184_s21 + $0xc8] sm:$0xff] %v1697_v10  ;;  %v1787_v62 = vmul.f32 %v1697_v10, %v1697_v10  ;;  %v1748_v18 = vadd.f32 %v1747_v61, %v1697_v10 }
 0x31c   : > { %v1818_v63 = vadd.f32 %v1817_v17, %v1787_v62  ;;  %v1749_v4 = vadd.f32 %v1748_v18, %v1702_v23 }
 0x31e   : > { %v1819_v32 = vadd.f32 %v1818_v63, %v1788_v25  ;;  %v1750_v1 = vadd.f32 %v1749_v4, %v1705_v59 }
 0x320   : > { %v1820_v37 = vadd.f32 %v1819_v32, %v1789_v33 }
 0x337   : > { %v2047_v2 = vpop.f32.mrf.mxu1 }
 0x338   : > { %v1718_v26 = vadd.f32 %v2047_v2, %v3175_v16 }
 0x339   : > { %v1709_v31 = vpop.f32.mrf.mxu1 }
 0x33a   : > { %1862 = vst [vmem:[%s3184_s21 + $0xf0] sm:$0xff] %v1718_v26  ;;  %v1710_v11 = vadd.f32 %v3175_v16, %v1709_v31  ;;  %v1792_v28 = vmul.f32 %v1718_v26, %v1718_v26 }
 0x33b   : > { %v2048_v12 = vpop.f32.mrf.mxu1 }
 0x33c   : > { %v1790_v34 = vmul.f32 %v1710_v11, %v1710_v11  ;;  %1860 = vst [vmem:[%s3184_s21 + $0xe0] sm:$0xff] %v1710_v11  ;;  %v1721_v35 = vadd.f32 %v2048_v12, %v3175_v16  ;;  %v1751_v3 = vadd.f32 %v1750_v1, %v1710_v11 }
 0x33d   : > { %v1712_v36 = vpop.f32.mrf.mxu1 }
 0x33e   : > { %1863 = vst [vmem:[%s3184_s21 + $0xf8] sm:$0xff] %v1721_v35  ;;  %v1713_v38 = vadd.f32 %v3175_v16, %v1712_v36  ;;  %v1821_v39 = vadd.f32 %v1820_v37, %v1790_v34  ;;  %v1793_v13 = vmul.f32 %v1721_v35, %v1721_v35 }
 0x340   : > { %v1752_v19 = vadd.f32 %v1751_v3, %v1713_v38  ;;  %v1791_v27 = vmul.f32 %v1713_v38, %v1713_v38  ;;  %1861 = vst [vmem:[%s3184_s21 + $0xe8] sm:$0xff] %v1713_v38 }
 0x342   : > { %v1753_v20 = vadd.f32 %v1752_v19, %v1718_v26  ;;  %v1822_v40 = vadd.f32 %v1821_v39, %v1791_v27 }
 0x344   : > { %v1754_v6 = vadd.f32 %v1753_v20, %v1721_v35  ;;  %v1823_v14 = vadd.f32 %v1822_v40, %v1792_v28 }
 0x346   : > { %v1755_v41 = vrot.slane %v1754_v6, 4  ;;  %v1824_v42 = vadd.f32 %v1823_v14, %v1793_v13 }
 0x348   : > { %v1756_v5 = vadd.f32 %v1755_v41, %v1754_v6  ;;  %v1825_v43 = vrot.slane %v1824_v42, 4 }
 0x34a   : > { %v1757_v44 = vrot.slane %v1756_v5, 2  ;;  %v1826_v45 = vadd.f32 %v1825_v43, %v1824_v42 }
 0x34c   : > { %v1758_v46 = vadd.f32 %v1757_v44, %v1756_v5  ;;  %v1827_v16 = vrot.slane %v1826_v45, 2 }
 0x34e   : > { %v1759_v21 = vrot.slane %v1758_v46, 1  ;;  %v1828_v47 = vadd.f32 %v1827_v16, %v1826_v45 }
 0x350   : > { %v1760_v29 = vadd.f32 %v1759_v21, %v1758_v46  ;;  %v1829_v22 = vrot.slane %v1828_v47, 1 }
 0x352   : > { %1761 = vst [vmem:[%s208_s24] sm:$0x1] %v1760_v29  ;;  %v1830_v48 = vadd.f32 %v1829_v22, %v1828_v47 }
 0x354   : > { %1831 = vst [vmem:[%s208_s24 + $0x1] sm:$0x1] %v1830_v48 }
 0x355 PF: > { %s15_s15 = sadd.s32 1, %s2089_s15  }
 0x356   : > { %p12_p4 = scmp.ge.s32.totalorder %s15_s15, 4  }
 0x358   :  { %14 = sbr.rel (!%p12_p4) target bundleno = 1 (0x1), region = 76 }

// kernel: double_conv_block.4
= control target key start
LH: loop header
LB: loop body
LE: loop exit
PB: predicated region body
PF: predicated region fallthrough
CT: control target
= control target key end

     0   :  { %s3797_s21 = smov 0   ;;  %s5176_s0 = inlined_call_operand.vmem [shape: f32[2,16,16,128], index: 0, kind: input, shape index: {}]   ;;  %s5177_s1 = inlined_call_operand.vmem [shape: f32[1,128], index: 1, kind: input, shape index: {}]   ;;  %s5178_s2 = inlined_call_operand.vmem [shape: f32[1,128], index: 2, kind: input, shape index: {}]   ;;  %s5179_s3 = inlined_call_operand.vmem [shape: bf16[1152,128], index: 3, kind: input, shape index: {}]   ;;  %s5180_s4 = inlined_call_operand.vmem [shape: f32[1,128], index: 4, kind: input, shape index: {}]   ;;  %s5181_s5 = inlined_call_operand.vmem [shape: f32[2,16,16,128], index: 5, kind: output, shape index: {0}]   ;;  %s5182_s6 = inlined_call_operand.vmem [shape: f32[2,2,128], index: 6, kind: output, shape index: {1}]  }
   0x1 LB: > { %s3032_s22 = sadd.s32 4294967295, %s3758_s21   ;;  %p3036_p0 = scmp.ge.s32.totalorder %s3758_s21, 1  ;;  %s3758_s21 = sphi %s3797_s21, %s17_s21  }
   0x2   : > { %p215_p1 = scmp.lt.s32.totalorder %s3758_s21, 3 }
   0x4   : > { %p216_p2 = pnand %p3036_p0, %p215_p1 }
   0x6   : > { %219 = sbr.rel (%p216_p2) target bundleno = 582 (0x246), region = 40 }
   0xb   : > { %v3808_v0 = vld [vmem:[%s5179_s3 + $0x78] sm:$0xff]   ;;  %v3760_v2 = vmov 0.0   ;;  %v3668_v3 = vld [vmem:[%s5179_s3 + $0x70] sm:$0xff]   ;;  %p249_p3 = scmp.lt.s32.totalorder %s3032_s22, 1  ;;  %v3670_v5 = vld [vmem:[%s5179_s3 + $0x68] sm:$0xff]   ;;  %v3761_v6 = vmov 0.0|0.0  }
   0xc   : > { %v3813_v1 = vld [vmem:[%s5179_s3 + $0x38] sm:$0xff]   ;;  %561 = vst [vmem:[#allocation2 + $0x8] sm:$0xff] %v3760_v2  ;;  %406 = vst [vmem:[#allocation2] sm:$0xff] %v3760_v2  ;;  %3121 = vmatprep.subr.bf16.mxu0 %v3808_v0  ;;  %3641 = vmatprep.subr.bf16.mxu1 %v3808_v0  ;;  %v3669_v4 = vld [vmem:[%s5179_s3 + $0x30] sm:$0xff]   ;;  %vm454_vm0 = vcmask 1040384   ;;  %vm611_vm1 = vcmask 1046528  }
   0xd   : > { %409 = vst [vmem:[#allocation2 + $0x90] sm:$0x1] %v3760_v2  ;;  %410 = vst [vmem:[#allocation2 + $0x120] sm:$0x1] %v3760_v2  ;;  %3122 = vmatpush3.bf16.msra.mxu0 %v3813_v1  ;;  %3649 = vmatpush3.bf16.msra.mxu1 %v3813_v1  ;;  %s5204_s22 = smov (!%p249_p3, %s3032_s22), 1  ;;  %v3671_v7 = vld [vmem:[%s5179_s3 + $0x28] sm:$0xff]  }
   0xe   : > { %411 = vst [vmem:[#allocation2 + $0x1b0] sm:$0x1] %v3760_v2  ;;  %412 = vst [vmem:[#allocation2 + $0x240] sm:$0x1] %v3760_v2  ;;  %3123 = vmatprep.subr.bf16.mxu0 %v3668_v3  ;;  %3642 = vmatprep.subr.bf16.mxu1 %v3668_v3  ;;  %v3672_v8 = vld [vmem:[%s5179_s3 + $0x60] sm:$0xff]   ;;  %s3119_s13 = sshll.u32 %s5204_s22, 8 }
   0xf   : > { %413 = vst [vmem:[#allocation2 + $0x2d0] sm:$0x1] %v3760_v2  ;;  %414 = vst [vmem:[#allocation2 + $0x360] sm:$0x1] %v3760_v2  ;;  %2033 = vmatprep.mubr.bf16.mxu0 %v3761_v6  ;;  %v3673_v9 = vld [vmem:[%s5179_s3 + $0x20] sm:$0xff]   ;;  %v3674_v10 = vld [vmem:[%s5179_s3 + $0x58] sm:$0xff]   ;;  %s3953_s20 = scalar_lea.vmem %s5176_s0, %s3119_s13  ;;  %s5039_s17 = scalar_lea.vmem %s5181_s5, %s3119_s13 }
  0x10   : > { %415 = vst [vmem:[#allocation2 + $0x3f0] sm:$0x1] %v3760_v2  ;;  %416 = vst [vmem:[#allocation2 + $0x480] sm:$0x1] %v3760_v2  ;;  %v3675_v11 = vld [vmem:[%s5179_s3 + $0x18] sm:$0xff]   ;;  %v3676_v12 = vld [vmem:[%s5179_s3 + $0x50] sm:$0xff]  }
  0x11   : > { %417 = vst [vmem:[#allocation2 + $0x510] sm:$0x1] %v3760_v2  ;;  %418 = vst [vmem:[#allocation2 + $0x5a0] sm:$0x1] %v3760_v2  ;;  %3124 = vmatpush3.bf16.msra.mxu0 %v3669_v4  ;;  %3650 = vmatpush3.bf16.msra.mxu1 %v3669_v4  ;;  %v286_v13 = vld [vmem:[%s3953_s20 + $0xb0] sm:$0xff]  ;;  %v287_v14 = vld [vmem:[%s3953_s20 + $0xb8] sm:$0xff] }
  0x12   : > { %419 = vst [vmem:[#allocation2 + $0x630] sm:$0x1] %v3760_v2  ;;  %420 = vst [vmem:[#allocation2 + $0x6c0] sm:$0x1] %v3760_v2  ;;  %3125 = vmatprep.subr.bf16.mxu0 %v3670_v5  ;;  %3643 = vmatprep.subr.bf16.mxu1 %v3670_v5  ;;  %v3966_v15 = vld [vmem:[%s5177_s1] ss:$0 sm:$0xff] }
  0x13   : > { %421 = vst [vmem:[#allocation2 + $0x750] sm:$0x1] %v3760_v2  ;;  %422 = vst [vmem:[#allocation2 + $0x7e0] sm:$0x1] %v3760_v2  ;;  %v325_v16 = vmul.f32 %v3966_v15, %v286_v13  ;;  %v326_v17 = vmul.f32 %v3966_v15, %v287_v14  ;;  %v3973_v18 = vld [vmem:[%s5178_s2] ss:$0 sm:$0xff] }
  0x14   : > { %423 = vst [vmem:[#allocation2 + $0x870] sm:$0x1] %v3760_v2  ;;  %594 = vst [vmem:[#allocation2 + $0x58] sm:$0xff] %v3760_v2  ;;  %v3677_v19 = vld [vmem:[%s5179_s3 + $0x10] sm:$0xff]   ;;  %v3678_v22 = vld [vmem:[%s5179_s3 + $0x48] sm:$0xff]   ;;  %s3041_s13 = sshll.u32 %s5204_s22, 1 }
  0x15   : > { %596 = vst [vmem:[#allocation2 + $0xef] sm:$0x1] %v3760_v2  ;;  %597 = vst [vmem:[#allocation2 + $0x17f] sm:$0x1] %v3760_v2  ;;  %3126 = vmatpush3.bf16.msra.mxu0 %v3671_v7  ;;  %3651 = vmatpush3.bf16.msra.mxu1 %v3671_v7  ;;  %v364_v20 = vadd.f32 %v3973_v18, %v325_v16  ;;  %v365_v21 = vadd.f32 %v3973_v18, %v326_v17  ;;  %v3679_v23 = vld [vmem:[%s5179_s3 + $0x8] sm:$0xff]   ;;  %v3680_v26 = vld [vmem:[%s5179_s3 + $0x40] sm:$0xff]  }
  0x16   : > { %598 = vst [vmem:[#allocation2 + $0x20f] sm:$0x1] %v3760_v2  ;;  %599 = vst [vmem:[#allocation2 + $0x29f] sm:$0x1] %v3760_v2  ;;  %3127 = vmatprep.subr.bf16.mxu0 %v3672_v8  ;;  %3644 = vmatprep.subr.bf16.mxu1 %v3672_v8  ;;  %v264_v30 = vld [vmem:[%s3953_s20] sm:$0xff]  ;;  %v265_v31 = vld [vmem:[%s3953_s20 + $0x8] sm:$0xff] }
  0x17   : > { %600 = vst [vmem:[#allocation2 + $0x32f] sm:$0x1] %v3760_v2  ;;  %601 = vst [vmem:[#allocation2 + $0x3bf] sm:$0x1] %v3760_v2  ;;  %v3986_v24 = vmax.f32 %v364_v20, 0.0  ;;  %v397_v25 = vmax.f32 %v365_v21, 0.0  ;;  %v303_v32 = vmul.f32 %v3966_v15, %v264_v30  ;;  %v304_v38 = vmul.f32 %v3966_v15, %v265_v31 }
  0x18   : > { %602 = vst [vmem:[#allocation2 + $0x44f] sm:$0x1] %v3760_v2  ;;  %603 = vst [vmem:[#allocation2 + $0x4df] sm:$0x1] %v3760_v2  ;;  %v288_v33 = vld [vmem:[%s3953_s20 + $0xc0] sm:$0xff]  ;;  %v289_v34 = vld [vmem:[%s3953_s20 + $0xc8] sm:$0xff] }
  0x19   : > { %604 = vst [vmem:[#allocation2 + $0x56f] sm:$0x1] %v3760_v2  ;;  %605 = vst [vmem:[#allocation2 + $0x5ff] sm:$0x1] %v3760_v2  ;;  %3128 = vmatpush3.bf16.msra.mxu0 %v3673_v9  ;;  %3652 = vmatpush3.bf16.msra.mxu1 %v3673_v9  ;;  %v1383_v27 = vpack.c.bf16 %v397_v25, %v3986_v24  ;;  %v488_v28 = vrot.slane %v3986_v24, 7  ;;  %v489_v29 = vrot.slane %v397_v25, 7 }
  0x1a   : > { %606 = vst [vmem:[#allocation2 + $0x68f] sm:$0x1] %v3760_v2  ;;  %607 = vst [vmem:[#allocation2 + $0x71f] sm:$0x1] %v3760_v2  ;;  %3129 = vmatprep.subr.bf16.mxu0 %v3674_v10  ;;  %3645 = vmatprep.subr.bf16.mxu1 %v3674_v10  ;;  %v4000_v35 = vrot.slane %v397_v25, 1  ;;  %v3681_v36 = vld [vmem:[%s5179_s3] sm:$0xff]   ;;  %v327_v39 = vmul.f32 %v3966_v15, %v288_v33  ;;  %v328_v40 = vmul.f32 %v3966_v15, %v289_v34 }
  0x1b   : > { %608 = vst [vmem:[#allocation2 + $0x7af] sm:$0x1] %v3760_v2  ;;  %609 = vst [vmem:[#allocation2 + $0x83f] sm:$0x1] %v3760_v2  ;;  %2129 = vmatprep.mubr.bf16.mxu1 %v1383_v27  ;;  %v4006_v37 = vsel %vm454_vm0, %v488_v28, %v489_v29  ;;  %v342_v42 = vadd.f32 %v3973_v18, %v303_v32  ;;  %v3682_v43 = vld [vmem:[%s5179_s3 + $0xf8] sm:$0xff]   ;;  %v343_v44 = vadd.f32 %v3973_v18, %v304_v38  ;;  %v266_v60 = vld [vmem:[%s3953_s20 + $0x10] sm:$0xff] }
  0x1c   : > { %610 = vst [vmem:[#allocation2 + $0x8cf] sm:$0x1] %v3760_v2  ;;  %717 = vst [vmem:[#allocation2 + $0x18] sm:$0x1] %v3760_v2  ;;  %v366_v45 = vadd.f32 %v3973_v18, %v327_v39  ;;  %v367_v46 = vadd.f32 %v3973_v18, %v328_v40  ;;  %v3683_v47 = vld [vmem:[%s5179_s3 + $0x178] sm:$0xff]   ;;  %v305_v0 = vmul.f32 %v3966_v15, %v266_v60  ;;  %v3686_v6 = vld [vmem:[%s5179_s3 + $0xf0] sm:$0xff]  }
  0x1d   : > { %718 = vst [vmem:[#allocation2 + $0xa8] sm:$0x1] %v3760_v2  ;;  %719 = vst [vmem:[#allocation2 + $0x138] sm:$0x1] %v3760_v2  ;;  %3130 = vmatpush3.bf16.msra.mxu0 %v3675_v11  ;;  %3653 = vmatpush3.bf16.msra.mxu1 %v3675_v11  ;;  %v4026_v48 = vmax.f32 %v342_v42, 0.0  ;;  %v375_v49 = vmax.f32 %v343_v44, 0.0 }
  0x1e   : > { %720 = vst [vmem:[#allocation2 + $0x1c8] sm:$0x1] %v3760_v2  ;;  %721 = vst [vmem:[#allocation2 + $0x258] sm:$0x1] %v3760_v2  ;;  %3131 = vmatprep.subr.bf16.mxu0 %v3676_v12  ;;  %3646 = vmatprep.subr.bf16.mxu1 %v3676_v12  ;;  %v4028_v50 = vmax.f32 %v366_v45, 0.0  ;;  %v4030_v51 = vmax.f32 %v367_v46, 0.0  ;;  %v344_v13 = vadd.f32 %v3973_v18, %v305_v0 }
  0x1f   : > { %722 = vst [vmem:[#allocation2 + $0x2e8] sm:$0x1] %v3760_v2  ;;  %723 = vst [vmem:[#allocation2 + $0x378] sm:$0x1] %v3760_v2  ;;  %v3684_v53 = vld [vmem:[%s5179_s3 + $0xb8] sm:$0xff]   ;;  %v455_v55 = vrot.slane %v4026_v48, 7  ;;  %v1284_v56 = vpack.c.bf16 %v375_v49, %v4026_v48 }
  0x20   : > { %724 = vst [vmem:[#allocation2 + $0x408] sm:$0x1] %v3760_v2  ;;  %725 = vst [vmem:[#allocation2 + $0x498] sm:$0x1] %v3760_v2  ;;  %v3685_v54 = vld [vmem:[%s5179_s3 + $0x138] sm:$0xff]   ;;  %v1392_v57 = vpack.c.bf16 %v4030_v51, %v4028_v50  ;;  %v456_v58 = vrot.slane %v375_v49, 7 }
  0x21   : > { %726 = vst [vmem:[#allocation2 + $0x528] sm:$0x1] %v3760_v2  ;;  %727 = vst [vmem:[#allocation2 + $0x5b8] sm:$0x1] %v3760_v2  ;;  %3132 = vmatpush3.bf16.msra.mxu0 %v3677_v19  ;;  %3654 = vmatpush3.bf16.msra.mxu1 %v3677_v19  ;;  %v491_v59 = vrot.slane %v4028_v50, 7  ;;  %v267_v61 = vld [vmem:[%s3953_s20 + $0x18] sm:$0xff] }
  0x22   : > { %728 = vst [vmem:[#allocation2 + $0x648] sm:$0x1] %v3760_v2  ;;  %729 = vst [vmem:[#allocation2 + $0x6d8] sm:$0x1] %v3760_v2  ;;  %3133 = vmatprep.subr.bf16.mxu0 %v3678_v22  ;;  %3647 = vmatprep.subr.bf16.mxu1 %v3678_v22  ;;  %v492_v63 = vrot.slane %v4030_v51, 7  ;;  %v306_v1 = vmul.f32 %v3966_v15, %v267_v61  ;;  %v291_v3 = vld [vmem:[%s3953_s20 + $0xd8] sm:$0xff]  ;;  %v4064_v7 = vsel %vm454_vm0, %v455_v55, %v456_v58 }
  0x23   : > { %730 = vst [vmem:[#allocation2 + $0x768] sm:$0x1] %v3760_v2  ;;  %731 = vst [vmem:[#allocation2 + $0x7f8] sm:$0x1] %v3760_v2  ;;  %v612_v4 = vrot.slane %v4026_v48, 1  ;;  %v330_v9 = vmul.f32 %v3966_v15, %v291_v3  ;;  %v3687_v10 = vld [vmem:[%s5179_s3 + $0xb0] sm:$0xff]  }
  0x24   : > { %732 = vst [vmem:[#allocation2 + $0x888] sm:$0x1] %v3760_v2  ;;  %804 = vst [vmem:[#allocation2 + $0x77] sm:$0x1] %v3760_v2  ;;  %v4072_v11 = vsel %vm454_vm0, %v491_v59, %v492_v63  ;;  %v3691_v12 = vld [vmem:[%s5179_s3 + $0x170] sm:$0xff]   ;;  %v345_v14 = vadd.f32 %v3973_v18, %v306_v1  ;;  %v613_v16 = vrot.slane %v375_v49, 1 }
  0x25   : > { %805 = vst [vmem:[#allocation2 + $0x107] sm:$0x1] %v3760_v2  ;;  %806 = vst [vmem:[#allocation2 + $0x197] sm:$0x1] %v3760_v2  ;;  %3134 = vmatpush3.bf16.msra.mxu0 %v3679_v23  ;;  %3655 = vmatpush3.bf16.msra.mxu1 %v3679_v23  ;;  %v3693_v17 = vld [vmem:[%s5179_s3 + $0x130] sm:$0xff]   ;;  %v369_v20 = vadd.f32 %v3973_v18, %v330_v9  ;;  %v645_v21 = vrot.slane %v3986_v24, 1 }
  0x26   : > { %807 = vst [vmem:[#allocation2 + $0x227] sm:$0x1] %v3760_v2  ;;  %808 = vst [vmem:[#allocation2 + $0x2b7] sm:$0x1] %v3760_v2  ;;  %3135 = vmatprep.subr.bf16.mxu0 %v3680_v26  ;;  %3648 = vmatprep.subr.bf16.mxu1 %v3680_v26  ;;  %v4087_v22 = vmax.f32 %v344_v13, 0.0  ;;  %v4089_v23 = vmax.f32 %v345_v14, 0.0 }
  0x27   : > { %809 = vst [vmem:[#allocation2 + $0x347] sm:$0x1] %v3760_v2  ;;  %810 = vst [vmem:[#allocation2 + $0x3d7] sm:$0x1] %v3760_v2  ;;  %v3688_v26 = vld [vmem:[%s5179_s3 + $0xe8] sm:$0xff]   ;;  %v647_v30 = vsel %vm611_vm1, %v645_v21, %v4000_v35  ;;  %v3690_v39 = vld [vmem:[%s5179_s3 + $0xe0] sm:$0xff]  }
  0x28   : > { %811 = vst [vmem:[#allocation2 + $0x467] sm:$0x1] %v3760_v2  ;;  %812 = vst [vmem:[#allocation2 + $0x4f7] sm:$0x1] %v3760_v2  ;;  %v269_v29 = vld [vmem:[%s3953_s20 + $0x28] sm:$0xff]  ;;  %v1293_v32 = vpack.c.bf16 %v4089_v23, %v4087_v22  ;;  %v458_v33 = vrot.slane %v4087_v22, 7 }
  0x29   : > { %813 = vst [vmem:[#allocation2 + $0x587] sm:$0x1] %v3760_v2  ;;  %814 = vst [vmem:[#allocation2 + $0x617] sm:$0x1] %v3760_v2  ;;  %3136 = vmatpush3.bf16.msra.mxu0 %v3681_v36  ;;  %3656 = vmatpush3.bf16.msra.mxu1 %v3681_v36  ;;  %v3689_v31 = vld [vmem:[%s5179_s3 + $0xa8] sm:$0xff]   ;;  %v459_v34 = vrot.slane %v4089_v23, 7 }
  0x2a   : > { %815 = vst [vmem:[#allocation2 + $0x6a7] sm:$0x1] %v3760_v2  ;;  %816 = vst [vmem:[#allocation2 + $0x737] sm:$0x1] %v3760_v2  ;;  %3233 = vmatprep.subr.bf16.mxu1 %v3682_v43  ;;  %3345 = vmatprep.subr.bf16.mxu0 %v3683_v47  ;;  %v292_v36 = vld [vmem:[%s3953_s20 + $0xe0] sm:$0xff]  ;;  %v308_v43 = vmul.f32 %v3966_v15, %v269_v29  ;;  %v3701_v58 = vld [vmem:[%s5179_s3 + $0x128] sm:$0xff]  }
  0x2b   : > { %817 = vst [vmem:[#allocation2 + $0x7c7] sm:$0x1] %v3760_v2  ;;  %818 = vst [vmem:[#allocation2 + $0x857] sm:$0x1] %v3760_v2  ;;  %v4129_v46 = vsel %vm454_vm0, %v458_v33, %v459_v34  ;;  %v3694_v60 = vld [vmem:[%s5179_s3 + $0xd8] sm:$0xff]   ;;  %v270_v1 = vld [vmem:[%s3953_s20 + $0x30] sm:$0xff] }
  0x2c   : > { %819 = vst [vmem:[#allocation2 + $0x8e7] sm:$0x1] %v3760_v2  ;;  %858 = vst [vmem:[#allocation2 + $0x8a0] sm:$0xff] %v3760_v2  ;;  %v3695_v3 = vld [vmem:[%s5179_s3 + $0x98] sm:$0xff]   ;;  %v3696_v9 = vld [vmem:[%s5179_s3 + $0xd0] sm:$0xff]   ;;  %v615_v13 = vrot.slane %v4087_v22, 1 }
  0x2d   : > { %860 = vst [vmem:[#allocation2 + $0x30] sm:$0x1] %v3760_v2  ;;  %861 = vst [vmem:[#allocation2 + $0xc0] sm:$0x1] %v3760_v2  ;;  %v3706_v29 = vld [vmem:[%s5179_s3 + $0x160] sm:$0xff]  }
  0x2e   : > { %862 = vst [vmem:[#allocation2 + $0x150] sm:$0x1] %v3760_v2  ;;  %863 = vst [vmem:[#allocation2 + $0x1e0] sm:$0x1] %v3760_v2 }
  0x2f   : > { %864 = vst [vmem:[#allocation2 + $0x270] sm:$0x1] %v3760_v2  ;;  %865 = vst [vmem:[#allocation2 + $0x300] sm:$0x1] %v3760_v2 }
  0x30   : > { %866 = vst [vmem:[#allocation2 + $0x390] sm:$0x1] %v3760_v2  ;;  %867 = vst [vmem:[#allocation2 + $0x420] sm:$0x1] %v3760_v2 }
  0x31   : > { %868 = vst [vmem:[#allocation2 + $0x4b0] sm:$0x1] %v3760_v2  ;;  %869 = vst [vmem:[#allocation2 + $0x540] sm:$0x1] %v3760_v2 }
  0x32   : > { %870 = vst [vmem:[#allocation2 + $0x5d0] sm:$0x1] %v3760_v2  ;;  %871 = vst [vmem:[#allocation2 + $0x660] sm:$0x1] %v3760_v2 }
  0x33   : > { %872 = vst [vmem:[#allocation2 + $0x6f0] sm:$0x1] %v3760_v2  ;;  %873 = vst [vmem:[#allocation2 + $0x780] sm:$0x1] %v3760_v2 }
  0x34   : > { %874 = vst [vmem:[#allocation2 + $0x810] sm:$0x1] %v3760_v2  ;;  %939 = vst [vmem:[#allocation2 + $0x8f8] sm:$0xff] %v3760_v2 }
  0x35   : > { %940 = vst [vmem:[#allocation2 + $0x8f] sm:$0x1] %v3760_v2  ;;  %941 = vst [vmem:[#allocation2 + $0x11f] sm:$0x1] %v3760_v2 }
  0x36   : > { %942 = vst [vmem:[#allocation2 + $0x1af] sm:$0x1] %v3760_v2  ;;  %943 = vst [vmem:[#allocation2 + $0x23f] sm:$0x1] %v3760_v2 }
  0x37   : > { %944 = vst [vmem:[#allocation2 + $0x2cf] sm:$0x1] %v3760_v2  ;;  %945 = vst [vmem:[#allocation2 + $0x35f] sm:$0x1] %v3760_v2 }
  0x38   : > { %946 = vst [vmem:[#allocation2 + $0x3ef] sm:$0x1] %v3760_v2  ;;  %947 = vst [vmem:[#allocation2 + $0x47f] sm:$0x1] %v3760_v2 }
  0x39   : > { %948 = vst [vmem:[#allocation2 + $0x50f] sm:$0x1] %v3760_v2  ;;  %949 = vst [vmem:[#allocation2 + $0x59f] sm:$0x1] %v3760_v2 }
  0x3a   : > { %950 = vst [vmem:[#allocation2 + $0x62f] sm:$0x1] %v3760_v2  ;;  %951 = vst [vmem:[#allocation2 + $0x6bf] sm:$0x1] %v3760_v2 }
  0x3b   : > { %952 = vst [vmem:[#allocation2 + $0x74f] sm:$0x1] %v3760_v2  ;;  %953 = vst [vmem:[#allocation2 + $0x7df] sm:$0x1] %v3760_v2 }
  0x3c   : > { %954 = vst [vmem:[#allocation2 + $0x86f] sm:$0x1] %v3760_v2  ;;  %408 = vst [vmem:[#allocation2] sm:$0x1] %v3760_v2 }
  0x3d   : > { %595 = vst [vmem:[#allocation2 + $0x5f] sm:$0x1] %v3760_v2  ;;  %875 = vst [vmem:[#allocation2 + $0x8a0] sm:$0x1] %v3760_v2 }
  0x3e   : > { %955 = vst [vmem:[#allocation2 + $0x8ff] sm:$0x1] %v3760_v2  ;;  %794 = vst [vmem:[#allocation2 + $0x650] sm:$0xff] %v3986_v24 }
  0x3f   : > { %795 = vst [vmem:[#allocation2 + $0x698] sm:$0xff] %v397_v25  ;;  %928 = vst [vmem:[#allocation2 + $0x5d8] sm:$0xff] %v3986_v24  ;;  %v401_v24 = vmax.f32 %v369_v20, 0.0 }
  0x40   : > { %929 = vst [vmem:[#allocation2 + $0x620] sm:$0xff] %v397_v25  ;;  %553 = vst [vmem:[#allocation2 + $0x6c0] sm:$0xfe] %v488_v28  ;;  %v4092_v25 = vsel %vm611_vm1, %v612_v4, %v613_v16 }
  0x41   : > { %762 = vst [vmem:[#allocation2 + $0x648] sm:$0xfe] %v488_v28  ;;  %896 = vst [vmem:[#allocation2 + $0x5d0] sm:$0xfe] %v488_v28  ;;  %v268_v28 = vld [vmem:[%s3953_s20 + $0x20] sm:$0xff]  ;;  %v495_v42 = vrot.slane %v401_v24, 7 }
  0x42   : > { %763 = vst [vmem:[#allocation2 + $0x690] sm:$0xff] %v4006_v37  ;;  %897 = vst [vmem:[#allocation2 + $0x618] sm:$0xff] %v4006_v37 }
  0x43   : > { %v986_v41 = vld [vmem:[#allocation2] sm:$0xff]  ;;  %710 = vst [vmem:[#allocation2 + $0x718] sm:$0x7f] %v4000_v35  ;;  %848 = vst [vmem:[#allocation2 + $0x6a0] sm:$0x7f] %v4000_v35 }
  0x44   : > { %977 = vst [vmem:[#allocation2 + $0x628] sm:$0x7f] %v4000_v35  ;;  %v1274_v52 = vpack.c.bf16 %v3760_v2, %v986_v41  ;;  %772 = vst [vmem:[#allocation2 + $0x20] sm:$0xff] %v4026_v48  ;;  %v290_v2 = vld [vmem:[%s3953_s20 + $0xd0] sm:$0xff]  ;;  %v307_v35 = vmul.f32 %v3966_v15, %v268_v28  ;;  %v331_v48 = vmul.f32 %v3966_v15, %v292_v36 }
  0x45   : > { %773 = vst [vmem:[#allocation2 + $0x68] sm:$0xff] %v375_v49  ;;  %587 = vst [vmem:[#allocation2 + $0x758] sm:$0xff] %v4028_v50  ;;  %v329_v8 = vmul.f32 %v3966_v15, %v290_v2  ;;  %v271_v2 = vld [vmem:[%s3953_s20 + $0x38] sm:$0xff] }
  0x46   : > { %588 = vst [vmem:[#allocation2 + $0x7a0] sm:$0xff] %v4030_v51  ;;  %796 = vst [vmem:[#allocation2 + $0x6e0] sm:$0xff] %v4028_v50  ;;  %2034 = vmatmul.mubr.bf16.vlgmr.msra.gmra.mxu0 %v1274_v52  ;;  %v346_v47 = vadd.f32 %v3973_v18, %v307_v35  ;;  %v3697_v35 = vld [vmem:[%s5179_s3 + $0x90] sm:$0xff]  }
  0x47   : > { %797 = vst [vmem:[#allocation2 + $0x728] sm:$0xff] %v4030_v51  ;;  %930 = vst [vmem:[#allocation2 + $0x668] sm:$0xff] %v4028_v50  ;;  %v1202_v62 = vld [vmem:[#allocation2 + $0x6c0] sm:$0xff]  ;;  %3346 = vmatpush3.bf16.msra.mxu0 %v3685_v54  ;;  %v368_v19 = vadd.f32 %v3973_v18, %v329_v8  ;;  %2041 = vmatprep.mubr.bf16.mxu0 %v1284_v56 }
  0x48   : > { %931 = vst [vmem:[#allocation2 + $0x6b0] sm:$0xff] %v4030_v51  ;;  %531 = vst [vmem:[#allocation2 + $0x90] sm:$0xfe] %v455_v55  ;;  %v1382_v5 = vpack.c.bf16 %v4006_v37, %v1202_v62  ;;  %3347 = vmatprep.subr.bf16.mxu0 %v3691_v12  ;;  %v293_v37 = vld [vmem:[%s3953_s20 + $0xe8] sm:$0xff]  ;;  %v347_v51 = vadd.f32 %v3973_v18, %v308_v43  ;;  %v4145_v54 = vmax.f32 %v346_v47, 0.0 }
  0x49   : > { %740 = vst [vmem:[#allocation2 + $0x18] sm:$0xfe] %v455_v55  ;;  %555 = vst [vmem:[#allocation2 + $0x750] sm:$0xfe] %v491_v59  ;;  %v4097_v27 = vmax.f32 %v368_v19, 0.0  ;;  %v332_v52 = vmul.f32 %v3966_v15, %v293_v37  ;;  %v370_v55 = vadd.f32 %v3973_v18, %v331_v48  ;;  %v3700_v47 = vld [vmem:[%s5179_s3 + $0x88] sm:$0xff]  }
  0x4a   : > { %764 = vst [vmem:[#allocation2 + $0x6d8] sm:$0xfe] %v491_v59  ;;  %898 = vst [vmem:[#allocation2 + $0x660] sm:$0xfe] %v491_v59  ;;  %2130 = vmatmul.mubr.bf16.vlgmr.msra.gmra.mxu1 %v1382_v5  ;;  %v4148_v56 = vmax.f32 %v347_v51, 0.0  ;;  %v3692_v59 = vld [vmem:[%s5179_s3 + $0xa0] sm:$0xff]   ;;  %v309_v5 = vmul.f32 %v3966_v15, %v270_v1 }
  0x4b   : > { %765 = vst [vmem:[#allocation2 + $0x720] sm:$0xff] %v4072_v11  ;;  %899 = vst [vmem:[#allocation2 + $0x6a8] sm:$0xff] %v4072_v11  ;;  %3234 = vmatpush3.bf16.msra.mxu1 %v3684_v53  ;;  %2137 = vmatprep.mubr.bf16.mxu1 %v1392_v57  ;;  %v1401_v40 = vpack.c.bf16 %v401_v24, %v4097_v27  ;;  %v494_v41 = vrot.slane %v4097_v27, 7  ;;  %v3699_v53 = vld [vmem:[%s5179_s3 + $0x168] sm:$0xff]   ;;  %v371_v57 = vadd.f32 %v3973_v18, %v332_v52  ;;  %v3702_v52 = vld [vmem:[%s5179_s3 + $0xc0] sm:$0xff]  }
  0x4c   : > { %688 = vst [vmem:[#allocation2 + $0xe8] sm:$0x7f] %v613_v16  ;;  %826 = vst [vmem:[#allocation2 + $0x70] sm:$0x7f] %v613_v16  ;;  %3235 = vmatprep.subr.bf16.mxu1 %v3686_v6  ;;  %3348 = vmatpush3.bf16.msra.mxu0 %v3693_v17  ;;  %v4162_v61 = vmax.f32 %v370_v55, 0.0  ;;  %v461_v62 = vrot.slane %v4145_v54, 7  ;;  %v310_v6 = vmul.f32 %v3966_v15, %v271_v2 }
  0x4d   : > { %687 = vst [vmem:[#allocation2 + $0xa0] sm:$0xff] %v4092_v25  ;;  %774 = vst [vmem:[#allocation2 + $0xb0] sm:$0xff] %v4087_v22  ;;  %v4136_v50 = vsel %vm454_vm0, %v494_v41, %v495_v42  ;;  %v4167_v63 = vmax.f32 %v371_v57, 0.0  ;;  %v462_v0 = vrot.slane %v4148_v56, 7  ;;  %3349 = vmatprep.subr.bf16.mxu0 %v3699_v53  ;;  %v348_v19 = vadd.f32 %v3973_v18, %v309_v5  ;;  %v3710_v1 = vld [vmem:[%s5179_s3 + $0x118] sm:$0xff]   ;;  %v3703_v2 = vld [vmem:[%s5179_s3 + $0x80] sm:$0xff]  }
  0x4e   : > { %775 = vst [vmem:[#allocation2 + $0xf8] sm:$0xff] %v4089_v23  ;;  %908 = vst [vmem:[#allocation2 + $0x38] sm:$0xff] %v4087_v22  ;;  %v497_v4 = vrot.slane %v4162_v61, 7  ;;  %v349_v20 = vadd.f32 %v3973_v18, %v310_v6  ;;  %v619_v34 = vrot.slane %v4148_v56, 1  ;;  %v276_v6 = vld [vmem:[%s3953_s20 + $0x60] sm:$0xff] }
  0x4f   : > { %909 = vst [vmem:[#allocation2 + $0x80] sm:$0xff] %v4089_v23  ;;  %709 = vst [vmem:[#allocation2 + $0x6d0] sm:$0xff] %v647_v30  ;;  %v1004_v38 = vld [vmem:[#allocation2 + $0x90] sm:$0xff]  ;;  %3236 = vmatpush3.bf16.msra.mxu1 %v3687_v10  ;;  %v1302_v10 = vpack.c.bf16 %v4148_v56, %v4145_v54  ;;  %v498_v12 = vrot.slane %v4167_v63, 7  ;;  %v1410_v17 = vpack.c.bf16 %v4167_v63, %v4162_v61  ;;  %v3707_v30 = vld [vmem:[%s5179_s3 + $0x120] sm:$0xff]  }
  0x50   : > { %589 = vst [vmem:[#allocation2 + $0x7e8] sm:$0xff] %v4097_v27  ;;  %590 = vst [vmem:[#allocation2 + $0x830] sm:$0xff] %v401_v24  ;;  %v1283_v44 = vpack.c.bf16 %v4064_v7, %v1004_v38  ;;  %v1220_v45 = vld [vmem:[#allocation2 + $0x750] sm:$0xff]  ;;  %3237 = vmatprep.subr.bf16.mxu1 %v3688_v26  ;;  %3350 = vmatpush3.bf16.msra.mxu0 %v3701_v58  ;;  %v4202_v26 = vld [vmem:[#allocation2 + $0x18] sm:$0xff]  ;;  %v4209_v28 = vmax.f32 %v349_v20, 0.0 }
  0x51   : > { %798 = vst [vmem:[#allocation2 + $0x770] sm:$0xff] %v4097_v27  ;;  %799 = vst [vmem:[#allocation2 + $0x7b8] sm:$0xff] %v401_v24  ;;  %v1391_v49 = vpack.c.bf16 %v4072_v11, %v1220_v45  ;;  %v4188_v11 = vsel %vm454_vm0, %v461_v62, %v462_v0  ;;  %v4200_v22 = vsel %vm454_vm0, %v497_v4, %v498_v12  ;;  %3351 = vmatprep.subr.bf16.mxu0 %v3706_v29  ;;  %v277_v12 = vld [vmem:[%s3953_s20 + $0x68] sm:$0xff] }
  0x52   : > { %932 = vst [vmem:[#allocation2 + $0x6f8] sm:$0xff] %v4097_v27  ;;  %933 = vst [vmem:[#allocation2 + $0x740] sm:$0xff] %v401_v24  ;;  %2042 = vmatmul.mubr.bf16.gmra.mxu0 %v1283_v44  ;;  %v616_v27 = vrot.slane %v4089_v23, 1  ;;  %v4207_v24 = vmax.f32 %v348_v19, 0.0  ;;  %v272_v23 = vld [vmem:[%s3953_s20 + $0x40] sm:$0xff]  ;;  %v465_v37 = vrot.slane %v4209_v28, 7  ;;  %v1277_v42 = vpack.c.bf16 %v4064_v7, %v4202_v26 }
  0x53   : > { %533 = vst [vmem:[#allocation2 + $0x120] sm:$0xfe] %v458_v33  ;;  %742 = vst [vmem:[#allocation2 + $0xa8] sm:$0xfe] %v458_v33  ;;  %2138 = vmatmul.mubr.bf16.gmra.mxu1 %v1391_v49  ;;  %2049 = vmatprep.mubr.bf16.mxu0 %v1293_v32  ;;  %v311_v38 = vmul.f32 %v3966_v15, %v272_v23  ;;  %v275_v44 = vld [vmem:[%s3953_s20 + $0x58] sm:$0xff]  ;;  %v316_v19 = vmul.f32 %v3966_v15, %v277_v12 }
  0x54   : > { %876 = vst [vmem:[#allocation2 + $0x30] sm:$0xfe] %v458_v33  ;;  %877 = vst [vmem:[#allocation2 + $0x78] sm:$0xff] %v4129_v46  ;;  %3238 = vmatpush3.bf16.msra.mxu1 %v3689_v31  ;;  %2145 = vmatprep.mubr.bf16.mxu1 %v1401_v40  ;;  %v273_v31 = vld [vmem:[%s3953_s20 + $0x48] sm:$0xff]  ;;  %v4220_v32 = vsel %vm611_vm1, %v615_v13, %v616_v27  ;;  %v618_v33 = vrot.slane %v4145_v54, 1  ;;  %v464_v36 = vrot.slane %v4207_v24, 7 }
  0x55   : > { %557 = vst [vmem:[#allocation2 + $0x7e0] sm:$0xfe] %v494_v41  ;;  %766 = vst [vmem:[#allocation2 + $0x768] sm:$0xfe] %v494_v41  ;;  %3239 = vmatprep.subr.bf16.mxu1 %v3690_v39  ;;  %v274_v39 = vld [vmem:[%s3953_s20 + $0x50] sm:$0xff]  ;;  %v312_v43 = vmul.f32 %v3966_v15, %v273_v31  ;;  %3352 = vmatpush3.bf16.msra.mxu0 %v3707_v30  ;;  %v350_v7 = vadd.f32 %v3973_v18, %v311_v38 }
  0x56   : > { %900 = vst [vmem:[#allocation2 + $0x6f0] sm:$0xfe] %v494_v41  ;;  %767 = vst [vmem:[#allocation2 + $0x7b0] sm:$0xff] %v4136_v50  ;;  %v3698_v41 = vld [vmem:[%s5179_s3 + $0xc8] sm:$0xff]   ;;  %v4249_v48 = vsel %vm454_vm0, %v464_v36, %v465_v37  ;;  %v313_v49 = vmul.f32 %v3966_v15, %v274_v39  ;;  %v1311_v53 = vpack.c.bf16 %v4209_v28, %v4207_v24  ;;  %v3712_v13 = vld [vmem:[%s5179_s3 + $0x150] sm:$0xff]  }
  0x57   : > { %901 = vst [vmem:[#allocation2 + $0x738] sm:$0xff] %v4136_v50  ;;  %776 = vst [vmem:[#allocation2 + $0x140] sm:$0xff] %v4145_v54  ;;  %v314_v55 = vmul.f32 %v3966_v15, %v275_v44  ;;  %v4268_v58 = vmax.f32 %v350_v7, 0.0  ;;  %v355_v31 = vadd.f32 %v3973_v18, %v316_v19  ;;  %v4399_v12 = vld [vmem:[%s5178_s2] ss:$0 sm:$0xff] }
  0x58   : > { %910 = vst [vmem:[#allocation2 + $0xc8] sm:$0xff] %v4145_v54  ;;  %777 = vst [vmem:[#allocation2 + $0x188] sm:$0xff] %v4148_v56  ;;  %3240 = vmatpush3.bf16.msra.mxu1 %v3692_v59  ;;  %v351_v54 = vadd.f32 %v3973_v18, %v312_v43  ;;  %v352_v59 = vadd.f32 %v3973_v18, %v313_v49  ;;  %v280_v49 = vld [vmem:[%s3953_s20 + $0x80] sm:$0xff] }
  0x59   : > { %911 = vst [vmem:[#allocation2 + $0x110] sm:$0xff] %v4148_v56  ;;  %800 = vst [vmem:[#allocation2 + $0x800] sm:$0xff] %v4162_v61  ;;  %3241 = vmatprep.subr.bf16.mxu1 %v3694_v60  ;;  %v4265_v56 = vsel %vm611_vm1, %v618_v33, %v619_v34  ;;  %v621_v60 = vrot.slane %v4207_v24, 1  ;;  %v353_v0 = vadd.f32 %v3973_v18, %v314_v55  ;;  %v3713_v33 = vld [vmem:[%s5179_s3 + $0x110] sm:$0xff]   ;;  %v4345_v44 = vmax.f32 %v355_v31, 0.0 }
  0x5a   : > { %934 = vst [vmem:[#allocation2 + $0x788] sm:$0xff] %v4162_v61  ;;  %535 = vst [vmem:[#allocation2 + $0x1b0] sm:$0xfe] %v461_v62  ;;  %v1022_v8 = vld [vmem:[#allocation2 + $0x120] sm:$0xff]  ;;  %v4287_v5 = vmax.f32 %v352_v59, 0.0  ;;  %v3711_v55 = vld [vmem:[%s5179_s3 + $0x1b0] sm:$0xff]  }
  0x5b   : > { %744 = vst [vmem:[#allocation2 + $0x138] sm:$0xfe] %v461_v62  ;;  %878 = vst [vmem:[#allocation2 + $0xc0] sm:$0xfe] %v461_v62  ;;  %v1292_v14 = vpack.c.bf16 %v4129_v46, %v1022_v8  ;;  %v4273_v62 = vmax.f32 %v351_v54, 0.0  ;;  %v622_v8 = vrot.slane %v4209_v28, 1  ;;  %v319_v54 = vmul.f32 %v3966_v15, %v280_v49 }
  0x5c   : > { %801 = vst [vmem:[#allocation2 + $0x848] sm:$0xff] %v4167_v63  ;;  %935 = vst [vmem:[#allocation2 + $0x7d0] sm:$0xff] %v4167_v63  ;;  %v1238_v16 = vld [vmem:[#allocation2 + $0x7e0] sm:$0xff]  ;;  %3242 = vmatpush3.bf16.msra.mxu1 %v3695_v3  ;;  %v4282_v3 = vld [vmem:[#allocation2 + $0x58] sm:$0xff]  ;;  %v631_v49 = vrot.slane %v4345_v44, 1 }
  0x5d   : > { %879 = vst [vmem:[#allocation2 + $0x108] sm:$0xff] %v4188_v11  ;;  %559 = vst [vmem:[#allocation2 + $0x870] sm:$0xfe] %v497_v4  ;;  %v1400_v21 = vpack.c.bf16 %v4136_v50, %v1238_v16  ;;  %2050 = vmatmul.mubr.bf16.gmra.mxu0 %v1292_v14  ;;  %3243 = vmatprep.subr.bf16.mxu1 %v3696_v9  ;;  %v3708_v50 = vld [vmem:[%s5179_s3 + $0x158] sm:$0xff]   ;;  %v468_v9 = vrot.slane %v4273_v62, 7  ;;  %v470_v16 = vrot.slane %v4287_v5, 7 }
  0x5e   : > { %768 = vst [vmem:[#allocation2 + $0x7f8] sm:$0xfe] %v497_v4  ;;  %902 = vst [vmem:[#allocation2 + $0x780] sm:$0xfe] %v497_v4  ;;  %2057 = vmatprep.mubr.bf16.mxu0 %v1302_v10  ;;  %3353 = vmatprep.subr.bf16.mxu0 %v3708_v50  ;;  %v467_v4 = vrot.slane %v4268_v58, 7  ;;  %v4294_v10 = vmax.f32 %v353_v0, 0.0  ;;  %v4309_v20 = vsel %vm611_vm1, %v621_v60, %v622_v8 }
  0x5f   : > { %769 = vst [vmem:[#allocation2 + $0x840] sm:$0xff] %v4200_v22  ;;  %903 = vst [vmem:[#allocation2 + $0x7c8] sm:$0xff] %v4200_v22  ;;  %2146 = vmatmul.mubr.bf16.gmra.mxu1 %v1400_v21  ;;  %v3704_v14 = vld [vmem:[%s5179_s3 + $0x1f8] sm:$0xff]   ;;  %3354 = vmatpush3.bf16.msra.mxu0 %v3710_v1  ;;  %v1320_v30 = vpack.c.bf16 %v4273_v62, %v4268_v58  ;;  %v625_v50 = vrot.slane %v4273_v62, 1 }
  0x60   : > { %690 = vst [vmem:[#allocation2 + $0x178] sm:$0x7f] %v616_v27  ;;  %828 = vst [vmem:[#allocation2 + $0x100] sm:$0x7f] %v616_v27  ;;  %2153 = vmatprep.mubr.bf16.mxu1 %v1410_v17  ;;  %3244 = vmatpush3.bf16.msra.mxu1 %v3697_v35  ;;  %v315_v17 = vmul.f32 %v3966_v15, %v276_v6  ;;  %v279_v35 = vld [vmem:[%s3953_s20 + $0x78] sm:$0xff]  ;;  %v628_v0 = vrot.slane %v4294_v10, 1 }
  0x61   : > { %957 = vst [vmem:[#allocation2 + $0x88] sm:$0x7f] %v616_v27  ;;  %778 = vst [vmem:[#allocation2 + $0x1d0] sm:$0xff] %v4207_v24  ;;  %v1040_v40 = vld [vmem:[#allocation2 + $0x1b0] sm:$0xff]  ;;  %3245 = vmatprep.subr.bf16.mxu1 %v3698_v41  ;;  %v1007_v27 = vld [vmem:[#allocation2 + $0xa8] sm:$0xff]  ;;  %3355 = vmatprep.subr.bf16.mxu0 %v3712_v13  ;;  %v318_v39 = vmul.f32 %v3966_v15, %v279_v35  ;;  %v358_v13 = vadd.f32 %v4399_v12, %v319_v54 }
  0x62   : > { %779 = vst [vmem:[#allocation2 + $0x218] sm:$0xff] %v4209_v28  ;;  %912 = vst [vmem:[#allocation2 + $0x158] sm:$0xff] %v4207_v24  ;;  %v1301_v45 = vpack.c.bf16 %v4188_v11, %v1040_v40  ;;  %v4313_v24 = vsel %vm454_vm0, %v467_v4, %v468_v9  ;;  %v354_v23 = vadd.f32 %v3973_v18, %v315_v17  ;;  %v624_v40 = vrot.slane %v4268_v58, 1  ;;  %v3714_v6 = vld [vmem:[%s5179_s3 + $0x1e8] sm:$0xff]   ;;  %v283_v17 = vld [vmem:[%s3953_s20 + $0x98] sm:$0xff] }
  0x63   : > { %913 = vst [vmem:[#allocation2 + $0x1a0] sm:$0xff] %v4209_v28  ;;  %689 = vst [vmem:[#allocation2 + $0x130] sm:$0xff] %v4220_v32  ;;  %v471_v28 = vrot.slane %v4294_v10, 7  ;;  %v1286_v41 = vpack.c.bf16 %v4129_v46, %v1007_v27  ;;  %3356 = vmatpush3.bf16.msra.mxu0 %v3713_v33  ;;  %v357_v7 = vadd.f32 %v3973_v18, %v318_v39  ;;  %v281_v46 = vld [vmem:[%s3953_s20 + $0x88] sm:$0xff]  ;;  %v3721_v35 = vld [vmem:[%s5179_s3 + $0x100] sm:$0xff]  }
  0x64   : > { %956 = vst [vmem:[#allocation2 + $0x40] sm:$0xff] %v4220_v32  ;;  %692 = vst [vmem:[#allocation2 + $0x208] sm:$0x7f] %v619_v34  ;;  %v1256_v51 = vld [vmem:[#allocation2 + $0x870] sm:$0xff]  ;;  %3246 = vmatpush3.bf16.msra.mxu1 %v3700_v47  ;;  %v4343_v43 = vmax.f32 %v354_v23, 0.0  ;;  %v320_v59 = vmul.f32 %v3966_v15, %v281_v46  ;;  %v4370_v60 = vsel %vm611_vm1, %v624_v40, %v625_v50  ;;  %v3720_v23 = vld [vmem:[%s5179_s3 + $0x140] sm:$0xff]  }
  0x65   : > { %830 = vst [vmem:[#allocation2 + $0x190] sm:$0x7f] %v619_v34  ;;  %959 = vst [vmem:[#allocation2 + $0x118] sm:$0x7f] %v619_v34  ;;  %v1409_v57 = vpack.c.bf16 %v4200_v22, %v1256_v51  ;;  %2058 = vmatmul.mubr.bf16.gmra.mxu0 %v1301_v45  ;;  %3247 = vmatprep.subr.bf16.mxu1 %v3702_v52  ;;  %v3738_v22 = vld [vmem:[#allocation2 + $0x8] sm:$0xff]  ;;  %v278_v34 = vld [vmem:[%s3953_s20 + $0x70] sm:$0xff]  ;;  %v4334_v37 = vsel %vm454_vm0, %v470_v16, %v471_v28 }
  0x66   : > { %537 = vst [vmem:[#allocation2 + $0x240] sm:$0xfe] %v464_v36  ;;  %746 = vst [vmem:[#allocation2 + $0x1c8] sm:$0xfe] %v464_v36  ;;  %2065 = vmatprep.mubr.bf16.mxu0 %v1311_v53  ;;  %v1276_v26 = vpack.c.bf16 %v4282_v3, %v3738_v22  ;;  %v317_v38 = vmul.f32 %v3966_v15, %v278_v34  ;;  %v3709_v45 = vld [vmem:[%s5179_s3 + $0x1f0] sm:$0xff]   ;;  %v627_v51 = vrot.slane %v4287_v5, 1 }
  0x67   : > { %880 = vst [vmem:[#allocation2 + $0x150] sm:$0xfe] %v464_v36  ;;  %881 = vst [vmem:[#allocation2 + $0x198] sm:$0xff] %v4249_v48  ;;  %2154 = vmatmul.mubr.bf16.gmra.mxu1 %v1409_v57  ;;  %v3705_v36 = vld [vmem:[%s5179_s3 + $0x1b8] sm:$0xff]   ;;  %v473_v52 = vrot.slane %v4343_v43, 7  ;;  %v474_v53 = vrot.slane %v4345_v44, 7  ;;  %v1329_v9 = vpack.c.bf16 %v4294_v10, %v4287_v5 }
  0x68   : > { %958 = vst [vmem:[#allocation2 + $0xd0] sm:$0xff] %v4265_v56  ;;  %780 = vst [vmem:[#allocation2 + $0x260] sm:$0xff] %v4268_v58  ;;  %2194 = vmatprep.mubr.bf16.mxu1 %v1277_v42  ;;  %3248 = vmatpush3.bf16.msra.mxu1 %v3703_v2  ;;  %v4340_v42 = vld [vmem:[#allocation2 + $0xe8] sm:$0xff]  ;;  %v356_v47 = vadd.f32 %v3973_v18, %v317_v38  ;;  %v1025_v2 = vld [vmem:[#allocation2 + $0x138] sm:$0xff]  ;;  %v4423_v28 = vmax.f32 %v358_v13, 0.0 }
  0x69   : > { %914 = vst [vmem:[#allocation2 + $0x1e8] sm:$0xff] %v4268_v58  ;;  %781 = vst [vmem:[#allocation2 + $0x2a8] sm:$0xff] %v4273_v62  ;;  %3457 = vmatprep.subr.bf16.mxu1 %v3704_v14  ;;  %v4366_v58 = vmax.f32 %v357_v7, 0.0  ;;  %v3716_v15 = vld [vmem:[%s5179_s3 + $0x148] sm:$0xff]   ;;  %v1285_v1 = vpack.c.bf16 %v4340_v42, %v4092_v25  ;;  %v359_v14 = vadd.f32 %v4399_v12, %v320_v59  ;;  %v284_v40 = vld [vmem:[%s3953_s20 + $0xa0] sm:$0xff] }
  0x6a   : > { %915 = vst [vmem:[#allocation2 + $0x230] sm:$0xff] %v4273_v62  ;;  %539 = vst [vmem:[#allocation2 + $0x2d0] sm:$0xfe] %v467_v4  ;;  %v4364_v57 = vmax.f32 %v356_v47, 0.0  ;;  %v4373_v62 = vsel %vm454_vm0, %v473_v52, %v474_v53  ;;  %v3717_v25 = vld [vmem:[%s5179_s3 + $0x108] sm:$0xff]   ;;  %3357 = vmatprep.subr.bf16.mxu0 %v3716_v15  ;;  %v1295_v27 = vpack.c.bf16 %v4188_v11, %v1025_v2  ;;  %v479_v33 = vrot.slane %v4423_v28, 7 }
  0x6b   : > { %748 = vst [vmem:[#allocation2 + $0x258] sm:$0xfe] %v467_v4  ;;  %882 = vst [vmem:[#allocation2 + $0x1e0] sm:$0xfe] %v467_v4  ;;  %v477_v4 = vrot.slane %v4366_v58, 7  ;;  %3358 = vmatpush3.bf16.msra.mxu0 %v3717_v25  ;;  %v1033_v42 = vld [vmem:[#allocation2 + $0x178] sm:$0xff]  ;;  %v4471_v59 = vpack.c.bf16 %v4345_v44, %v4343_v43 }
  0x6c   : > { %782 = vst [vmem:[#allocation2 + $0x2f0] sm:$0xff] %v4287_v5  ;;  %916 = vst [vmem:[#allocation2 + $0x278] sm:$0xff] %v4287_v5  ;;  %v476_v3 = vrot.slane %v4364_v57, 7  ;;  %v3715_v5 = vld [vmem:[%s5179_s3 + $0x1a8] sm:$0xff]   ;;  %3359 = vmatprep.subr.bf16.mxu0 %v3720_v23  ;;  %v3719_v47 = vld [vmem:[%s5179_s3 + $0x1a0] sm:$0xff]   ;;  %v634_v2 = vrot.slane %v4366_v58, 1 }
  0x6d   : > { %694 = vst [vmem:[#allocation2 + $0x298] sm:$0x7f] %v622_v8  ;;  %832 = vst [vmem:[#allocation2 + $0x220] sm:$0x7f] %v622_v8  ;;  %v1058_v21 = vld [vmem:[#allocation2 + $0x240] sm:$0xff]  ;;  %v285_v7 = vld [vmem:[%s3953_s20 + $0xa8] sm:$0xff] }
  0x6e   : > { %961 = vst [vmem:[#allocation2 + $0x1a8] sm:$0x7f] %v622_v8  ;;  %783 = vst [vmem:[#allocation2 + $0x338] sm:$0xff] %v4294_v10  ;;  %v1310_v29 = vpack.c.bf16 %v4249_v48, %v1058_v21  ;;  %v4406_v19 = vsel %vm454_vm0, %v476_v3, %v477_v4  ;;  %v1043_v46 = vld [vmem:[#allocation2 + $0x1c8] sm:$0xff]  ;;  %v3724_v4 = vld [vmem:[%s5179_s3 + $0x198] sm:$0xff]  }
  0x6f   : > { %917 = vst [vmem:[#allocation2 + $0x2c0] sm:$0xff] %v4294_v10  ;;  %960 = vst [vmem:[#allocation2 + $0x160] sm:$0xff] %v4309_v20  ;;  %2195 = vmatmul.mubr.bf16.vlgmr.msra.gmra.mxu1 %v1276_v26  ;;  %v4414_v10 = vld [vmem:[%s5177_s1] ss:$0 sm:$0xff]  ;;  %v4419_v26 = vsel %vm611_vm1, %v627_v51, %v628_v0  ;;  %3360 = vmatpush3.bf16.msra.mxu0 %v3721_v35 }
  0x70   : > { %883 = vst [vmem:[#allocation2 + $0x228] sm:$0xff] %v4313_v24  ;;  %541 = vst [vmem:[#allocation2 + $0x360] sm:$0xfe] %v470_v16  ;;  %2066 = vmatmul.mubr.bf16.gmra.mxu0 %v1310_v29  ;;  %3458 = vmatpush3.bf16.msra.mxu1 %v3705_v36  ;;  %v322_v22 = vmul.f32 %v4414_v10, %v283_v17  ;;  %v4425_v29 = vmax.f32 %v359_v14, 0.0  ;;  %v324_v54 = vmul.f32 %v4414_v10, %v285_v7 }
  0x71   : > { %750 = vst [vmem:[#allocation2 + $0x2e8] sm:$0xfe] %v470_v16  ;;  %884 = vst [vmem:[#allocation2 + $0x270] sm:$0xfe] %v470_v16  ;;  %2073 = vmatprep.mubr.bf16.mxu0 %v1320_v30  ;;  %v1076_v18 = vld [vmem:[#allocation2 + $0x2d0] sm:$0xff]  ;;  %2202 = vmatprep.mubr.bf16.mxu1 %v1286_v41  ;;  %v3718_v30 = vld [vmem:[%s5179_s3 + $0x1e0] sm:$0xff]  }
  0x72   : > { %885 = vst [vmem:[#allocation2 + $0x2b8] sm:$0xff] %v4334_v37  ;;  %918 = vst [vmem:[#allocation2 + $0x308] sm:$0xff] %v4343_v43  ;;  %3459 = vmatprep.subr.bf16.mxu1 %v3709_v45  ;;  %v1319_v8 = vpack.c.bf16 %v4313_v24, %v1076_v18  ;;  %v282_v16 = vld [vmem:[%s3953_s20 + $0x90] sm:$0xff]  ;;  %v361_v31 = vadd.f32 %v4399_v12, %v322_v22  ;;  %v480_v34 = vrot.slane %v4425_v29, 7  ;;  %v630_v41 = vrot.slane %v4343_v43, 1 }
  0x73   : > { %919 = vst [vmem:[#allocation2 + $0x350] sm:$0xff] %v4345_v44  ;;  %696 = vst [vmem:[#allocation2 + $0x328] sm:$0x7f] %v625_v50  ;;  %v321_v21 = vmul.f32 %v4414_v10, %v282_v16  ;;  %v363_v43 = vadd.f32 %v4399_v12, %v324_v54  ;;  %v633_v44 = vrot.slane %v4364_v57, 1  ;;  %v637_v25 = vrot.slane %v4425_v29, 1 }
  0x74   : > { %834 = vst [vmem:[#allocation2 + $0x2b0] sm:$0x7f] %v625_v50  ;;  %963 = vst [vmem:[#allocation2 + $0x238] sm:$0x7f] %v625_v50  ;;  %3460 = vmatpush3.bf16.msra.mxu1 %v3711_v55  ;;  %v4445_v39 = vmax.f32 %v361_v31, 0.0  ;;  %v4450_v45 = vsel %vm454_vm0, %v479_v33, %v480_v34  ;;  %v4466_v18 = vsel %vm611_vm1, %v630_v41, %v631_v49  ;;  %v3725_v31 = vld [vmem:[%s5179_s3 + $0x1d0] sm:$0xff]  }
  0x75   : > { %543 = vst [vmem:[#allocation2 + $0x3f0] sm:$0xfe] %v473_v52  ;;  %752 = vst [vmem:[#allocation2 + $0x378] sm:$0xfe] %v473_v52  ;;  %3461 = vmatprep.subr.bf16.mxu1 %v3714_v6  ;;  %v360_v11 = vadd.f32 %v4399_v12, %v321_v21  ;;  %v1294_v55 = vpack.c.bf16 %v1033_v42, %v4220_v32  ;;  %v1304_v32 = vpack.c.bf16 %v4249_v48, %v1043_v46  ;;  %v3741_v21 = vld [vmem:[#allocation2 + $0x758] sm:$0xff] }
  0x76   : > { %886 = vst [vmem:[#allocation2 + $0x300] sm:$0xfe] %v473_v52  ;;  %962 = vst [vmem:[#allocation2 + $0x1f0] sm:$0xff] %v4370_v60  ;;  %v483_v51 = vrot.slane %v4445_v39, 7  ;;  %v323_v52 = vmul.f32 %v4414_v10, %v284_v40  ;;  %v636_v48 = vrot.slane %v4423_v28, 1  ;;  %v4503_v13 = vsel %vm611_vm1, %v633_v44, %v634_v2  ;;  %v3742_v40 = vld [vmem:[#allocation2 + $0x7a0] sm:$0xff] }
  0x77   : > { %887 = vst [vmem:[#allocation2 + $0x348] sm:$0xff] %v4373_v62  ;;  %920 = vst [vmem:[#allocation2 + $0x398] sm:$0xff] %v4364_v57  ;;  %2203 = vmatmul.mubr.bf16.gmra.mxu1 %v1285_v1  ;;  %v1094_v36 = vld [vmem:[#allocation2 + $0x360] sm:$0xff]  ;;  %v4443_v38 = vmax.f32 %v360_v11, 0.0  ;;  %v3722_v1 = vld [vmem:[%s5179_s3 + $0x1d8] sm:$0xff]   ;;  %v648_v22 = vrot.slane %v3741_v21, 1  ;;  %v4531_v42 = vpack.c.bf16 %v4366_v58, %v4364_v57  ;;  %v4568_v44 = vpack.c.bf16 %v4425_v29, %v4423_v28 }
  0x78   : > { %921 = vst [vmem:[#allocation2 + $0x3e0] sm:$0xff] %v4366_v58  ;;  %698 = vst [vmem:[#allocation2 + $0x3b8] sm:$0x7f] %v628_v0  ;;  %2074 = vmatmul.mubr.bf16.gmra.mxu0 %v1319_v8  ;;  %2210 = vmatprep.mubr.bf16.mxu1 %v1295_v27  ;;  %v1328_v53 = vpack.c.bf16 %v4334_v37, %v1094_v36  ;;  %v4498_v8 = vld [vmem:[#allocation2 + $0x208] sm:$0xff]  ;;  %v4511_v17 = vsel %vm611_vm1, %v636_v48, %v637_v25  ;;  %v1061_v27 = vld [vmem:[#allocation2 + $0x258] sm:$0xff]  ;;  %v640_v11 = vrot.slane %v4445_v39, 1 }
  0x79   : > { %836 = vst [vmem:[#allocation2 + $0x340] sm:$0x7f] %v628_v0  ;;  %965 = vst [vmem:[#allocation2 + $0x2c8] sm:$0x7f] %v628_v0  ;;  %2081 = vmatprep.mubr.bf16.mxu0 %v1329_v9  ;;  %3462 = vmatpush3.bf16.msra.mxu1 %v3715_v5  ;;  %v482_v50 = vrot.slane %v4443_v38, 7  ;;  %v362_v0 = vadd.f32 %v4399_v12, %v323_v52  ;;  %v4500_v9 = vmax.f32 %v363_v43, 0.0 }
  0x7a   : > { %545 = vst [vmem:[#allocation2 + $0x480] sm:$0xfe] %v476_v3  ;;  %754 = vst [vmem:[#allocation2 + $0x408] sm:$0xfe] %v476_v3  ;;  %3463 = vmatprep.subr.bf16.mxu1 %v3718_v30  ;;  %v639_v5 = vrot.slane %v4443_v38, 1  ;;  %v1303_v23 = vpack.c.bf16 %v4498_v8, %v4265_v56  ;;  %v649_v41 = vrot.slane %v3742_v40, 1 }
  0x7b   : > { %888 = vst [vmem:[#allocation2 + $0x390] sm:$0xfe] %v476_v3  ;;  %889 = vst [vmem:[#allocation2 + $0x3d8] sm:$0xff] %v4406_v19  ;;  %v4474_v15 = vsel %vm454_vm0, %v482_v50, %v483_v51  ;;  %v4489_v3 = vld [vmem:[%s5179_s3 + $0x238] sm:$0xff]   ;;  %v4494_v6 = vmax.f32 %v362_v0, 0.0  ;;  %v486_v30 = vrot.slane %v4500_v9, 7 }
  0x7c   : > { %964 = vst [vmem:[#allocation2 + $0x280] sm:$0xff] %v4419_v26  ;;  %922 = vst [vmem:[#allocation2 + $0x428] sm:$0xff] %v4423_v28  ;;  %3593 = vmatprep.subr.bf16.mxu0 %v4489_v3  ;;  %v1112_v14 = vld [vmem:[#allocation2 + $0x3f0] sm:$0xff]  ;;  %v643_v36 = vrot.slane %v4500_v9, 1  ;;  %v4536_v7 = vsel %vm611_vm1, %v639_v5, %v640_v11  ;;  %v654_v52 = vrot.slane %v4162_v61, 1  ;;  %v1079_v0 = vld [vmem:[#allocation2 + $0x2e8] sm:$0xff] }
  0x7d   : > { %923 = vst [vmem:[#allocation2 + $0x470] sm:$0xff] %v4425_v29  ;;  %547 = vst [vmem:[#allocation2 + $0x510] sm:$0xfe] %v479_v33  ;;  %3464 = vmatpush3.bf16.msra.mxu1 %v3719_v47  ;;  %v485_v16 = vrot.slane %v4494_v6, 7  ;;  %v1337_v34 = vpack.c.bf16 %v4373_v62, %v1112_v14  ;;  %v1313_v47 = vpack.c.bf16 %v4313_v24, %v1061_v27  ;;  %v3727_v57 = vld [vmem:[%s5179_s3 + $0x190] sm:$0xff]   ;;  %v1097_v8 = vld [vmem:[#allocation2 + $0x378] sm:$0xff] }
  0x7e   : > { %756 = vst [vmem:[#allocation2 + $0x498] sm:$0xfe] %v479_v33  ;;  %890 = vst [vmem:[#allocation2 + $0x420] sm:$0xfe] %v479_v33  ;;  %3465 = vmatprep.subr.bf16.mxu1 %v3722_v1  ;;  %v642_v33 = vrot.slane %v4494_v6, 1  ;;  %v4546_v24 = vsel %vm611_vm1, %v648_v22, %v649_v41  ;;  %v4582_v14 = vpack.c.bf16 %v4445_v39, %v4443_v38  ;;  %v294_v5 = vld [vmem:[%s3953_s20 + $0xf0] sm:$0xff] }
  0x7f   : > { %891 = vst [vmem:[#allocation2 + $0x468] sm:$0xff] %v4450_v45  ;;  %924 = vst [vmem:[#allocation2 + $0x4b8] sm:$0xff] %v4443_v38  ;;  %2211 = vmatmul.mubr.bf16.gmra.mxu1 %v1294_v55  ;;  %v4526_v35 = vsel %vm454_vm0, %v485_v16, %v486_v30  ;;  %v295_v21 = vld [vmem:[%s3953_s20 + $0xf8] sm:$0xff]  ;;  %v1331_v22 = vpack.c.bf16 %v4373_v62, %v1097_v8  ;;  %v333_v27 = vmul.f32 %v4414_v10, %v294_v5  ;;  %s262_s20 = scalar_lea.vmem %s5182_s6, %s3041_s13 }
  0x80   : > { %925 = vst [vmem:[#allocation2 + $0x500] sm:$0xff] %v4445_v39  ;;  %700 = vst [vmem:[#allocation2 + $0x448] sm:$0x7f] %v631_v49  ;;  %2082 = vmatmul.mubr.bf16.gmra.mxu0 %v1328_v53  ;;  %2218 = vmatprep.mubr.bf16.mxu1 %v1304_v32  ;;  %v4543_v58 = vsel %vm611_vm1, %v642_v33, %v643_v36  ;;  %v655_v53 = vrot.slane %v4167_v63, 1  ;;  %v1069_v63 = vld [vmem:[#allocation2 + $0x298] sm:$0xff]  ;;  %v3728_v32 = vld [vmem:[%s5179_s3 + $0x1c8] sm:$0xff]   ;;  %v334_v30 = vmul.f32 %v4414_v10, %v295_v21 }
  0x81   : > { %838 = vst [vmem:[#allocation2 + $0x3d0] sm:$0x7f] %v631_v49  ;;  %967 = vst [vmem:[#allocation2 + $0x358] sm:$0x7f] %v631_v49  ;;  %2089 = vmatprep.mubr.bf16.mxu0 %v4471_v59  ;;  %3466 = vmatpush3.bf16.msra.mxu1 %v3724_v4  ;;  %v3743_v49 = vld [vmem:[#allocation2 + $0x7e8] sm:$0xff]  ;;  %v1130_v55 = vld [vmem:[#allocation2 + $0x480] sm:$0xff]  ;;  %v1312_v43 = vpack.c.bf16 %v1069_v63, %v4309_v20 }
  0x82   : > { %549 = vst [vmem:[#allocation2 + $0x5a0] sm:$0xfe] %v482_v50  ;;  %758 = vst [vmem:[#allocation2 + $0x528] sm:$0xfe] %v482_v50  ;;  %3467 = vmatprep.subr.bf16.mxu1 %v3725_v31  ;;  %v651_v46 = vrot.slane %v3743_v49, 1  ;;  %v4558_v61 = vsel %vm611_vm1, %v654_v52, %v655_v53  ;;  %v1346_v1 = vpack.c.bf16 %v4406_v19, %v1130_v55  ;;  %v3730_v4 = vld [vmem:[%s5179_s3 + $0x188] sm:$0xff]  }
  0x83   : > { %892 = vst [vmem:[#allocation2 + $0x4b0] sm:$0xfe] %v482_v50  ;;  %966 = vst [vmem:[#allocation2 + $0x310] sm:$0xff] %v4466_v18  ;;  %v3744_v50 = vld [vmem:[#allocation2 + $0x830] sm:$0xff]  ;;  %v373_v38 = vadd.f32 %v4399_v12, %v334_v30  ;;  %v3745_v52 = vld [vmem:[#allocation2 + $0xa0] sm:$0xff] }
  0x84   : > { %893 = vst [vmem:[#allocation2 + $0x4f8] sm:$0xff] %v4474_v15  ;;  %702 = vst [vmem:[#allocation2 + $0x4d8] sm:$0x7f] %v634_v2  ;;  %v652_v51 = vrot.slane %v3744_v50, 1  ;;  %v1148_v48 = vld [vmem:[#allocation2 + $0x510] sm:$0xff] }
  0x85   : > { %840 = vst [vmem:[#allocation2 + $0x460] sm:$0x7f] %v634_v2  ;;  %969 = vst [vmem:[#allocation2 + $0x3e8] sm:$0x7f] %v634_v2  ;;  %3468 = vmatpush3.bf16.msra.mxu1 %v3727_v57  ;;  %v1322_v2 = vpack.c.bf16 %v4334_v37, %v1079_v0  ;;  %v3731_v37 = vld [vmem:[%s5179_s3 + $0x1c0] sm:$0xff]   ;;  %v1355_v28 = vpack.c.bf16 %v4450_v45, %v1148_v48  ;;  %v405_v33 = vmax.f32 %v373_v38, 0.0 }
  0x86   : > { %926 = vst [vmem:[#allocation2 + $0x548] sm:$0xff] %v4494_v6  ;;  %968 = vst [vmem:[#allocation2 + $0x3a0] sm:$0xff] %v4503_v13  ;;  %v4553_v54 = vsel %vm611_vm1, %v651_v46, %v652_v51  ;;  %3469 = vmatprep.subr.bf16.mxu1 %v3728_v32  ;;  %v1000_v57 = vld [vmem:[#allocation2 + $0x70] sm:$0xff]  ;;  %v999_v32 = vld [vmem:[#allocation2 + $0x68] sm:$0xff] }
  0x87   : > { %704 = vst [vmem:[#allocation2 + $0x568] sm:$0x7f] %v637_v25  ;;  %842 = vst [vmem:[#allocation2 + $0x4f0] sm:$0x7f] %v637_v25  ;;  %2219 = vmatmul.mubr.bf16.gmra.mxu1 %v1303_v23  ;;  %v372_v23 = vadd.f32 %v4399_v12, %v333_v27  ;;  %v736_v40 = vrot.slane %v405_v33, 7  ;;  %v821_v12 = vrot.slane %v405_v33, 1 }
  0x88   : > { %971 = vst [vmem:[#allocation2 + $0x478] sm:$0x7f] %v637_v25  ;;  %927 = vst [vmem:[#allocation2 + $0x590] sm:$0xff] %v4500_v9  ;;  %2090 = vmatmul.mubr.bf16.gmra.mxu0 %v1337_v34  ;;  %2226 = vmatprep.mubr.bf16.mxu1 %v1313_v47  ;;  %v1087_v25 = vld [vmem:[#allocation2 + $0x328] sm:$0xff]  ;;  %v1036_v21 = vld [vmem:[#allocation2 + $0x190] sm:$0xff] }
  0x89   : > { %970 = vst [vmem:[#allocation2 + $0x430] sm:$0xff] %v4511_v17  ;;  %551 = vst [vmem:[#allocation2 + $0x630] sm:$0xfe] %v485_v16  ;;  %2097 = vmatprep.mubr.bf16.mxu0 %v4531_v42  ;;  %3470 = vmatpush3.bf16.msra.mxu1 %v3730_v4  ;;  %v1321_v29 = vpack.c.bf16 %v1087_v25, %v4370_v60  ;;  %v1166_v39 = vld [vmem:[#allocation2 + $0x5a0] sm:$0xff]  ;;  %v404_v31 = vmax.f32 %v372_v23, 0.0  ;;  %v1115_v34 = vld [vmem:[#allocation2 + $0x408] sm:$0xff]  ;;  %v1297_v23 = vpack.c.bf16 %v1036_v21, %v4265_v56 }
  0x8a   : > { %760 = vst [vmem:[#allocation2 + $0x5b8] sm:$0xfe] %v485_v16  ;;  %894 = vst [vmem:[#allocation2 + $0x540] sm:$0xfe] %v485_v16  ;;  %3471 = vmatprep.subr.bf16.mxu1 %v3731_v37  ;;  %v3733_v16 = vld [vmem:[%s5179_s3 + $0x180] sm:$0xff]   ;;  %v1364_v62 = vpack.c.bf16 %v4474_v15, %v1166_v39  ;;  %v1340_v47 = vpack.c.bf16 %v4406_v19, %v1115_v34  ;;  %v1123_v50 = vld [vmem:[#allocation2 + $0x448] sm:$0xff] }
  0x8b   : > { %895 = vst [vmem:[#allocation2 + $0x588] sm:$0xff] %v4526_v35  ;;  %706 = vst [vmem:[#allocation2 + $0x5f8] sm:$0x7f] %v640_v11  ;;  %v1339_v19 = vpack.c.bf16 %v1123_v50, %v4466_v18  ;;  %v4612_v0 = vpack.c.bf16 %v405_v33, %v404_v31  ;;  %v1018_v4 = vld [vmem:[#allocation2 + $0x100] sm:$0xff]  ;;  %v3746_v37 = vld [vmem:[#allocation2 + $0x130] sm:$0xff] }
  0x8c   : > { %844 = vst [vmem:[#allocation2 + $0x580] sm:$0x7f] %v640_v11  ;;  %973 = vst [vmem:[#allocation2 + $0x508] sm:$0x7f] %v640_v11  ;;  %v1105_v11 = vld [vmem:[#allocation2 + $0x3b8] sm:$0xff]  ;;  %v3732_v38 = vld [vmem:[%s5179_s3 + $0x220] sm:$0xff]  }
  0x8d   : > { %972 = vst [vmem:[#allocation2 + $0x4c0] sm:$0xff] %v4536_v7  ;;  %708 = vst [vmem:[#allocation2 + $0x688] sm:$0x7f] %v643_v36  ;;  %3472 = vmatpush3.bf16.msra.mxu1 %v3733_v16  ;;  %v1330_v10 = vpack.c.bf16 %v1105_v11, %v4419_v26  ;;  %v1017_v16 = vld [vmem:[#allocation2 + $0xf8] sm:$0xff]  ;;  %v1026_v39 = vld [vmem:[#allocation2 + $0x140] sm:$0xff] }
  0x8e   : > { %846 = vst [vmem:[#allocation2 + $0x610] sm:$0x7f] %v643_v36  ;;  %975 = vst [vmem:[#allocation2 + $0x598] sm:$0x7f] %v643_v36  ;;  %v735_v36 = vrot.slane %v404_v31, 7  ;;  %v1159_v5 = vld [vmem:[#allocation2 + $0x568] sm:$0xff] }
  0x8f   : > { %712 = vst [vmem:[#allocation2 + $0x7a8] sm:$0x7f] %v649_v41  ;;  %850 = vst [vmem:[#allocation2 + $0x730] sm:$0x7f] %v649_v41  ;;  %2227 = vmatmul.mubr.bf16.gmra.mxu1 %v1312_v43  ;;  %v1141_v43 = vld [vmem:[#allocation2 + $0x4d8] sm:$0xff]  ;;  %v1357_v30 = vpack.c.bf16 %v1159_v5, %v4511_v17  ;;  %v1035_v11 = vld [vmem:[#allocation2 + $0x188] sm:$0xff] }
  0x90   : > { %979 = vst [vmem:[#allocation2 + $0x6b8] sm:$0x7f] %v649_v41  ;;  %974 = vst [vmem:[#allocation2 + $0x550] sm:$0xff] %v4543_v58  ;;  %2098 = vmatmul.mubr.bf16.gmra.mxu0 %v1346_v1  ;;  %2234 = vmatprep.mubr.bf16.mxu1 %v1322_v2  ;;  %v4599_v41 = vpack.c.bf16 %v4500_v9, %v4494_v6  ;;  %v4603_v49 = vsel %vm454_vm0, %v735_v36, %v736_v40  ;;  %v1184_v46 = vld [vmem:[#allocation2 + $0x630] sm:$0xff]  ;;  %v1133_v6 = vld [vmem:[#allocation2 + $0x498] sm:$0xff]  ;;  %v820_v9 = vrot.slane %v404_v31, 1 }
  0x91   : > { %711 = vst [vmem:[#allocation2 + $0x760] sm:$0xff] %v4546_v24  ;;  %714 = vst [vmem:[#allocation2 + $0x838] sm:$0x7f] %v652_v51  ;;  %2105 = vmatprep.mubr.bf16.mxu0 %v4568_v44  ;;  %v1349_v63 = vpack.c.bf16 %v4450_v45, %v1133_v6  ;;  %v990_v1 = vld [vmem:[#allocation2 + $0x20] sm:$0xff]  ;;  %v1151_v2 = vld [vmem:[#allocation2 + $0x528] sm:$0xff]  ;;  %v1348_v25 = vpack.c.bf16 %v1141_v43, %v4503_v13 }
  0x92   : > { %852 = vst [vmem:[#allocation2 + $0x7c0] sm:$0x7f] %v652_v51  ;;  %981 = vst [vmem:[#allocation2 + $0x748] sm:$0x7f] %v652_v51  ;;  %v1373_v51 = vpack.c.bf16 %v4526_v35, %v1184_v46  ;;  %v4609_v55 = vsel %vm611_vm1, %v820_v9, %v821_v12  ;;  %v1278_v48 = vpack.c.bf16 %v999_v32, %v990_v1  ;;  %v3726_v45 = vld [vmem:[%s5179_s3 + $0x230] sm:$0xff]   ;;  %v1177_v31 = vld [vmem:[#allocation2 + $0x5f8] sm:$0xff] }
  0x93   : > { %713 = vst [vmem:[#allocation2 + $0x7f0] sm:$0xff] %v4553_v54  ;;  %716 = vst [vmem:[#allocation2 + $0x8c8] sm:$0x7f] %v655_v53  ;;  %v1358_v8 = vpack.c.bf16 %v4474_v15, %v1151_v2  ;;  %v3729_v15 = vld [vmem:[%s5179_s3 + $0x228] sm:$0xff]   ;;  %v1054_v33 = vld [vmem:[#allocation2 + $0x220] sm:$0xff] }
  0x94   : > { %854 = vst [vmem:[#allocation2 + $0x850] sm:$0x7f] %v655_v53  ;;  %983 = vst [vmem:[#allocation2 + $0x7d8] sm:$0x7f] %v655_v53  ;;  %v1279_v53 = vpack.c.bf16 %v1000_v57, %v3745_v52  ;;  %v1187_v34 = vld [vmem:[#allocation2 + $0x648] sm:$0xff]  ;;  %v3734_v56 = vld [vmem:[%s5179_s3 + $0x218] sm:$0xff]   ;;  %v1306_v40 = vpack.c.bf16 %v1054_v33, %v4309_v20 }
  0x95   : > { %715 = vst [vmem:[#allocation2 + $0x880] sm:$0xff] %v4558_v61  ;;  %770 = vst [vmem:[#allocation2 + $0x888] sm:$0xfe] %v735_v36  ;;  %v1053_v46 = vld [vmem:[#allocation2 + $0x218] sm:$0xff]  ;;  %v1195_v57 = vld [vmem:[#allocation2 + $0x688] sm:$0xff] }
  0x96   : > { %904 = vst [vmem:[#allocation2 + $0x810] sm:$0xfe] %v735_v36  ;;  %856 = vst [vmem:[#allocation2 + $0x8e0] sm:$0x7f] %v821_v12  ;;  %v1366_v36 = vpack.c.bf16 %v1177_v31, %v4536_v7  ;;  %v1072_v50 = vld [vmem:[#allocation2 + $0x2b0] sm:$0xff]  ;;  %v1205_v6 = vld [vmem:[#allocation2 + $0x6d8] sm:$0xff] }
  0x97   : > { %2235 = vmatmul.mubr.bf16.gmra.mxu1 %v1321_v29  ;;  %985 = vst [vmem:[#allocation2 + $0x868] sm:$0x7f] %v821_v12  ;;  %v1008_v29 = vld [vmem:[#allocation2 + $0xb0] sm:$0xff]  ;;  %v1214_v9 = vld [vmem:[#allocation2 + $0x720] sm:$0xff]  ;;  %v3736_v20 = vld [vmem:[%s5179_s3 + $0x208] sm:$0xff]   ;;  %v1315_v52 = vpack.c.bf16 %v1072_v50, %v4370_v60 }
  0x98   : > { %2106 = vmatmul.mubr.bf16.gmra.mxu0 %v1355_v28  ;;  %2242 = vmatprep.mubr.bf16.mxu1 %v1331_v22  ;;  %v1288_v28 = vpack.c.bf16 %v1018_v4, %v3746_v37  ;;  %v1169_v22 = vld [vmem:[#allocation2 + $0x5b8] sm:$0xff]  ;;  %v1287_v27 = vpack.c.bf16 %v1017_v16, %v1008_v29  ;;  %v3735_v12 = vld [vmem:[%s5179_s3 + $0x210] sm:$0xff]   ;;  %v1062_v1 = vld [vmem:[#allocation2 + $0x260] sm:$0xff] }
  0x99   : > { %2113 = vmatprep.mubr.bf16.mxu0 %v4582_v14  ;;  %v1071_v32 = vld [vmem:[#allocation2 + $0x2a8] sm:$0xff]  ;;  %v1213_v43 = vld [vmem:[#allocation2 + $0x718] sm:$0xff]  ;;  %v1090_v2 = vld [vmem:[#allocation2 + $0x340] sm:$0xff] }
  0x9a   : > { %v1223_v4 = vld [vmem:[#allocation2 + $0x768] sm:$0xff]  ;;  %v1314_v60 = vpack.c.bf16 %v1071_v32, %v1062_v1  ;;  %v1324_v37 = vpack.c.bf16 %v1090_v2, %v4419_v26  ;;  %v1089_v29 = vld [vmem:[#allocation2 + $0x338] sm:$0xff]  ;;  %v1108_v5 = vld [vmem:[#allocation2 + $0x3d0] sm:$0xff] }
  0x9b   : > { %v1231_v16 = vld [vmem:[#allocation2 + $0x7a8] sm:$0xff]  ;;  %v1241_v21 = vld [vmem:[#allocation2 + $0x7f8] sm:$0xff]  ;;  %v1144_v33 = vld [vmem:[#allocation2 + $0x4f0] sm:$0xff] }
  0x9c   : > { %v1249_v26 = vld [vmem:[#allocation2 + $0x838] sm:$0xff]  ;;  %v1019_v50 = vld [vmem:[#allocation2 + $0x108] sm:$0xff] }
  0x9d   : > { %v1197_v2 = vld [vmem:[#allocation2 + $0x698] sm:$0xff] }
  0x9f   : > { %2243 = vmatmul.mubr.bf16.gmra.mxu1 %v1330_v10 }
  0xa0   : > { %2114 = vmatmul.mubr.bf16.gmra.mxu0 %v1364_v62  ;;  %2250 = vmatprep.mubr.bf16.mxu1 %v1340_v47  ;;  %v1196_v62 = vld [vmem:[#allocation2 + $0x690] sm:$0xff] }
  0xa1   : > { %2121 = vmatprep.mubr.bf16.mxu0 %v4599_v41  ;;  %v1376_v10 = vpack.c.bf16 %v1196_v62, %v1187_v34  ;;  %v1044_v47 = vld [vmem:[#allocation2 + $0x1d0] sm:$0xff]  ;;  %v993_v34 = vld [vmem:[#allocation2 + $0x38] sm:$0xff]  ;;  %v1002_v62 = vld [vmem:[#allocation2 + $0x80] sm:$0xff] }
  0xa7   : > { %2251 = vmatmul.mubr.bf16.gmra.mxu1 %v1339_v19  ;;  %v1375_v19 = vpack.c.bf16 %v1195_v57, %v4543_v58 }
  0xa8   : > { %2122 = vmatmul.mubr.bf16.gmra.mxu0 %v1373_v51  ;;  %2258 = vmatprep.mubr.bf16.mxu1 %v1349_v63  ;;  %v1305_v51 = vpack.c.bf16 %v1053_v46, %v1044_v47  ;;  %v3737_v63 = vld [vmem:[%s5179_s3 + $0x200] sm:$0xff]  }
  0xa9   : > { %2355 = vmatprep.mubr.bf16.mxu0 %v1279_v53  ;;  %v1385_v53 = vpack.c.bf16 %v1214_v9, %v1205_v6  ;;  %v1029_v6 = vld [vmem:[#allocation2 + $0x158] sm:$0xff]  ;;  %v1038_v9 = vld [vmem:[#allocation2 + $0x1a0] sm:$0xff] }
  0xaf   : > { %2259 = vmatmul.mubr.bf16.gmra.mxu1 %v1348_v25  ;;  %v4645_v25 = vld [vmem:[#allocation2 + $0x6d0] sm:$0xff] }
  0xb0   : > { %2356 = vmatmul.mubr.bf16.vlgmr.msra.gmra.mxu0 %v1278_v48  ;;  %2266 = vmatprep.mubr.bf16.mxu1 %v1358_v8  ;;  %v1232_v48 = vld [vmem:[#allocation2 + $0x7b0] sm:$0xff]  ;;  %v1384_v8 = vpack.c.bf16 %v1213_v43, %v4645_v25 }
  0xb1   : > { %3594 = vmatpush3.bf16.msra.mxu0 %v4489_v3  ;;  %2363 = vmatprep.mubr.bf16.mxu0 %v1288_v28  ;;  %v1367_v3 = vpack.c.bf16 %v4526_v35, %v1169_v22  ;;  %v1296_v35 = vpack.c.bf16 %v1035_v11, %v1026_v39  ;;  %v1394_v28 = vpack.c.bf16 %v1232_v48, %v1223_v4  ;;  %v1055_v4 = vld [vmem:[#allocation2 + $0x228] sm:$0xff]  ;;  %v1216_v48 = vld [vmem:[#allocation2 + $0x730] sm:$0xff] }
  0xb2   : > { %3595 = vmatprep.subr.bf16.mxu0 %v3726_v45  ;;  %v1402_v39 = vpack.c.bf16 %v1249_v26, %v4553_v54 }
  0xb5   : > { %3596 = vmatpush3.bf16.msra.mxu0 %v3726_v45  ;;  %v1080_v45 = vld [vmem:[#allocation2 + $0x2f0] sm:$0xff] }
  0xb6   : > { %3597 = vmatprep.subr.bf16.mxu0 %v3729_v15  ;;  %v1323_v22 = vpack.c.bf16 %v1089_v29, %v1080_v45  ;;  %v1387_v45 = vpack.c.bf16 %v1216_v48, %v4546_v24 }
  0xb7   : > { %2267 = vmatmul.mubr.bf16.gmra.mxu1 %v1357_v30  ;;  %v1333_v30 = vpack.c.bf16 %v1108_v5, %v4466_v18  ;;  %v1267_v18 = vld [vmem:[#allocation2 + $0x8c8] sm:$0xff]  ;;  %v1064_v5 = vld [vmem:[#allocation2 + $0x270] sm:$0xff] }
  0xb8   : > { %2364 = vmatmul.mubr.bf16.gmra.mxu0 %v1287_v27  ;;  %2274 = vmatprep.mubr.bf16.mxu1 %v1367_v3  ;;  %v1393_v27 = vpack.c.bf16 %v1231_v16, %v4546_v24  ;;  %v1126_v3 = vld [vmem:[#allocation2 + $0x460] sm:$0xff] }
  0xb9   : > { %2371 = vmatprep.mubr.bf16.mxu0 %v1297_v23  ;;  %3598 = vmatpush3.bf16.msra.mxu0 %v3729_v15  ;;  %v1250_v15 = vld [vmem:[#allocation2 + $0x840] sm:$0xff]  ;;  %v1342_v11 = vpack.c.bf16 %v1126_v3, %v4503_v13  ;;  %v992_v13 = vld [vmem:[#allocation2 + $0x30] sm:$0xff] }
  0xba   : > { %3599 = vmatprep.subr.bf16.mxu0 %v3732_v38  ;;  %v1403_v23 = vpack.c.bf16 %v1250_v15, %v1241_v21  ;;  %v1206_v16 = vld [vmem:[#allocation2 + $0x6e0] sm:$0xff]  ;;  %v1073_v21 = vld [vmem:[#allocation2 + $0x2b8] sm:$0xff] }
  0xbb   : > { %v1234_v15 = vld [vmem:[#allocation2 + $0x7c0] sm:$0xff] }
  0xbc   : > { %v1396_v26 = vpack.c.bf16 %v1234_v15, %v4553_v54 }
  0xbd   : > { %3600 = vmatpush3.bf16.msra.mxu0 %v3732_v38  ;;  %v1259_v38 = vld [vmem:[#allocation2 + $0x888] sm:$0xff] }
  0xbe   : > { %3601 = vmatprep.subr.bf16.mxu0 %v3734_v56  ;;  %v1412_v31 = vpack.c.bf16 %v4603_v49, %v1259_v38 }
  0xbf   : > { %2275 = vmatmul.mubr.bf16.gmra.mxu1 %v1366_v36  ;;  %v1281_v36 = vpack.c.bf16 %v1002_v62, %v993_v34  ;;  %v1252_v34 = vld [vmem:[#allocation2 + $0x850] sm:$0xff] }
  0xc0   : > { %2372 = vmatmul.mubr.bf16.gmra.mxu0 %v1296_v35  ;;  %2282 = vmatprep.mubr.bf16.mxu1 %v1376_v10  ;;  %v1351_v35 = vpack.c.bf16 %v1144_v33, %v4511_v17  ;;  %v1011_v10 = vld [vmem:[#allocation2 + $0xc8] sm:$0xff]  ;;  %v1010_v17 = vld [vmem:[#allocation2 + $0xc0] sm:$0xff] }
  0xc1   : > { %2379 = vmatprep.mubr.bf16.mxu0 %v1306_v40  ;;  %3602 = vmatpush3.bf16.msra.mxu0 %v3734_v56  ;;  %v1411_v56 = vpack.c.bf16 %v1267_v18, %v4558_v61  ;;  %v1001_v40 = vld [vmem:[#allocation2 + $0x78] sm:$0xff]  ;;  %v1082_v18 = vld [vmem:[#allocation2 + $0x300] sm:$0xff]  ;;  %v1091_v33 = vld [vmem:[#allocation2 + $0x348] sm:$0xff] }
  0xc2   : > { %3603 = vmatprep.subr.bf16.mxu0 %v3735_v12  ;;  %v1280_v47 = vpack.c.bf16 %v1001_v40, %v992_v13 }
  0xc5   : > { %3604 = vmatpush3.bf16.msra.mxu0 %v3735_v12  ;;  %v1020_v12 = vld [vmem:[#allocation2 + $0x110] sm:$0xff] }
  0xc6   : > { %3605 = vmatprep.subr.bf16.mxu0 %v3736_v20  ;;  %v1290_v57 = vpack.c.bf16 %v1020_v12, %v1011_v10  ;;  %v1325_v10 = vpack.c.bf16 %v1091_v33, %v1082_v18  ;;  %v1405_v12 = vpack.c.bf16 %v1252_v34, %v4558_v61 }
  0xc7   : > { %2283 = vmatmul.mubr.bf16.gmra.mxu1 %v1375_v19  ;;  %v1299_v19 = vpack.c.bf16 %v1038_v9, %v1029_v6  ;;  %v1242_v9 = vld [vmem:[#allocation2 + $0x800] sm:$0xff] }
  0xc8   : > { %2380 = vmatmul.mubr.bf16.gmra.mxu0 %v1305_v51  ;;  %2290 = vmatprep.mubr.bf16.mxu1 %v1385_v53  ;;  %v1047_v53 = vld [vmem:[#allocation2 + $0x1e8] sm:$0xff] }
  0xc9   : > { %2387 = vmatprep.mubr.bf16.mxu0 %v1315_v52  ;;  %3606 = vmatpush3.bf16.msra.mxu0 %v3736_v20  ;;  %v1289_v20 = vpack.c.bf16 %v1019_v50, %v1010_v17  ;;  %v1037_v52 = vld [vmem:[#allocation2 + $0x198] sm:$0xff] }
  0xca   : > { %3607 = vmatprep.subr.bf16.mxu0 %v3737_v63 }
  0xcd   : > { %3608 = vmatpush3.bf16.msra.mxu0 %v3737_v63  ;;  %v1056_v63 = vld [vmem:[#allocation2 + $0x230] sm:$0xff] }
  0xce   : > { %v1308_v43 = vpack.c.bf16 %v1056_v63, %v1047_v53  ;;  %v1119_v53 = vld [vmem:[#allocation2 + $0x428] sm:$0xff]  ;;  %v1128_v63 = vld [vmem:[#allocation2 + $0x470] sm:$0xff] }
  0xcf   : > { %2291 = vmatmul.mubr.bf16.gmra.mxu1 %v1384_v8  ;;  %v1074_v8 = vld [vmem:[#allocation2 + $0x2c0] sm:$0xff]  ;;  %v1344_v48 = vpack.c.bf16 %v1128_v63, %v1119_v53 }
  0xd0   : > { %2388 = vmatmul.mubr.bf16.gmra.mxu0 %v1314_v60  ;;  %2298 = vmatprep.mubr.bf16.mxu1 %v1394_v28  ;;  %v1065_v60 = vld [vmem:[#allocation2 + $0x278] sm:$0xff] }
  0xd1   : > { %2395 = vmatprep.mubr.bf16.mxu0 %v1324_v37  ;;  %v1317_v29 = vpack.c.bf16 %v1074_v8, %v1065_v60 }
  0xd7   : > { %2299 = vmatmul.mubr.bf16.gmra.mxu1 %v1393_v27  ;;  %v1092_v27 = vld [vmem:[#allocation2 + $0x350] sm:$0xff] }
  0xd8   : > { %2396 = vmatmul.mubr.bf16.gmra.mxu0 %v1323_v22  ;;  %2306 = vmatprep.mubr.bf16.mxu1 %v1403_v23  ;;  %v1083_v22 = vld [vmem:[#allocation2 + $0x308] sm:$0xff]  ;;  %v1316_v23 = vpack.c.bf16 %v1073_v21, %v1064_v5  ;;  %v994_v5 = vld [vmem:[#allocation2 + $0x40] sm:$0xff] }
  0xd9   : > { %2403 = vmatprep.mubr.bf16.mxu0 %v1333_v30  ;;  %v1326_v3 = vpack.c.bf16 %v1092_v27, %v1083_v22  ;;  %v1003_v21 = vld [vmem:[#allocation2 + $0x88] sm:$0xff]  ;;  %v1137_v27 = vld [vmem:[#allocation2 + $0x4b8] sm:$0xff] }
  0xdf   : > { %2307 = vmatmul.mubr.bf16.gmra.mxu1 %v1402_v39  ;;  %v1224_v39 = vld [vmem:[#allocation2 + $0x770] sm:$0xff] }
  0xe0   : > { %2404 = vmatmul.mubr.bf16.gmra.mxu0 %v4471_v59  ;;  %2314 = vmatprep.mubr.bf16.mxu1 %v1412_v31  ;;  %v1162_v59 = vld [vmem:[#allocation2 + $0x580] sm:$0xff] }
  0xe1   : > { %2411 = vmatprep.mubr.bf16.mxu0 %v1342_v11  ;;  %v1360_v46 = vpack.c.bf16 %v1162_v59, %v4536_v7  ;;  %v1028_v7 = vld [vmem:[#allocation2 + $0x150] sm:$0xff]  ;;  %v1233_v11 = vld [vmem:[#allocation2 + $0x7b8] sm:$0xff] }
  0xe2   : > { %v1298_v1 = vpack.c.bf16 %v1037_v52, %v1028_v7  ;;  %v1395_v40 = vpack.c.bf16 %v1233_v11, %v1224_v39  ;;  %v1109_v7 = vld [vmem:[#allocation2 + $0x3d8] sm:$0xff]  ;;  %v1270_v52 = vld [vmem:[#allocation2 + $0x8e0] sm:$0xff] }
  0xe7   : > { %2315 = vmatmul.mubr.bf16.gmra.mxu1 %v1411_v56 }
  0xe8   : > { %2412 = vmatmul.mubr.bf16.gmra.mxu0 %v4531_v42  ;;  %2516 = vmatprep.mubr.bf16.mxu1 %v1281_v36  ;;  %v1180_v42 = vld [vmem:[#allocation2 + $0x610] sm:$0xff]  ;;  %v1110_v36 = vld [vmem:[#allocation2 + $0x3e0] sm:$0xff] }
  0xe9   : > { %2419 = vmatprep.mubr.bf16.mxu0 %v1351_v35  ;;  %v1369_v51 = vpack.c.bf16 %v1180_v42, %v4543_v58  ;;  %v1188_v58 = vld [vmem:[#allocation2 + $0x650] sm:$0xff]  ;;  %v1101_v35 = vld [vmem:[#allocation2 + $0x398] sm:$0xff] }
  0xea   : > { %v1377_v37 = vpack.c.bf16 %v1197_v2, %v1188_v58 }
  0xef   : > { %2517 = vmatmul.mubr.bf16.vlgmr.msra.gmra.mxu1 %v1280_v47 }
  0xf0   : > { %2420 = vmatmul.mubr.bf16.gmra.mxu0 %v4568_v44  ;;  %2524 = vmatprep.mubr.bf16.mxu1 %v1290_v57  ;;  %v1198_v44 = vld [vmem:[#allocation2 + $0x6a0] sm:$0xff] }
  0xf1   : > { %2427 = vmatprep.mubr.bf16.mxu0 %v1360_v46  ;;  %v1378_v32 = vpack.c.bf16 %v1198_v44, %v4645_v25  ;;  %v1335_v46 = vpack.c.bf16 %v1110_v36, %v1101_v35  ;;  %v1136_v35 = vld [vmem:[#allocation2 + $0x4b0] sm:$0xff] }
  0xf2   : > { %v1012_v36 = vld [vmem:[#allocation2 + $0xd0] sm:$0xff] }
  0xf7   : > { %2525 = vmatmul.mubr.bf16.gmra.mxu1 %v1289_v20  ;;  %v1251_v20 = vld [vmem:[#allocation2 + $0x848] sm:$0xff] }
  0xf8   : > { %2428 = vmatmul.mubr.bf16.gmra.mxu0 %v4582_v14  ;;  %2532 = vmatprep.mubr.bf16.mxu1 %v1299_v19  ;;  %v1046_v14 = vld [vmem:[#allocation2 + $0x1e0] sm:$0xff]  ;;  %v1100_v19 = vld [vmem:[#allocation2 + $0x390] sm:$0xff] }
  0xf9   : > { %2435 = vmatprep.mubr.bf16.mxu0 %v1369_v51  ;;  %v1307_v28 = vpack.c.bf16 %v1055_v4, %v1046_v14  ;;  %v1334_v2 = vpack.c.bf16 %v1109_v7, %v1100_v19  ;;  %v1414_v14 = vpack.c.bf16 %v1270_v52, %v4609_v55 }
  0xff   : > { %2533 = vmatmul.mubr.bf16.gmra.mxu1 %v1298_v1 }
 0x100   : > { %2436 = vmatmul.mubr.bf16.gmra.mxu0 %v4599_v41  ;;  %2540 = vmatprep.mubr.bf16.mxu1 %v1308_v43  ;;  %v1215_v41 = vld [vmem:[#allocation2 + $0x728] sm:$0xff]  ;;  %v1404_v43 = vpack.c.bf16 %v1251_v20, %v1242_v9 }
 0x101   : > { %2443 = vmatprep.mubr.bf16.mxu0 %v1378_v32  ;;  %v1386_v30 = vpack.c.bf16 %v1215_v41, %v1206_v16  ;;  %v1127_v41 = vld [vmem:[#allocation2 + $0x468] sm:$0xff] }
 0x106   : > { %v3137_v38 = vpop.f32.mrf.mxu0 }
 0x107   : > { %2541 = vmatmul.mubr.bf16.gmra.mxu1 %v1307_v28 }
 0x108   : > { %2444 = vmatmul.mubr.bf16.gmra.mxu0 %v1377_v37  ;;  %2548 = vmatprep.mubr.bf16.mxu1 %v1317_v29  ;;  %v3138_v31 = vpop.f32.mrf.mxu0  ;;  %v1118_v29 = vld [vmem:[#allocation2 + $0x420] sm:$0xff] }
 0x109   : > { %2451 = vmatprep.mubr.bf16.mxu0 %v1387_v45  ;;  %v4666_v62 = vadd.f32 %v3138_v31, %v3137_v38  ;;  %v1343_v38 = vpack.c.bf16 %v1127_v41, %v1118_v29  ;;  %v1075_v29 = vld [vmem:[#allocation2 + $0x2c8] sm:$0xff] }
 0x10a   : > { %v3209_v24 = vpop.f32.mrf.mxu1  ;;  %v3140_v54 = vpop.f32.mrf.mxu0 }
 0x10c   : > { %v3210_v56 = vpop.f32.mrf.mxu1  ;;  %v3141_v47 = vpop.f32.mrf.mxu0 }
 0x10d   : > { %v4668_v13 = vadd.f32 %v3210_v56, %v3209_v24  ;;  %v4671_v57 = vadd.f32 %v3141_v47, %v3140_v54  ;;  %v1282_v24 = vpack.c.bf16 %v1003_v21, %v994_v5  ;;  %v1021_v54 = vld [vmem:[#allocation2 + $0x118] sm:$0xff]  ;;  %v1182_v21 = vld [vmem:[#allocation2 + $0x620] sm:$0xff] }
 0x10e   : > { %v3212_v59 = vpop.f32.mrf.mxu1  ;;  %v1291_v20 = vpack.c.bf16 %v1021_v54, %v1012_v36  ;;  %v1173_v5 = vld [vmem:[#allocation2 + $0x5d8] sm:$0xff] }
 0x10f   : > { %2549 = vmatmul.mubr.bf16.gmra.mxu1 %v1316_v23 }
 0x110   : > { %2452 = vmatmul.mubr.bf16.gmra.mxu0 %v1386_v30  ;;  %2556 = vmatprep.mubr.bf16.mxu1 %v1326_v3  ;;  %v3213_v17 = vpop.f32.mrf.mxu1  ;;  %v1146_v30 = vld [vmem:[#allocation2 + $0x500] sm:$0xff] }
 0x111   : > { %2459 = vmatprep.mubr.bf16.mxu0 %v1396_v26  ;;  %v4673_v50 = vadd.f32 %v3213_v17, %v3212_v59  ;;  %v1353_v11 = vpack.c.bf16 %v1146_v30, %v1137_v27  ;;  %v1145_v59 = vld [vmem:[#allocation2 + $0x4f8] sm:$0xff]  ;;  %v1155_v17 = vld [vmem:[#allocation2 + $0x548] sm:$0xff] }
 0x112   : > { %v3143_v42 = vpop.f32.mrf.mxu0  ;;  %v1352_v19 = vpack.c.bf16 %v1145_v59, %v1136_v35  ;;  %v1084_v59 = vld [vmem:[#allocation2 + $0x310] sm:$0xff] }
 0x113   : > { %v3215_v6 = vpop.f32.mrf.mxu1 }
 0x114   : > { %v3144_v51 = vpop.f32.mrf.mxu0 }
 0x115   : > { %v4675_v61 = vadd.f32 %v3144_v51, %v3143_v42  ;;  %v3216_v44 = vpop.f32.mrf.mxu1  ;;  %v1164_v42 = vld [vmem:[#allocation2 + $0x590] sm:$0xff] }
 0x116   : > { %v4677_v1 = vadd.f32 %v3216_v44, %v3215_v6  ;;  %v3146_v32 = vpop.f32.mrf.mxu0  ;;  %v1362_v44 = vpack.c.bf16 %v1164_v42, %v1155_v17  ;;  %v1181_v17 = vld [vmem:[#allocation2 + $0x618] sm:$0xff]  ;;  %v1102_v42 = vld [vmem:[#allocation2 + $0x3a0] sm:$0xff] }
 0x117   : > { %2557 = vmatmul.mubr.bf16.gmra.mxu1 %v1325_v10  ;;  %v3218_v58 = vpop.f32.mrf.mxu1  ;;  %v1030_v10 = vld [vmem:[#allocation2 + $0x160] sm:$0xff] }
 0x118   : > { %2460 = vmatmul.mubr.bf16.gmra.mxu0 %v1395_v40  ;;  %2564 = vmatprep.mubr.bf16.mxu1 %v1335_v46  ;;  %v3147_v4 = vpop.f32.mrf.mxu0 }
 0x119   : > { %2467 = vmatprep.mubr.bf16.mxu0 %v1405_v12  ;;  %v4680_v60 = vadd.f32 %v3147_v4, %v3146_v32  ;;  %v3219_v8 = vpop.f32.mrf.mxu1  ;;  %v1039_v12 = vld [vmem:[#allocation2 + $0x1a8] sm:$0xff]  ;;  %v4702_v32 = vld [vmem:[%s5180_s4] ss:$0 sm:$0xff]  ;;  %v1048_v4 = vld [vmem:[#allocation2 + $0x1f0] sm:$0xff] }
 0x11a   : > { %v4682_v37 = vadd.f32 %v3219_v8, %v3218_v58  ;;  %v1300_v7 = vpack.c.bf16 %v1039_v12, %v1030_v10  ;;  %v2039_v35 = vadd.f32 %v4671_v57, %v4702_v32  ;;  %v1093_v10 = vld [vmem:[#allocation2 + $0x358] sm:$0xff]  ;;  %v1191_v57 = vld [vmem:[#allocation2 + $0x668] sm:$0xff] }
 0x11d   : > { %v3149_v28 = vpop.f32.mrf.mxu0 }
 0x11f   : > { %v3221_v45 = vpop.f32.mrf.mxu1  ;;  %2565 = vmatmul.mubr.bf16.gmra.mxu1 %v1334_v2  ;;  %v3150_v16 = vpop.f32.mrf.mxu0 }
 0x120   : > { %2468 = vmatmul.mubr.bf16.gmra.mxu0 %v1404_v43  ;;  %2572 = vmatprep.mubr.bf16.mxu1 %v1344_v48  ;;  %v4684_v15 = vadd.f32 %v3150_v16, %v3149_v28  ;;  %v1057_v48 = vld [vmem:[#allocation2 + $0x238] sm:$0xff]  ;;  %v1163_v28 = vld [vmem:[#allocation2 + $0x588] sm:$0xff] }
 0x121   : > { %2475 = vmatprep.mubr.bf16.mxu0 %v1414_v14  ;;  %v3222_v22 = vpop.f32.mrf.mxu1  ;;  %v3152_v26 = vpop.f32.mrf.mxu0  ;;  %v1154_v14 = vld [vmem:[#allocation2 + $0x540] sm:$0xff] }
 0x122   : > { %v4686_v23 = vadd.f32 %v3222_v22, %v3221_v45  ;;  %v1066_v45 = vld [vmem:[#allocation2 + $0x280] sm:$0xff]  ;;  %v2036_v22 = vadd.f32 %v4666_v62, %v4702_v32 }
 0x123   : > { %v3224_v3 = vpop.f32.mrf.mxu1  ;;  %v3153_v39 = vpop.f32.mrf.mxu0 }
 0x124   : > { %v4688_v31 = vadd.f32 %v3153_v39, %v3152_v26  ;;  %v1309_v26 = vpack.c.bf16 %v1057_v48, %v1048_v4 }
 0x125   : > { %v3225_v18 = vpop.f32.mrf.mxu1  ;;  %v3155_v34 = vpop.f32.mrf.mxu0 }
 0x126   : > { %v4690_v33 = vadd.f32 %v3225_v18, %v3224_v3  ;;  %v1371_v18 = vpack.c.bf16 %v1182_v21, %v1173_v5  ;;  %v1190_v21 = vld [vmem:[#allocation2 + $0x660] sm:$0xff] }
 0x127   : > { %v3227_v56 = vpop.f32.mrf.mxu1  ;;  %2573 = vmatmul.mubr.bf16.gmra.mxu1 %v1343_v38  ;;  %v3156_v40 = vpop.f32.mrf.mxu0  ;;  %v1361_v38 = vpack.c.bf16 %v1163_v28, %v1154_v14 }
 0x128   : > { %2476 = vmatmul.mubr.bf16.gmra.mxu0 %v4612_v0  ;;  %2580 = vmatprep.mubr.bf16.mxu1 %v1353_v11  ;;  %v4693_v47 = vadd.f32 %v3156_v40, %v3155_v34  ;;  %v1172_v40 = vld [vmem:[#allocation2 + $0x5d0] sm:$0xff] }
 0x129   : > { %3609 = vmatprep.mubr.bf16.mxu0 %v1282_v24  ;;  %v3228_v46 = vpop.f32.mrf.mxu1  ;;  %v3158_v9 = vpop.f32.mrf.mxu0  ;;  %v1318_v24 = vpack.c.bf16 %v1075_v29, %v1066_v45  ;;  %v2047_v29 = vadd.f32 %v4680_v60, %v4702_v32  ;;  %v1209_v60 = vld [vmem:[#allocation2 + $0x6f8] sm:$0xff] }
 0x12a   : > { %v4695_v6 = vadd.f32 %v3228_v46, %v3227_v56 }
 0x12b   : > { %v3230_v51 = vpop.f32.mrf.mxu1  ;;  %v3159_v52 = vpop.f32.mrf.mxu0 }
 0x12c   : > { %v4697_v53 = vadd.f32 %v3159_v52, %v3158_v9  ;;  %v1111_v9 = vld [vmem:[#allocation2 + $0x3e8] sm:$0xff] }
 0x12d   : > { %v3231_v63 = vpop.f32.mrf.mxu1  ;;  %v1336_v14 = vpack.c.bf16 %v1111_v9, %v1102_v42 }
 0x12e   : > { %v4704_v43 = vadd.f32 %v3231_v63, %v3230_v51  ;;  %v1327_v63 = vpack.c.bf16 %v1093_v10, %v1084_v59 }
 0x12f   : > { %v3249_v2 = vpop.f32.mrf.mxu1  ;;  %2581 = vmatmul.mubr.bf16.gmra.mxu1 %v1352_v19  ;;  %v1200_v19 = vld [vmem:[#allocation2 + $0x6b0] sm:$0xff] }
 0x130   : > { %v3161_v58 = vpop.f32.mrf.mxu0  ;;  %3610 = vmatmul.mubr.bf16.vlgmr.msra.gmra.mxu0 %v1291_v20  ;;  %2588 = vmatprep.mubr.bf16.mxu1 %v1362_v44 }
 0x131   : > { %3613 = vmatprep.mubr.bf16.mxu0 %v1300_v7  ;;  %v3250_v41 = vpop.f32.mrf.mxu1  ;;  %v2044_v7 = vadd.f32 %v4675_v61, %v4702_v32 }
 0x132   : > { %v3162_v8 = vpop.f32.mrf.mxu0  ;;  %v3251_v27 = vadd.f32 %v3250_v41, %v3249_v2  ;;  %v1370_v2 = vpack.c.bf16 %v1181_v17, %v1172_v40 }
 0x133   : > { %v4706_v16 = vadd.f32 %v3162_v8, %v3161_v58  ;;  %v3252_v3 = vpop.f32.mrf.mxu1  ;;  %v1380_v8 = vpack.c.bf16 %v1200_v19, %v1191_v57  ;;  %v2055_v57 = vadd.f32 %v4688_v31, %v4702_v32  ;;  %v1236_v31 = vld [vmem:[#allocation2 + $0x7d0] sm:$0xff] }
 0x134   : > { %v3164_v30 = vpop.f32.mrf.mxu0  ;;  %v4710_v39 = vadd.f32 %v3251_v27, %v2036_v22  ;;  %v1120_v22 = vld [vmem:[#allocation2 + $0x430] sm:$0xff]  ;;  %v1129_v27 = vld [vmem:[#allocation2 + $0x478] sm:$0xff] }
 0x135   : > { %v3253_v56 = vpop.f32.mrf.mxu1 }
 0x136   : > { %v3165_v11 = vpop.f32.mrf.mxu0  ;;  %v3254_v36 = vadd.f32 %v3253_v56, %v3252_v3  ;;  %v1199_v3 = vld [vmem:[#allocation2 + $0x6a8] sm:$0xff]  ;;  %v1218_v56 = vld [vmem:[#allocation2 + $0x740] sm:$0xff] }
 0x137   : > { %v4712_v34 = vadd.f32 %v3165_v11, %v3164_v30  ;;  %v3255_v62 = vpop.f32.mrf.mxu1  ;;  %2589 = vmatmul.mubr.bf16.gmra.mxu1 %v1361_v38  ;;  %v1138_v38 = vld [vmem:[#allocation2 + $0x4c0] sm:$0xff]  ;;  %v1379_v59 = vpack.c.bf16 %v1199_v3, %v1190_v21  ;;  %v1389_v42 = vpack.c.bf16 %v1218_v56, %v1209_v60  ;;  %v2063_v56 = vadd.f32 %v4697_v53, %v4702_v32 }
 0x138   : > { %v3167_v54 = vpop.f32.mrf.mxu0  ;;  %3614 = vmatmul.mubr.bf16.gmra.mxu0 %v1309_v26  ;;  %v4716_v12 = vadd.f32 %v3254_v36, %v2039_v35  ;;  %2596 = vmatprep.mubr.bf16.mxu1 %v1371_v18  ;;  %v2052_v35 = vadd.f32 %v4684_v15, %v4702_v32  ;;  %v2068_v53 = vadd.f32 %v4706_v16, %v4702_v32 }
 0x139   : > { %3617 = vmatprep.mubr.bf16.mxu0 %v1318_v24  ;;  %v3256_v51 = vpop.f32.mrf.mxu1  ;;  %v1147_v24 = vld [vmem:[#allocation2 + $0x508] sm:$0xff] }
 0x13a   : > { %v3168_v46 = vpop.f32.mrf.mxu0  ;;  %v3257_v52 = vadd.f32 %v3256_v51, %v3255_v62  ;;  %v1345_v62 = vpack.c.bf16 %v1129_v27, %v1120_v22  ;;  %v1354_v10 = vpack.c.bf16 %v1147_v24, %v1138_v38 }
 0x13b   : > { %v4718_v20 = vadd.f32 %v3168_v46, %v3167_v54  ;;  %v3258_v58 = vpop.f32.mrf.mxu1 }
 0x13c   : > { %v3170_v44 = vpop.f32.mrf.mxu0  ;;  %v4722_v4 = vadd.f32 %v3257_v52, %v2044_v7  ;;  %v1156_v52 = vld [vmem:[#allocation2 + $0x550] sm:$0xff] }
 0x13d   : > { %v3259_v45 = vpop.f32.mrf.mxu1 }
 0x13e   : > { %v3171_v48 = vpop.f32.mrf.mxu0  ;;  %v3260_v41 = vadd.f32 %v3259_v45, %v3258_v58 }
 0x13f   : > { %v4724_v28 = vadd.f32 %v3171_v48, %v3170_v44  ;;  %v3261_v61 = vpop.f32.mrf.mxu1  ;;  %2597 = vmatmul.mubr.bf16.gmra.mxu1 %v1370_v2  ;;  %v1165_v44 = vld [vmem:[#allocation2 + $0x598] sm:$0xff]  ;;  %v1208_v2 = vld [vmem:[#allocation2 + $0x6f0] sm:$0xff]  ;;  %v1183_v48 = vld [vmem:[#allocation2 + $0x628] sm:$0xff] }
 0x140   : > { %v3173_v5 = vpop.f32.mrf.mxu0  ;;  %3618 = vmatmul.mubr.bf16.gmra.mxu0 %v1327_v63  ;;  %v4728_v30 = vadd.f32 %v3260_v41, %v2047_v29  ;;  %2604 = vmatprep.mubr.bf16.mxu1 %v1380_v8  ;;  %v1227_v29 = vld [vmem:[#allocation2 + $0x788] sm:$0xff]  ;;  %v2060_v41 = vadd.f32 %v4693_v47, %v4702_v32  ;;  %v1363_v21 = vpack.c.bf16 %v1165_v44, %v1156_v52  ;;  %v3749_v44 = vld [vmem:[#allocation2 + $0x7f0] sm:$0xff] }
 0x141   : > { %3621 = vmatprep.mubr.bf16.mxu0 %v1336_v14  ;;  %v3262_v18 = vpop.f32.mrf.mxu1  ;;  %v1217_v14 = vld [vmem:[#allocation2 + $0x738] sm:$0xff]  ;;  %v1398_v24 = vpack.c.bf16 %v1236_v31, %v1227_v29  ;;  %v2071_v29 = vadd.f32 %v4712_v34, %v4702_v32  ;;  %v2076_v34 = vadd.f32 %v4718_v20, %v4702_v32  ;;  %v2079_v20 = vadd.f32 %v4724_v28, %v4702_v32 }
 0x142   : > { %v3174_v26 = vpop.f32.mrf.mxu0  ;;  %v3263_v36 = vadd.f32 %v3262_v18, %v3261_v61  ;;  %v1388_v27 = vpack.c.bf16 %v1217_v14, %v1208_v2 }
 0x143   : > { %v4730_v11 = vadd.f32 %v3174_v26, %v3173_v5  ;;  %v3264_v40 = vpop.f32.mrf.mxu1  ;;  %v1372_v26 = vpack.c.bf16 %v1183_v48, %v4645_v25 }
 0x144   : > { %v3176_v54 = vpop.f32.mrf.mxu0  ;;  %v4734_v46 = vadd.f32 %v3263_v36, %v2052_v35 }
 0x145   : > { %v3265_v51 = vpop.f32.mrf.mxu1 }
 0x146   : > { %v3177_v17 = vpop.f32.mrf.mxu0  ;;  %v3266_v19 = vadd.f32 %v3265_v51, %v3264_v40  ;;  %v1226_v40 = vld [vmem:[#allocation2 + $0x780] sm:$0xff] }
 0x147   : > { %v4736_v9 = vadd.f32 %v3177_v17, %v3176_v54  ;;  %v3267_v15 = vpop.f32.mrf.mxu1  ;;  %2605 = vmatmul.mubr.bf16.gmra.mxu1 %v1379_v59  ;;  %v1201_v54 = vld [vmem:[#allocation2 + $0x6b8] sm:$0xff]  ;;  %v1235_v59 = vld [vmem:[#allocation2 + $0x7c8] sm:$0xff] }
 0x148   : > { %v3179_v7 = vpop.f32.mrf.mxu0  ;;  %3622 = vmatmul.mubr.bf16.gmra.mxu0 %v1345_v62  ;;  %v4740_v63 = vadd.f32 %v3266_v19, %v2055_v57  ;;  %2612 = vmatprep.mubr.bf16.mxu1 %v1389_v42  ;;  %v3748_v19 = vld [vmem:[#allocation2 + $0x760] sm:$0xff]  ;;  %v1397_v52 = vpack.c.bf16 %v1235_v59, %v1226_v40  ;;  %v3751_v40 = vld [vmem:[#allocation2 + $0x8] sm:$0xff] }
 0x149   : > { %3625 = vmatprep.mubr.bf16.mxu0 %v1354_v10  ;;  %v3268_v45 = vpop.f32.mrf.mxu1  ;;  %v1219_v10 = vld [vmem:[#allocation2 + $0x748] sm:$0xff]  ;;  %v1416_v59 = vpack.c.bf16 %v3751_v40, %v3751_v40 }
 0x14a   : > { %v3180_v58 = vpop.f32.mrf.mxu0  ;;  %v3269_v5 = vadd.f32 %v3268_v45, %v3267_v15 }
 0x14b   : > { %v4742_v8 = vadd.f32 %v3180_v58, %v3179_v7  ;;  %v3270_v22 = vpop.f32.mrf.mxu1  ;;  %v1381_v7 = vpack.c.bf16 %v1201_v54, %v3748_v19  ;;  %v1390_v58 = vpack.c.bf16 %v1219_v10, %v3749_v44  ;;  %v2084_v44 = vadd.f32 %v4730_v11, %v4702_v32 }
 0x14c   : > { %v3182_v61 = vpop.f32.mrf.mxu0  ;;  %v4747_v3 = vadd.f32 %v3269_v5, %v2060_v41  ;;  %v1237_v5 = vld [vmem:[#allocation2 + $0x7d8] sm:$0xff] }
 0x14d   : > { %v3271_v60 = vpop.f32.mrf.mxu1 }
 0x14e   : > { %v3183_v38 = vpop.f32.mrf.mxu0  ;;  %v3272_v35 = vadd.f32 %v3271_v60, %v3270_v22  ;;  %v1244_v22 = vld [vmem:[#allocation2 + $0x810] sm:$0xff] }
 0x14f   : > { %v4749_v18 = vadd.f32 %v3183_v38, %v3182_v61  ;;  %v3273_v47 = vpop.f32.mrf.mxu1  ;;  %2613 = vmatmul.mubr.bf16.gmra.mxu1 %v1388_v27  ;;  %v1255_v27 = vld [vmem:[#allocation2 + $0x868] sm:$0xff] }
 0x150   : > { %v3185_v36 = vpop.f32.mrf.mxu0  ;;  %3626 = vmatmul.mubr.bf16.gmra.mxu0 %v1363_v21  ;;  %v4753_v62 = vadd.f32 %v3272_v35, %v2063_v56  ;;  %2620 = vmatprep.mubr.bf16.mxu1 %v1398_v24  ;;  %v3750_v56 = vld [vmem:[#allocation2 + $0x880] sm:$0xff]  ;;  %v1408_v54 = vpack.c.bf16 %v1255_v27, %v4609_v55 }
 0x151   : > { %3629 = vmatprep.mubr.bf16.mxu0 %v1372_v26  ;;  %v3274_v42 = vpop.f32.mrf.mxu1  ;;  %v1399_v35 = vpack.c.bf16 %v1237_v5, %v3750_v56  ;;  %v2092_v56 = vadd.f32 %v4742_v8, %v4702_v32 }
 0x152   : > { %v3186_v25 = vpop.f32.mrf.mxu0  ;;  %v3275_v51 = vadd.f32 %v3274_v42, %v3273_v47  ;;  %v1406_v47 = vpack.c.bf16 %v4603_v49, %v1244_v22  ;;  %v1273_v49 = vld [vmem:[#allocation2 + $0x8f8] sm:$0xff] }
 0x153   : > { %v4755_v17 = vadd.f32 %v3186_v25, %v3185_v36  ;;  %v3276_v15 = vpop.f32.mrf.mxu1 }
 0x154   : > { %v3188_v57 = vpop.f32.mrf.mxu0  ;;  %v4759_v2 = vadd.f32 %v3275_v51, %v2068_v53 }
 0x155   : > { %v3277_v45 = vpop.f32.mrf.mxu1 }
 0x156   : > { %v3189_v14 = vpop.f32.mrf.mxu0  ;;  %v3278_v31 = vadd.f32 %v3277_v45, %v3276_v15 }
 0x157   : > { %v4761_v48 = vadd.f32 %v3189_v14, %v3188_v57  ;;  %v3279_v16 = vpop.f32.mrf.mxu1  ;;  %2621 = vmatmul.mubr.bf16.gmra.mxu1 %v1397_v52  ;;  %v1417_v14 = vpack.c.bf16 %v1273_v49, %v3751_v40 }
 0x158   : > { %v3191_v41 = vpop.f32.mrf.mxu0  ;;  %3630 = vmatmul.mubr.bf16.gmra.mxu0 %v1381_v7  ;;  %v4765_v61 = vadd.f32 %v3278_v31, %v2071_v29  ;;  %2628 = vmatprep.mubr.bf16.mxu1 %v4612_v0  ;;  %v1262_v7 = vld [vmem:[#allocation2 + $0x8a0] sm:$0xff] }
 0x159   : > { %3633 = vmatprep.mubr.bf16.mxu0 %v1390_v58  ;;  %v3280_v38 = vpop.f32.mrf.mxu1  ;;  %v1415_v29 = vpack.c.bf16 %v3751_v40, %v1262_v7 }
 0x15a   : > { %v3192_v21 = vpop.f32.mrf.mxu0  ;;  %v3281_v24 = vadd.f32 %v3280_v38, %v3279_v16 }
 0x15b   : > { %v4768_v26 = vadd.f32 %v3192_v21, %v3191_v41  ;;  %v3282_v36 = vpop.f32.mrf.mxu1  ;;  %v2087_v21 = vadd.f32 %v4736_v9, %v4702_v32 }
 0x15c   : > { %v3194_v60 = vpop.f32.mrf.mxu0  ;;  %v4774_v25 = vadd.f32 %v3281_v24, %v2076_v34 }
 0x15d   : > { %v3283_v42 = vpop.f32.mrf.mxu1 }
 0x15e   : > { %v3195_v0 = vpop.f32.mrf.mxu0  ;;  %v3284_v53 = vadd.f32 %v3283_v42, %v3282_v36 }
 0x15f   : > { %v4776_v10 = vadd.f32 %v3195_v0, %v3194_v60  ;;  %v3285_v57 = vpop.f32.mrf.mxu1  ;;  %2629 = vmatmul.mubr.bf16.gmra.mxu1 %v1406_v47 }
 0x160   : > { %v3197_v51 = vpop.f32.mrf.mxu0  ;;  %3634 = vmatmul.mubr.bf16.gmra.mxu0 %v1399_v35  ;;  %v4780_v19 = vadd.f32 %v3284_v53, %v2079_v20  ;;  %2636 = vmatprep.mubr.bf16.mxu1 %v1416_v59  ;;  %v2095_v59 = vadd.f32 %v4749_v18, %v4702_v32 }
 0x161   : > { %3637 = vmatprep.mubr.bf16.mxu0 %v1408_v54  ;;  %v3286_v52 = vpop.f32.mrf.mxu1 }
 0x162   : > { %v3198_v55 = vpop.f32.mrf.mxu0  ;;  %v3287_v58 = vadd.f32 %v3286_v52, %v3285_v57 }
 0x163   : > { %v4782_v15 = vadd.f32 %v3198_v55, %v3197_v51  ;;  %v3288_v45 = vpop.f32.mrf.mxu1  ;;  %v2100_v55 = vadd.f32 %v4755_v17, %v4702_v32 }
 0x164   : > { %v3200_v28 = vpop.f32.mrf.mxu0  ;;  %v4786_v31 = vadd.f32 %v3287_v58, %v2084_v44 }
 0x165   : > { %v3289_v5 = vpop.f32.mrf.mxu1 }
 0x166   : > { %v3201_v41 = vpop.f32.mrf.mxu0  ;;  %v3290_v22 = vadd.f32 %v3289_v5, %v3288_v45 }
 0x167   : > { %v4788_v16 = vadd.f32 %v3201_v41, %v3200_v28  ;;  %v3291_v38 = vpop.f32.mrf.mxu1  ;;  %2637 = vmatmul.mubr.bf16.gmra.mxu1 %v1415_v29  ;;  %v2103_v29 = vadd.f32 %v4761_v48, %v4702_v32 }
 0x168   : > { %v3203_v27 = vpop.f32.mrf.mxu0  ;;  %3638 = vmatmul.mubr.bf16.gmra.mxu0 %v1417_v14  ;;  %v4792_v11 = vadd.f32 %v3290_v22, %v2087_v21 }
 0x169   : > { %v3292_v60 = vpop.f32.mrf.mxu1 }
 0x16a   : > { %v3204_v34 = vpop.f32.mrf.mxu0  ;;  %v3293_v35 = vadd.f32 %v3292_v60, %v3291_v38 }
 0x16b   : > { %v4794_v24 = vadd.f32 %v3204_v34, %v3203_v27  ;;  %v3294_v47 = vpop.f32.mrf.mxu1  ;;  %v2108_v34 = vadd.f32 %v4768_v26, %v4702_v32 }
 0x16c   : > { %v3206_v36 = vpop.f32.mrf.mxu0  ;;  %v4798_v54 = vadd.f32 %v3293_v35, %v2092_v56 }
 0x16d   : > { %v3295_v40 = vpop.f32.mrf.mxu1 }
 0x16e   : > { %v3207_v9 = vpop.f32.mrf.mxu0  ;;  %v3296_v42 = vadd.f32 %v3295_v40, %v3294_v47  ;;  %v2111_v40 = vadd.f32 %v4776_v10, %v4702_v32 }
 0x16f   : > { %v4800_v0 = vadd.f32 %v3207_v9, %v3206_v36  ;;  %v3297_v53 = vpop.f32.mrf.mxu1 }
 0x170   : > { %v3361_v20 = vpop.f32.mrf.mxu0  ;;  %v4804_v51 = vadd.f32 %v3296_v42, %v2095_v59 }
 0x171   : > { %v3298_v49 = vpop.f32.mrf.mxu1 }
 0x172   : > { %v3362_v57 = vpop.f32.mrf.mxu0  ;;  %v3299_v7 = vadd.f32 %v3298_v49, %v3297_v53 }
 0x173   : > { %v3363_v8 = vadd.f32 %v3362_v57, %v3361_v20  ;;  %v3300_v58 = vpop.f32.mrf.mxu1 }
 0x174   : > { %v3364_v52 = vpop.f32.mrf.mxu0  ;;  %v4811_v28 = vadd.f32 %v3299_v7, %v2100_v55 }
 0x175   : > { %v4809_v44 = vadd.f32 %v3363_v8, %v4710_v39  ;;  %v3301_v14 = vpop.f32.mrf.mxu1  ;;  %v2116_v8 = vadd.f32 %v4782_v15, %v4702_v32 }
 0x176   : > { %v3365_v18 = vpop.f32.mrf.mxu0  ;;  %v3302_v41 = vadd.f32 %v3301_v14, %v3300_v58 }
 0x177   : > { %v3366_v45 = vadd.f32 %v3365_v18, %v3364_v52  ;;  %v3303_v17 = vpop.f32.mrf.mxu1 }
 0x178   : > { %v3367_v5 = vpop.f32.mrf.mxu0  ;;  %v4818_v22 = vadd.f32 %v3302_v41, %v2103_v29 }
 0x179   : > { %v4816_v21 = vadd.f32 %v3366_v45, %v4716_v12  ;;  %v3304_v39 = vpop.f32.mrf.mxu1  ;;  %v2119_v45 = vadd.f32 %v4788_v16, %v4702_v32 }
 0x17a   : > { %v3368_v27 = vpop.f32.mrf.mxu0  ;;  %v3305_v60 = vadd.f32 %v3304_v39, %v3303_v17 }
 0x17b   : > { %v3369_v38 = vadd.f32 %v3368_v27, %v3367_v5  ;;  %v3306_v48 = vpop.f32.mrf.mxu1 }
 0x17c   : > { %v3370_v56 = vpop.f32.mrf.mxu0  ;;  %v4825_v36 = vadd.f32 %v3305_v60, %v2108_v34 }
 0x17d   : > { %v4823_v35 = vadd.f32 %v3369_v38, %v4722_v4  ;;  %v3307_v12 = vpop.f32.mrf.mxu1  ;;  %v2124_v38 = vadd.f32 %v4794_v24, %v4702_v32 }
 0x17e   : > { %v3371_v47 = vpop.f32.mrf.mxu0  ;;  %v3308_v59 = vadd.f32 %v3307_v12, %v3306_v48 }
 0x17f   : > { %v3372_v9 = vadd.f32 %v3371_v47, %v3370_v56  ;;  %v3309_v26 = vpop.f32.mrf.mxu1 }
 0x180   : > { %v3373_v42 = vpop.f32.mrf.mxu0  ;;  %v4832_v53 = vadd.f32 %v3308_v59, %v2111_v40 }
 0x181   : > { %v4830_v20 = vadd.f32 %v3372_v9, %v4728_v30  ;;  %v3310_v4 = vpop.f32.mrf.mxu1  ;;  %v2127_v9 = vadd.f32 %v4800_v0, %v4702_v32 }
 0x182   : > { %v3374_v57 = vpop.f32.mrf.mxu0  ;;  %v3311_v55 = vadd.f32 %v3310_v4, %v3309_v26 }
 0x183   : > { %v3375_v49 = vadd.f32 %v3374_v57, %v3373_v42  ;;  %v3312_v10 = vpop.f32.mrf.mxu1 }
 0x184   : > { %v3376_v7 = vpop.f32.mrf.mxu0  ;;  %v4839_v58 = vadd.f32 %v3311_v55, %v2116_v8 }
 0x185   : > { %v4837_v52 = vadd.f32 %v3375_v49, %v4734_v46  ;;  %v3313_v30 = vpop.f32.mrf.mxu1  ;;  %v2132_v49 = vadd.f32 %v4668_v13, %v4702_v32 }
 0x186   : > { %v3377_v18 = vpop.f32.mrf.mxu0  ;;  %v3314_v29 = vadd.f32 %v3313_v30, %v3312_v10 }
 0x187   : > { %v3378_v14 = vadd.f32 %v3377_v18, %v3376_v7  ;;  %v3315_v15 = vpop.f32.mrf.mxu1 }
 0x188   : > { %v3379_v41 = vpop.f32.mrf.mxu0  ;;  %v4846_v17 = vadd.f32 %v3314_v29, %v2119_v45 }
 0x189   : > { %v4844_v5 = vadd.f32 %v3378_v14, %v4740_v63  ;;  %v3316_v46 = vpop.f32.mrf.mxu1  ;;  %v2135_v14 = vadd.f32 %v4673_v50, %v4702_v32 }
 0x18a   : > { %v3380_v27 = vpop.f32.mrf.mxu0  ;;  %v3317_v34 = vadd.f32 %v3316_v46, %v3315_v15 }
 0x18b   : > { %v3381_v39 = vadd.f32 %v3380_v27, %v3379_v41  ;;  %v3318_v16 = vpop.f32.mrf.mxu1 }
 0x18c   : > { %v3382_v60 = vpop.f32.mrf.mxu0  ;;  %v4853_v48 = vadd.f32 %v3317_v34, %v2124_v38 }
 0x18d   : > { %v4851_v56 = vadd.f32 %v3381_v39, %v4747_v3  ;;  %v3319_v63 = vpop.f32.mrf.mxu1  ;;  %v2140_v39 = vadd.f32 %v4677_v1, %v4702_v32 }
 0x18e   : > { %v3383_v47 = vpop.f32.mrf.mxu0  ;;  %v3320_v40 = vadd.f32 %v3319_v63, %v3318_v16 }
 0x18f   : > { %v3384_v12 = vadd.f32 %v3383_v47, %v3382_v60  ;;  %v3321_v24 = vpop.f32.mrf.mxu1 }
 0x190   : > { %v3385_v59 = vpop.f32.mrf.mxu0  ;;  %v4860_v26 = vadd.f32 %v3320_v40, %v2127_v9 }
 0x191   : > { %v4858_v42 = vadd.f32 %v3384_v12, %v4753_v62  ;;  %v3322_v3 = vpop.f32.mrf.mxu1  ;;  %v2143_v12 = vadd.f32 %v4682_v37, %v4702_v32 }
 0x192   : > { %v3386_v57 = vpop.f32.mrf.mxu0  ;;  %v3323_v8 = vadd.f32 %v3322_v3, %v3321_v24 }
 0x193   : > { %v3387_v4 = vadd.f32 %v3386_v57, %v3385_v59  ;;  %v3324_v0 = vpop.f32.mrf.mxu1 }
 0x194   : > { %v3388_v55 = vpop.f32.mrf.mxu0  ;;  %v4867_v10 = vadd.f32 %v3323_v8, %v2132_v49 }
 0x195   : > { %v4865_v7 = vadd.f32 %v3387_v4, %v4759_v2  ;;  %v3325_v62 = vpop.f32.mrf.mxu1  ;;  %v2148_v4 = vadd.f32 %v4686_v23, %v4702_v32 }
 0x196   : > { %v3389_v18 = vpop.f32.mrf.mxu0  ;;  %v3326_v45 = vadd.f32 %v3325_v62, %v3324_v0 }
 0x197   : > { %v3390_v30 = vadd.f32 %v3389_v18, %v3388_v55  ;;  %v3327_v13 = vpop.f32.mrf.mxu1 }
 0x198   : > { %v3391_v29 = vpop.f32.mrf.mxu0  ;;  %v4874_v15 = vadd.f32 %v3326_v45, %v2135_v14 }
 0x199   : > { %v4872_v41 = vadd.f32 %v3390_v30, %v4765_v61  ;;  %v3328_v2 = vpop.f32.mrf.mxu1  ;;  %v2151_v30 = vadd.f32 %v4690_v33, %v4702_v32 }
 0x19a   : > { %v3392_v27 = vpop.f32.mrf.mxu0  ;;  %v3329_v38 = vadd.f32 %v3328_v2, %v3327_v13 }
 0x19b   : > { %v3393_v46 = vadd.f32 %v3392_v27, %v3391_v29  ;;  %v3330_v50 = vpop.f32.mrf.mxu1 }
 0x19c   : > { %v3394_v34 = vpop.f32.mrf.mxu0  ;;  %v4881_v16 = vadd.f32 %v3329_v38, %v2140_v39 }
 0x19d   : > { %v4879_v60 = vadd.f32 %v3393_v46, %v4774_v25  ;;  %v3331_v61 = vpop.f32.mrf.mxu1  ;;  %v2156_v46 = vadd.f32 %v4695_v6, %v4702_v32 }
 0x19e   : > { %v3395_v47 = vpop.f32.mrf.mxu0  ;;  %v3332_v9 = vadd.f32 %v3331_v61, %v3330_v50 }
 0x19f   : > { %v3396_v63 = vadd.f32 %v3395_v47, %v3394_v34  ;;  %v3333_v1 = vpop.f32.mrf.mxu1 }
 0x1a0   : > { %v3397_v40 = vpop.f32.mrf.mxu0  ;;  %v4888_v24 = vadd.f32 %v3332_v9, %v2143_v12 }
 0x1a1   : > { %v4886_v59 = vadd.f32 %v3396_v63, %v4780_v19  ;;  %v3334_v25 = vpop.f32.mrf.mxu1  ;;  %v2159_v63 = vadd.f32 %v4704_v43, %v4702_v32 }
 0x1a2   : > { %v3398_v57 = vpop.f32.mrf.mxu0  ;;  %v3335_v49 = vadd.f32 %v3334_v25, %v3333_v1 }
 0x1a3   : > { %v3399_v3 = vadd.f32 %v3398_v57, %v3397_v40  ;;  %v3336_v37 = vpop.f32.mrf.mxu1 }
 0x1a4   : > { %v3400_v8 = vpop.f32.mrf.mxu0  ;;  %v4895_v0 = vadd.f32 %v3335_v49, %v2148_v4 }
 0x1a5   : > { %v4893_v55 = vadd.f32 %v3399_v3, %v4786_v31  ;;  %v3337_v19 = vpop.f32.mrf.mxu1 }
 0x1a6   : > { %v3401_v18 = vpop.f32.mrf.mxu0  ;;  %v3338_v14 = vadd.f32 %v3337_v19, %v3336_v37 }
 0x1a7   : > { %v3402_v62 = vadd.f32 %v3401_v18, %v3400_v8  ;;  %v3339_v23 = vpop.f32.mrf.mxu1 }
 0x1a8   : > { %v3403_v45 = vpop.f32.mrf.mxu0  ;;  %v4902_v13 = vadd.f32 %v3338_v14, %v2151_v30 }
 0x1a9   : > { %v4900_v29 = vadd.f32 %v3402_v62, %v4792_v11  ;;  %v3340_v31 = vpop.f32.mrf.mxu1 }
 0x1aa   : > { %v3404_v27 = vpop.f32.mrf.mxu0  ;;  %v3341_v39 = vadd.f32 %v3340_v31, %v3339_v23 }
 0x1ab   : > { %v3405_v2 = vadd.f32 %v3404_v27, %v3403_v45  ;;  %v3342_v33 = vpop.f32.mrf.mxu1 }
 0x1ac   : > { %v3406_v38 = vpop.f32.mrf.mxu0  ;;  %v4909_v50 = vadd.f32 %v3341_v39, %v2156_v46 }
 0x1ad   : > { %v4907_v34 = vadd.f32 %v3405_v2, %v4798_v54  ;;  %v3343_v11 = vpop.f32.mrf.mxu1 }
 0x1ae   : > { %v3407_v47 = vpop.f32.mrf.mxu0  ;;  %v3344_v12 = vadd.f32 %v3343_v11, %v3342_v33 }
 0x1af   : > { %v3408_v61 = vadd.f32 %v3407_v47, %v3406_v38  ;;  %v4916_v6 = vpop.f32.mrf.mxu1 }
 0x1b0   : > { %v3409_v9 = vpop.f32.mrf.mxu0  ;;  %v4918_v1 = vadd.f32 %v3344_v12, %v2159_v63 }
 0x1b1   : > { %v4914_v40 = vadd.f32 %v3408_v61, %v4804_v51  ;;  %v4920_v25 = vpop.f32.mrf.mxu1 }
 0x1b2   : > { %v3410_v54 = vpop.f32.mrf.mxu0 }
 0x1b3   : > { %v3411_v57 = vadd.f32 %v3410_v54, %v3409_v9  ;;  %v4925_v49 = vpop.f32.mrf.mxu1 }
 0x1b4   : > { %v3412_v3 = vpop.f32.mrf.mxu0 }
 0x1b5   : > { %v4923_v4 = vadd.f32 %v3411_v57, %v4811_v28  ;;  %v4927_v8 = vpop.f32.mrf.mxu1 }
 0x1b6   : > { %v3413_v32 = vpop.f32.mrf.mxu0 }
 0x1b7   : > { %v3414_v43 = vadd.f32 %v3413_v32, %v3412_v3  ;;  %v4932_v18 = vpop.f32.mrf.mxu1 }
 0x1b8   : > { %v3415_v51 = vpop.f32.mrf.mxu0 }
 0x1b9   : > { %v4930_v37 = vadd.f32 %v3414_v43, %v4818_v22  ;;  %v4934_v30 = vpop.f32.mrf.mxu1 }
 0x1ba   : > { %v3416_v19 = vpop.f32.mrf.mxu0 }
 0x1bb   : > { %v3417_v62 = vadd.f32 %v3416_v19, %v3415_v51  ;;  %v4939_v45 = vpop.f32.mrf.mxu1 }
 0x1bc   : > { %v3418_v14 = vpop.f32.mrf.mxu0 }
 0x1bd   : > { %v4937_v28 = vadd.f32 %v3417_v62, %v4825_v36  ;;  %v4941_v31 = vpop.f32.mrf.mxu1 }
 0x1be   : > { %v3419_v23 = vpop.f32.mrf.mxu0 }
 0x1bf   : > { %v3420_v27 = vadd.f32 %v3419_v23, %v3418_v14  ;;  %v4946_v46 = vpop.f32.mrf.mxu1 }
 0x1c0   : > { %v3421_v2 = vpop.f32.mrf.mxu0 }
 0x1c1   : > { %v4944_v22 = vadd.f32 %v3420_v27, %v4832_v53  ;;  %v4948_v33 = vpop.f32.mrf.mxu1 }
 0x1c2   : > { %v3422_v39 = vpop.f32.mrf.mxu0 }
 0x1c3   : > { %v3423_v38 = vadd.f32 %v3422_v39, %v3421_v2  ;;  %v4953_v11 = vpop.f32.mrf.mxu1 }
 0x1c4   : > { %v3424_v47 = vpop.f32.mrf.mxu0 }
 0x1c5   : > { %v4951_v36 = vadd.f32 %v3423_v38, %v4839_v58  ;;  %v4955_v12 = vpop.f32.mrf.mxu1 }
 0x1c6   : > { %v3425_v61 = vpop.f32.mrf.mxu0 }
 0x1c7   : > { %5183 = vst [vmem:[#allocation3_spill] sm:$0xff] %v4951_v36  ;;  %v3426_v63 = vadd.f32 %v3425_v61, %v3424_v47  ;;  %v4960_v54 = vpop.f32.mrf.mxu1 }
 0x1c8   : > { %v3427_v9 = vpop.f32.mrf.mxu0 }
 0x1c9   : > { %v4958_v53 = vadd.f32 %v3426_v63, %v4846_v17  ;;  %v4962_v32 = vpop.f32.mrf.mxu1 }
 0x1ca   : > { %v3428_v57 = vpop.f32.mrf.mxu0 }
 0x1cb   : > { %5184 = vst [vmem:[#allocation4_spill] sm:$0xff] %v4958_v53  ;;  %v3429_v3 = vadd.f32 %v3428_v57, %v3427_v9  ;;  %v4967_v51 = vpop.f32.mrf.mxu1 }
 0x1cc   : > { %v3430_v43 = vpop.f32.mrf.mxu0 }
 0x1cd   : > { %v4965_v58 = vadd.f32 %v3429_v3, %v4853_v48  ;;  %v4969_v14 = vpop.f32.mrf.mxu1 }
 0x1ce   : > { %v3431_v19 = vpop.f32.mrf.mxu0 }
 0x1cf   : > { %5185 = vst [vmem:[#allocation5_spill] sm:$0xff] %v4965_v58  ;;  %v3432_v62 = vadd.f32 %v3431_v19, %v3430_v43  ;;  %v4974_v27 = vpop.f32.mrf.mxu1 }
 0x1d0   : > { %v3433_v23 = vpop.f32.mrf.mxu0 }
 0x1d1   : > { %v4972_v17 = vadd.f32 %v3432_v62, %v4860_v26  ;;  %v4976_v38 = vpop.f32.mrf.mxu1 }
 0x1d2   : > { %v3434_v2 = vpop.f32.mrf.mxu0 }
 0x1d3   : > { %5186 = vst [vmem:[#allocation6_spill] sm:$0xff] %v4972_v17  ;;  %v3435_v39 = vadd.f32 %v3434_v2, %v3433_v23  ;;  %v4981_v61 = vpop.f32.mrf.mxu1 }
 0x1d4   : > { %v3436_v47 = vpop.f32.mrf.mxu0 }
 0x1d5   : > { %v4979_v48 = vadd.f32 %v3435_v39, %v4867_v10  ;;  %v4983_v57 = vpop.f32.mrf.mxu1 }
 0x1d6   : > { %v3437_v63 = vpop.f32.mrf.mxu0 }
 0x1d7   : > { %5187 = vst [vmem:[#allocation7_spill] sm:$0xff] %v4979_v48  ;;  %v3438_v9 = vadd.f32 %v3437_v63, %v3436_v47  ;;  %v4988_v43 = vpop.f32.mrf.mxu1 }
 0x1d8   : > { %v3439_v3 = vpop.f32.mrf.mxu0 }
 0x1d9   : > { %v4986_v26 = vadd.f32 %v3438_v9, %v4874_v15  ;;  %v4990_v23 = vpop.f32.mrf.mxu1 }
 0x1da   : > { %v3440_v19 = vpop.f32.mrf.mxu0 }
 0x1db   : > { %5188 = vst [vmem:[#allocation8_spill] sm:$0xff] %v4986_v26  ;;  %v3441_v62 = vadd.f32 %v3440_v19, %v3439_v3  ;;  %v4995_v39 = vpop.f32.mrf.mxu1 }
 0x1dc   : > { %v3442_v2 = vpop.f32.mrf.mxu0 }
 0x1dd   : > { %v4993_v10 = vadd.f32 %v3441_v62, %v4881_v16  ;;  %v4997_v63 = vpop.f32.mrf.mxu1 }
 0x1de   : > { %v3443_v48 = vpop.f32.mrf.mxu0 }
 0x1df   : > { %5189 = vst [vmem:[#allocation9_spill] sm:$0xff] %v4993_v10  ;;  %v3444_v47 = vadd.f32 %v3443_v48, %v3442_v2  ;;  %v5002_v9 = vpop.f32.mrf.mxu1 }
 0x1e0   : > { %v3445_v53 = vpop.f32.mrf.mxu0 }
 0x1e1   : > { %v5000_v15 = vadd.f32 %v3444_v47, %v4888_v24  ;;  %v5004_v19 = vpop.f32.mrf.mxu1 }
 0x1e2   : > { %v3446_v26 = vpop.f32.mrf.mxu0 }
 0x1e3   : > { %5190 = vst [vmem:[#allocation10_spill] sm:$0xff] %v5000_v15  ;;  %v3447_v3 = vadd.f32 %v3446_v26, %v3445_v53  ;;  %v5009_v62 = vpop.f32.mrf.mxu1  ;;  %v3481_v26 = vadd.f32 %v4934_v30, %v4932_v18 }
 0x1e4   : > { %v3448_v17 = vpop.f32.mrf.mxu0 }
 0x1e5   : > { %v5007_v16 = vadd.f32 %v3447_v3, %v4895_v0  ;;  %v5011_v2 = vpop.f32.mrf.mxu1  ;;  %v2527_v18 = vadd.f32 %v3481_v26, %v4823_v35 }
 0x1e6   : > { %v3449_v10 = vpop.f32.mrf.mxu0 }
 0x1e7   : > { %5191 = vst [vmem:[#allocation11_spill] sm:$0xff] %v5007_v16  ;;  %v3450_v48 = vadd.f32 %v3449_v10, %v3448_v17  ;;  %v5016_v47 = vpop.f32.mrf.mxu1  ;;  %v3475_v17 = vadd.f32 %v4920_v25, %v4916_v6  ;;  %v3478_v6 = vadd.f32 %v4927_v8, %v4925_v49 }
 0x1e8   : > { %v3451_v36 = vpop.f32.mrf.mxu0 }
 0x1e9   : > { %v5014_v24 = vadd.f32 %v3450_v48, %v4902_v13  ;;  %v5020_v0 = vpop.f32.mrf.mxu1  ;;  %v3484_v48 = vadd.f32 %v4941_v31, %v4939_v45  ;;  %v2519_v35 = vadd.f32 %v3475_v17, %v4809_v44  ;;  %v2522_v44 = vadd.f32 %v3478_v6, %v4816_v21 }
 0x1ea   : > { %v3452_v53 = vpop.f32.mrf.mxu0 }
 0x1eb   : > { %5192 = vst [vmem:[#allocation12_spill] sm:$0xff] %v5014_v24  ;;  %v3453_v15 = vadd.f32 %v3452_v53, %v3451_v36  ;;  %v5027_v16 = vpop.f32.mrf.mxu1  ;;  %v3493_v36 = vadd.f32 %v4962_v32, %v4960_v54  ;;  %v2530_v26 = vadd.f32 %v3484_v48, %v4830_v20  ;;  %v3496_v54 = vadd.f32 %v4969_v14, %v4967_v51 }
 0x1ec   : > { %v3454_v3 = vpop.f32.mrf.mxu0  ;;  %v3505_v14 = vadd.f32 %v4990_v23, %v4988_v43 }
 0x1ed   : > { %v5025_v10 = vadd.f32 %v3453_v15, %v4909_v50  ;;  %v5031_v58 = vpop.f32.mrf.mxu1  ;;  %v2543_v20 = vadd.f32 %v3493_v36, %v4851_v56  ;;  %v2546_v56 = vadd.f32 %v3496_v54, %v4858_v42  ;;  %v3499_v36 = vadd.f32 %v4976_v38, %v4974_v27 }
 0x1ee   : > { %v3455_v13 = vpop.f32.mrf.mxu0  ;;  %v2559_v54 = vadd.f32 %v3505_v14, %v4879_v60 }
 0x1ef   : > { %v3456_v24 = vadd.f32 %v3455_v13, %v3454_v3  ;;  %v5046_v30 = vpop.f32.mrf.mxu1 }
 0x1f0   : > { %v3611_v50 = vpop.f32.mrf.mxu0 }
 0x1f1   : > { %v5044_v25 = vadd.f32 %v3456_v24, %v4918_v1  ;;  %v2688_v45 = vadd.f32 %v3611_v50, %v2527_v18  ;;  %v5052_v15 = vpop.f32.mrf.mxu1  ;;  %v3487_v1 = vadd.f32 %v4948_v33, %v4946_v46  ;;  %v3490_v46 = vadd.f32 %v4955_v12, %v4953_v11 }
 0x1f2   : > { %v2679_v31 = vpop.f32.mrf.mxu0 }
 0x1f3   : > { %2916 = vst [vmem:[%s5039_s17 + $0x10] sm:$0xff] %v2688_v45  ;;  %v2680_v53 = vadd.f32 %v2679_v31, %v2519_v35  ;;  %v5058_v8 = vpop.f32.mrf.mxu1  ;;  %v2535_v13 = vadd.f32 %v3487_v1, %v4837_v52  ;;  %v2846_v35 = vmul.f32 %v2688_v45, %v2688_v45 }
 0x1f4   : > { %v3612_v49 = vpop.f32.mrf.mxu0 }
 0x1f5   : > { %2914 = vst [vmem:[%s5039_s17] sm:$0xff] %v2680_v53  ;;  %v2691_v24 = vadd.f32 %v3612_v49, %v2530_v26  ;;  %v5064_v3 = vpop.f32.mrf.mxu1  ;;  %v2844_v48 = vmul.f32 %v2680_v53, %v2680_v53  ;;  %v2538_v26 = vadd.f32 %v3490_v46, %v4844_v5  ;;  %v2551_v46 = vadd.f32 %v3499_v36, %v4865_v7 }
 0x1f6   : > { %v2682_v32 = vpop.f32.mrf.mxu0 }
 0x1f7   : > { %2917 = vst [vmem:[%s5039_s17 + $0x18] sm:$0xff] %v2691_v24  ;;  %v2683_v17 = vadd.f32 %v2682_v32, %v2522_v44  ;;  %v5071_v50 = vpop.f32.mrf.mxu1  ;;  %v2847_v1 = vmul.f32 %v2691_v24, %v2691_v24 }
 0x1f8   : > { %v3615_v33 = vpop.f32.mrf.mxu0 }
 0x1f9   : > { %v2806_v18 = vadd.f32 %v2683_v17, %v2680_v53  ;;  %v2845_v21 = vmul.f32 %v2683_v17, %v2683_v17  ;;  %2915 = vst [vmem:[%s5039_s17 + $0x8] sm:$0xff] %v2683_v17  ;;  %v2704_v51 = vadd.f32 %v3615_v33, %v2543_v20  ;;  %v5077_v12 = vpop.f32.mrf.mxu1 }
 0x1fa   : > { %v2695_v6 = vpop.f32.mrf.mxu0 }
 0x1fb   : > { %v2807_v31 = vadd.f32 %v2806_v18, %v2688_v45  ;;  %v2876_v11 = vadd.f32 %v2845_v21, %v2844_v48  ;;  %2920 = vst [vmem:[%s5039_s17 + $0x30] sm:$0xff] %v2704_v51  ;;  %v2696_v52 = vadd.f32 %v2695_v6, %v2535_v13  ;;  %v5083_v23 = vpop.f32.mrf.mxu1  ;;  %v3508_v45 = vadd.f32 %v4997_v63, %v4995_v39 }
 0x1fc   : > { %v3616_v53 = vpop.f32.mrf.mxu0  ;;  %v3517_v48 = vadd.f32 %v5020_v0, %v5016_v47  ;;  %v2850_v14 = vmul.f32 %v2704_v51, %v2704_v51 }
 0x1fd   : > { %v2877_v49 = vadd.f32 %v2876_v11, %v2846_v35  ;;  %v2808_v43 = vadd.f32 %v2807_v31, %v2691_v24  ;;  %2918 = vst [vmem:[%s5039_s17 + $0x20] sm:$0xff] %v2696_v52  ;;  %v2707_v42 = vadd.f32 %v3616_v53, %v2546_v56  ;;  %v2848_v17 = vmul.f32 %v2696_v52, %v2696_v52  ;;  %v5089_v38 = vpop.f32.mrf.mxu1 }
 0x1fe   : > { %v2698_v44 = vpop.f32.mrf.mxu0  ;;  %v3502_v24 = vadd.f32 %v4983_v57, %v4981_v61  ;;  %v2562_v21 = vadd.f32 %v3508_v45, %v4886_v59  ;;  %v3511_v56 = vadd.f32 %v5004_v19, %v5002_v9  ;;  %v2575_v53 = vadd.f32 %v3517_v48, %v4907_v34 }
 0x1ff   : > { %v2809_v32 = vadd.f32 %v2808_v43, %v2696_v52  ;;  %v2878_v27 = vadd.f32 %v2877_v49, %v2847_v1  ;;  %2921 = vst [vmem:[%s5039_s17 + $0x38] sm:$0xff] %v2707_v42  ;;  %v2699_v5 = vadd.f32 %v2698_v44, %v2538_v26  ;;  %v5095_v63 = vpop.f32.mrf.mxu1  ;;  %v2851_v11 = vmul.f32 %v2707_v42, %v2707_v42 }
 0x200   : > { %v3619_v20 = vpop.f32.mrf.mxu0  ;;  %v2554_v31 = vadd.f32 %v3502_v24, %v4872_v41  ;;  %v3514_v49 = vadd.f32 %v5011_v2, %v5009_v62 }
 0x201   : > { %v2879_v33 = vadd.f32 %v2878_v27, %v2848_v17  ;;  %v2810_v13 = vadd.f32 %v2809_v32, %v2699_v5  ;;  %v2849_v39 = vmul.f32 %v2699_v5, %v2699_v5  ;;  %2919 = vst [vmem:[%s5039_s17 + $0x28] sm:$0xff] %v2699_v5  ;;  %v2720_v60 = vadd.f32 %v3619_v20, %v2559_v54  ;;  %v5101_v57 = vpop.f32.mrf.mxu1 }
 0x202   : > { %v2711_v18 = vpop.f32.mrf.mxu0  ;;  %v3529_v54 = vadd.f32 %v5077_v12, %v5071_v50 }
 0x203   : > { %v2811_v6 = vadd.f32 %v2810_v13, %v2704_v51  ;;  %v2880_v61 = vadd.f32 %v2879_v33, %v2849_v39  ;;  %2924 = vst [vmem:[%s5039_s17 + $0x50] sm:$0xff] %v2720_v60  ;;  %v2712_v7 = vadd.f32 %v2711_v18, %v2551_v46  ;;  %v5107_v0 = vpop.f32.mrf.mxu1  ;;  %v3520_v51 = vadd.f32 %v5031_v58, %v5027_v16 }
 0x204   : > { %v3620_v35 = vpop.f32.mrf.mxu0  ;;  %v2854_v27 = vmul.f32 %v2720_v60, %v2720_v60  ;;  %v2570_v46 = vadd.f32 %v3514_v49, %v4900_v29  ;;  %v2591_v48 = vadd.f32 %v3529_v54, %v4937_v28  ;;  %v3526_v29 = vadd.f32 %v5064_v3, %v5058_v8 }
 0x205   : > { %v2881_v52 = vadd.f32 %v2880_v61, %v2850_v14  ;;  %v2812_v47 = vadd.f32 %v2811_v6, %v2707_v42  ;;  %2922 = vst [vmem:[%s5039_s17 + $0x40] sm:$0xff] %v2712_v7  ;;  %v2723_v59 = vadd.f32 %v3620_v35, %v2562_v21  ;;  %v2852_v1 = vmul.f32 %v2712_v7, %v2712_v7  ;;  %v5113_v19 = vpop.f32.mrf.mxu1 }
 0x206   : > { %v2714_v36 = vpop.f32.mrf.mxu0  ;;  %v2567_v42 = vadd.f32 %v3511_v56, %v4893_v55  ;;  %v2578_v17 = vadd.f32 %v3520_v51, %v4914_v40  ;;  %v3523_v55 = vadd.f32 %v5052_v15, %v5046_v30  ;;  %v3532_v40 = vadd.f32 %v5089_v38, %v5083_v23 }
 0x207   : > { %v2813_v26 = vadd.f32 %v2812_v47, %v2712_v7  ;;  %v2882_v9 = vadd.f32 %v2881_v52, %v2851_v11  ;;  %2925 = vst [vmem:[%s5039_s17 + $0x58] sm:$0xff] %v2723_v59  ;;  %v2715_v41 = vadd.f32 %v2714_v36, %v2554_v31  ;;  %v3539_v16 = vpop.f32.mrf.mxu1  ;;  %v2855_v33 = vmul.f32 %v2723_v59, %v2723_v59 }
 0x208   : > { %v3623_v43 = vpop.f32.mrf.mxu0  ;;  %v2583_v61 = vadd.f32 %v3523_v55, %v4923_v4  ;;  %v2594_v11 = vadd.f32 %v3532_v40, %v4944_v22  ;;  %v3535_v4 = vadd.f32 %v5101_v57, %v5095_v63  ;;  %v2586_v36 = vadd.f32 %v3526_v29, %v4930_v37 }
 0x209   : > { %v2883_v45 = vadd.f32 %v2882_v9, %v2852_v1  ;;  %v2814_v44 = vadd.f32 %v2813_v26, %v2715_v41  ;;  %v2853_v58 = vmul.f32 %v2715_v41, %v2715_v41  ;;  %2923 = vst [vmem:[%s5039_s17 + $0x48] sm:$0xff] %v2715_v41  ;;  %v2736_v34 = vadd.f32 %v3623_v43, %v2575_v53  ;;  %v3540_v62 = vpop.f32.mrf.mxu1  ;;  %v5193_v43 = vld [vmem:[#allocation5_spill] sm:$0xff] }
 0x20a   : > { %v2727_v32 = vpop.f32.mrf.mxu0  ;;  %v3541_v28 = vadd.f32 %v3540_v62, %v3539_v16  ;;  %v3538_v37 = vadd.f32 %v5113_v19, %v5107_v0 }
 0x20b   : > { %v2815_v5 = vadd.f32 %v2814_v44, %v2720_v60  ;;  %v2884_v24 = vadd.f32 %v2883_v45, %v2853_v58  ;;  %2928 = vst [vmem:[%s5039_s17 + $0x70] sm:$0xff] %v2736_v34  ;;  %v2728_v2 = vadd.f32 %v2727_v32, %v2567_v42  ;;  %v3542_v50 = vpop.f32.mrf.mxu1  ;;  %v2858_v52 = vmul.f32 %v2736_v34, %v2736_v34 }
 0x20c   : > { %v3624_v20 = vpop.f32.mrf.mxu0  ;;  %v2607_v42 = vadd.f32 %v3541_v28, %v5193_v43  ;;  %v5200_v43 = vld [vmem:[#allocation8_spill] sm:$0xff] }
 0x20d   : > { %v2885_v13 = vadd.f32 %v2884_v24, %v2854_v27  ;;  %v2816_v39 = vadd.f32 %v2815_v5, %v2723_v59  ;;  %2926 = vst [vmem:[%s5039_s17 + $0x60] sm:$0xff] %v2728_v2  ;;  %v2739_v12 = vadd.f32 %v3624_v20, %v2578_v17  ;;  %v2856_v21 = vmul.f32 %v2728_v2, %v2728_v2  ;;  %v3543_v30 = vpop.f32.mrf.mxu1 }
 0x20e   : > { %v2730_v60 = vpop.f32.mrf.mxu0  ;;  %v3544_v22 = vadd.f32 %v3543_v30, %v3542_v50 }
 0x20f   : > { %v2817_v18 = vadd.f32 %v2816_v39, %v2728_v2  ;;  %v2886_v14 = vadd.f32 %v2885_v13, %v2855_v33  ;;  %2929 = vst [vmem:[%s5039_s17 + $0x78] sm:$0xff] %v2739_v12  ;;  %v2731_v15 = vadd.f32 %v2730_v60, %v2570_v46  ;;  %v3545_v23 = vpop.f32.mrf.mxu1  ;;  %v2859_v53 = vmul.f32 %v2739_v12, %v2739_v12  ;;  %v5195_v2 = vld [vmem:[#allocation6_spill] sm:$0xff] }
 0x210   : > { %v3627_v6 = vpop.f32.mrf.mxu0  ;;  %v2610_v55 = vadd.f32 %v3544_v22, %v5195_v2 }
 0x211   : > { %v2887_v7 = vadd.f32 %v2886_v14, %v2856_v21  ;;  %v2818_v56 = vadd.f32 %v2817_v18, %v2731_v15  ;;  %v2857_v35 = vmul.f32 %v2731_v15, %v2731_v15  ;;  %2927 = vst [vmem:[%s5039_s17 + $0x68] sm:$0xff] %v2731_v15  ;;  %v2752_v38 = vadd.f32 %v3627_v6, %v2591_v48  ;;  %v3546_v51 = vpop.f32.mrf.mxu1 }
 0x212   : > { %v2743_v31 = vpop.f32.mrf.mxu0  ;;  %v3547_v19 = vadd.f32 %v3546_v51, %v3545_v23 }
 0x213   : > { %v2819_v47 = vadd.f32 %v2818_v56, %v2736_v34  ;;  %v2888_v59 = vadd.f32 %v2887_v7, %v2857_v35  ;;  %2932 = vst [vmem:[%s5039_s17 + $0x90] sm:$0xff] %v2752_v38  ;;  %v2744_v8 = vadd.f32 %v2743_v31, %v2583_v61  ;;  %v3548_v9 = vpop.f32.mrf.mxu1  ;;  %v5194_v34 = vld [vmem:[#allocation3_spill] sm:$0xff]  ;;  %v2862_v20 = vmul.f32 %v2752_v38, %v2752_v38  ;;  %v5197_v56 = vld [vmem:[#allocation9_spill] sm:$0xff] }
 0x214   : > { %v3628_v3 = vpop.f32.mrf.mxu0  ;;  %v2599_v54 = vadd.f32 %v3535_v4, %v5194_v34  ;;  %v5198_v31 = vld [vmem:[#allocation7_spill] sm:$0xff] }
 0x215   : > { %v2889_v26 = vadd.f32 %v2888_v59, %v2858_v52  ;;  %v2820_v1 = vadd.f32 %v2819_v47, %v2739_v12  ;;  %2930 = vst [vmem:[%s5039_s17 + $0x80] sm:$0xff] %v2744_v8  ;;  %v2755_v41 = vadd.f32 %v3628_v3, %v2594_v11  ;;  %v2860_v44 = vmul.f32 %v2744_v8, %v2744_v8  ;;  %v3549_v16 = vpop.f32.mrf.mxu1  ;;  %v5196_v12 = vld [vmem:[#allocation4_spill] sm:$0xff] }
 0x216   : > { %v2746_v49 = vpop.f32.mrf.mxu0  ;;  %v2602_v40 = vadd.f32 %v3538_v37, %v5196_v12  ;;  %v3550_v23 = vadd.f32 %v3549_v16, %v3548_v9  ;;  %v2615_v11 = vadd.f32 %v3547_v19, %v5198_v31  ;;  %v5199_v9 = vld [vmem:[#allocation10_spill] sm:$0xff] }
 0x217   : > { %v2821_v45 = vadd.f32 %v2820_v1, %v2744_v8  ;;  %v2890_v58 = vadd.f32 %v2889_v26, %v2859_v53  ;;  %2933 = vst [vmem:[%s5039_s17 + $0x98] sm:$0xff] %v2755_v41  ;;  %v2747_v63 = vadd.f32 %v2746_v49, %v2586_v36  ;;  %v3551_v5 = vpop.f32.mrf.mxu1  ;;  %v2863_v60 = vmul.f32 %v2755_v41, %v2755_v41 }
 0x218   : > { %v3631_v57 = vpop.f32.mrf.mxu0 }
 0x219   : > { %v2891_v32 = vadd.f32 %v2890_v58, %v2860_v44  ;;  %v2822_v17 = vadd.f32 %v2821_v45, %v2747_v63  ;;  %v2861_v27 = vmul.f32 %v2747_v63, %v2747_v63  ;;  %2931 = vst [vmem:[%s5039_s17 + $0x88] sm:$0xff] %v2747_v63  ;;  %v2768_v24 = vadd.f32 %v3631_v57, %v2607_v42  ;;  %v3552_v13 = vpop.f32.mrf.mxu1 }
 0x21a   : > { %v2759_v62 = vpop.f32.mrf.mxu0  ;;  %v3553_v39 = vadd.f32 %v3552_v13, %v3551_v5  ;;  %v2618_v42 = vadd.f32 %v3550_v23, %v5200_v43  ;;  %v5201_v5 = vld [vmem:[#allocation11_spill] sm:$0xff] }
 0x21b   : > { %v2823_v46 = vadd.f32 %v2822_v17, %v2752_v38  ;;  %v2892_v33 = vadd.f32 %v2891_v32, %v2861_v27  ;;  %2936 = vst [vmem:[%s5039_s17 + $0xb0] sm:$0xff] %v2768_v24  ;;  %v2760_v0 = vadd.f32 %v2759_v62, %v2599_v54  ;;  %v3554_v21 = vpop.f32.mrf.mxu1  ;;  %v2866_v4 = vmul.f32 %v2768_v24, %v2768_v24 }
 0x21c   : > { %v3632_v50 = vpop.f32.mrf.mxu0  ;;  %v2623_v35 = vadd.f32 %v3553_v39, %v5197_v56 }
 0x21d   : > { %v2893_v48 = vadd.f32 %v2892_v33, %v2862_v20  ;;  %v2824_v18 = vadd.f32 %v2823_v46, %v2755_v41  ;;  %2934 = vst [vmem:[%s5039_s17 + $0xa0] sm:$0xff] %v2760_v0  ;;  %v2771_v14 = vadd.f32 %v3632_v50, %v2610_v55  ;;  %v2864_v30 = vmul.f32 %v2760_v0, %v2760_v0  ;;  %v3555_v61 = vpop.f32.mrf.mxu1 }
 0x21e   : > { %v2762_v15 = vpop.f32.mrf.mxu0  ;;  %v3556_v38 = vadd.f32 %v3555_v61, %v3554_v21 }
 0x21f   : > { %v2825_v29 = vadd.f32 %v2824_v18, %v2760_v0  ;;  %v2894_v6 = vadd.f32 %v2893_v48, %v2863_v60  ;;  %2937 = vst [vmem:[%s5039_s17 + $0xb8] sm:$0xff] %v2771_v14  ;;  %v2763_v7 = vadd.f32 %v2762_v15, %v2602_v40  ;;  %v3557_v51 = vpop.f32.mrf.mxu1  ;;  %v2867_v45 = vmul.f32 %v2771_v14, %v2771_v14 }
 0x220   : > { %v3635_v28 = vpop.f32.mrf.mxu0  ;;  %v2626_v41 = vadd.f32 %v3556_v38, %v5199_v9 }
 0x221   : > { %v2895_v52 = vadd.f32 %v2894_v6, %v2864_v30  ;;  %v2826_v47 = vadd.f32 %v2825_v29, %v2763_v7  ;;  %v2865_v59 = vmul.f32 %v2763_v7, %v2763_v7  ;;  %2935 = vst [vmem:[%s5039_s17 + $0xa8] sm:$0xff] %v2763_v7  ;;  %v2784_v8 = vadd.f32 %v3635_v28, %v2623_v35  ;;  %v3558_v26 = vpop.f32.mrf.mxu1 }
 0x222   : > { %v2775_v3 = vpop.f32.mrf.mxu0  ;;  %v3559_v22 = vadd.f32 %v3558_v26, %v3557_v51 }
 0x223   : > { %v2827_v36 = vadd.f32 %v2826_v47, %v2768_v24  ;;  %v2896_v53 = vadd.f32 %v2895_v52, %v2865_v59  ;;  %2940 = vst [vmem:[%s5039_s17 + $0xd0] sm:$0xff] %v2784_v8  ;;  %v2776_v1 = vadd.f32 %v2775_v3, %v2615_v11  ;;  %v3560_v16 = vpop.f32.mrf.mxu1  ;;  %v2870_v13 = vmul.f32 %v2784_v8, %v2784_v8 }
 0x224   : > { %v3636_v49 = vpop.f32.mrf.mxu0  ;;  %v2631_v24 = vadd.f32 %v3559_v22, %v5201_v5 }
 0x225   : > { %v2897_v44 = vadd.f32 %v2896_v53, %v2866_v4  ;;  %v2828_v58 = vadd.f32 %v2827_v36, %v2771_v14  ;;  %2938 = vst [vmem:[%s5039_s17 + $0xc0] sm:$0xff] %v2776_v1  ;;  %v2787_v63 = vadd.f32 %v3636_v49, %v2626_v41  ;;  %v2868_v34 = vmul.f32 %v2776_v1, %v2776_v1  ;;  %v3561_v32 = vpop.f32.mrf.mxu1  ;;  %v5202_v14 = vld [vmem:[#allocation12_spill] sm:$0xff] }
 0x226   : > { %v2778_v37 = vpop.f32.mrf.mxu0  ;;  %v3562_v2 = vadd.f32 %v3561_v32, %v3560_v16 }
 0x227   : > { %v2829_v57 = vadd.f32 %v2828_v58, %v2776_v1  ;;  %v2898_v54 = vadd.f32 %v2897_v44, %v2867_v45  ;;  %2941 = vst [vmem:[%s5039_s17 + $0xd8] sm:$0xff] %v2787_v63  ;;  %v2779_v17 = vadd.f32 %v2778_v37, %v2618_v42  ;;  %v3563_v46 = vpop.f32.mrf.mxu1  ;;  %v2871_v60 = vmul.f32 %v2787_v63, %v2787_v63 }
 0x228   : > { %v3639_v27 = vpop.f32.mrf.mxu0  ;;  %v2634_v30 = vadd.f32 %v3562_v2, %v5202_v14 }
 0x229   : > { %v2899_v62 = vadd.f32 %v2898_v54, %v2868_v34  ;;  %v2830_v55 = vadd.f32 %v2829_v57, %v2779_v17  ;;  %v2869_v20 = vmul.f32 %v2779_v17, %v2779_v17  ;;  %2939 = vst [vmem:[%s5039_s17 + $0xc8] sm:$0xff] %v2779_v17  ;;  %v3564_v39 = vpop.f32.mrf.mxu1 }
 0x22a   : > { %v2791_v33 = vpop.f32.mrf.mxu0  ;;  %v3565_v12 = vadd.f32 %v3564_v39, %v3563_v46 }
 0x22b   : > { %v2831_v0 = vadd.f32 %v2830_v55, %v2784_v8  ;;  %v2900_v19 = vadd.f32 %v2899_v62, %v2869_v20  ;;  %v2792_v50 = vadd.f32 %v2791_v33, %v2631_v24  ;;  %v3566_v21 = vpop.f32.mrf.mxu1 }
 0x22c   : > { %v3640_v40 = vpop.f32.mrf.mxu0  ;;  %v2639_v15 = vadd.f32 %v3565_v12, %v5025_v10 }
 0x22d   : > { %v2901_v48 = vadd.f32 %v2900_v19, %v2870_v13  ;;  %v2832_v18 = vadd.f32 %v2831_v0, %v2787_v63  ;;  %2942 = vst [vmem:[%s5039_s17 + $0xe0] sm:$0xff] %v2792_v50  ;;  %v2872_v61 = vmul.f32 %v2792_v50, %v2792_v50  ;;  %v3567_v56 = vpop.f32.mrf.mxu1 }
 0x22e   : > { %v2794_v29 = vpop.f32.mrf.mxu0  ;;  %v2800_v23 = vadd.f32 %v3639_v27, %v2639_v15  ;;  %v3568_v38 = vadd.f32 %v3567_v56, %v3566_v21 }
 0x22f   : > { %v2833_v6 = vadd.f32 %v2832_v18, %v2792_v50  ;;  %v2902_v7 = vadd.f32 %v2901_v48, %v2871_v60  ;;  %v2795_v35 = vadd.f32 %v2794_v29, %v2634_v30 }
 0x230   : > { %2944 = vst [vmem:[%s5039_s17 + $0xf0] sm:$0xff] %v2800_v23  ;;  %v2642_v52 = vadd.f32 %v3568_v38, %v5044_v25  ;;  %v2874_v47 = vmul.f32 %v2800_v23, %v2800_v23 }
 0x231   : > { %v2903_v28 = vadd.f32 %v2902_v7, %v2872_v61  ;;  %v2834_v31 = vadd.f32 %v2833_v6, %v2795_v35  ;;  %v2873_v11 = vmul.f32 %v2795_v35, %v2795_v35  ;;  %2943 = vst [vmem:[%s5039_s17 + $0xe8] sm:$0xff] %v2795_v35 }
 0x232   : > { %v2803_v51 = vadd.f32 %v3640_v40, %v2642_v52 }
 0x233   : > { %v2835_v59 = vadd.f32 %v2834_v31, %v2800_v23  ;;  %v2904_v10 = vadd.f32 %v2903_v28, %v2873_v11 }
 0x234   : > { %v2875_v4 = vmul.f32 %v2803_v51, %v2803_v51  ;;  %2945 = vst [vmem:[%s5039_s17 + $0xf8] sm:$0xff] %v2803_v51 }
 0x235   : > { %v2905_v8 = vadd.f32 %v2904_v10, %v2874_v47  ;;  %v2836_v3 = vadd.f32 %v2835_v59, %v2803_v51 }
 0x237   : > { %v2837_v36 = vrot.slane %v2836_v3, 4  ;;  %v2906_v53 = vadd.f32 %v2905_v8, %v2875_v4 }
 0x239   : > { %v2838_v26 = vadd.f32 %v2837_v36, %v2836_v3  ;;  %v2907_v1 = vrot.slane %v2906_v53, 4 }
 0x23b   : > { %v2839_v9 = vrot.slane %v2838_v26, 2  ;;  %v2908_v41 = vadd.f32 %v2907_v1, %v2906_v53 }
 0x23d   : > { %v2840_v22 = vadd.f32 %v2839_v9, %v2838_v26  ;;  %v2909_v49 = vrot.slane %v2908_v41, 2 }
 0x23f   : > { %v2841_v43 = vrot.slane %v2840_v22, 1  ;;  %v2910_v42 = vadd.f32 %v2909_v49, %v2908_v41 }
 0x241   : > { %v2842_v25 = vadd.f32 %v2841_v43, %v2840_v22  ;;  %v2911_v45 = vrot.slane %v2910_v42, 1 }
 0x243   : > { %2843 = vst [vmem:[%s262_s20] sm:$0x1] %v2842_v25  ;;  %v2912_v44 = vadd.f32 %v2911_v45, %v2910_v42 }
 0x245   : > { %2913 = vst [vmem:[%s262_s20 + $0x1] sm:$0x1] %v2912_v44 }
 0x246 PF: > { %s17_s21 = sadd.s32 1, %s3758_s21  }
 0x247   : > { %p14_p4 = scmp.ge.s32.totalorder %s17_s21, 4  }
 0x249   :  { %16 = sbr.rel (!%p14_p4) target bundleno = 1 (0x1), region = 84 }

</bundles_post_ra>
